<compile_context>
chip_gen: v6e
topology: v6e:2x2x1
jax: 0.10.0
libtpu: 0.0.40
codegen_flags: <defaults>
</compile_context>

<pallas_src>
import functools

import jax
import jax.numpy as jnp
from jax.experimental import pallas as pl
from jax.experimental.pallas import tpu as pltpu


def _round_up(x, m):
    return ((x + m - 1) // m) * m


def _conv_bias_relu_kernel(x_ref, w_ref, b_ref, o_ref, acc_ref, *,
                           k_h, k_w, w_row, tile_m):
    """relu(conv(x) + b) for one (batch, m-tile) grid step.

    x_ref   : (1, L, Cin_p)          whole zero-padded image, rows flattened with
                                     pitch w_row; resident across the m-tile axis.
    w_ref   : (KH*KW, Cin_p, Cout_p) conv taps, grid-resident.
    b_ref   : (1, Cout_p)            bias (f32).
    o_ref   : (1, tile_m, Cout_p)    one flattened output-row tile.
    acc_ref : (tile_m, Cout_p)       f32 VMEM accumulator scratch.

    The conv is decomposed into KH*KW shifted contributions; each tap is one
    MXU contraction over the (lane-dense) input-channel dim.
    """
    base = pl.multiple_of(pl.program_id(1) * tile_m, 8)   # tile_m is a multiple of 8
    acc_ref[...] = jnp.zeros_like(acc_ref)
    for i in range(k_h):
        for j in range(k_w):
            shift = i * w_row + j
            start = base + shift
            if shift % 8 == 0:
                start = pl.multiple_of(start, 8)
            patch = x_ref[0, pl.ds(start, tile_m), :]                 # (tile_m, Cin_p)
            acc_ref[...] += jnp.dot(patch, w_ref[i * k_w + j],        # MXU
                                    preferred_element_type=jnp.float32)
    y = acc_ref[...] + b_ref[...]
    o_ref[0] = jnp.maximum(y, 0.0).astype(o_ref.dtype)


def conv_module_forward(x, weight, bias, *, stride=1, padding=1):
    """ConvModule.forward for the default config: relu(conv2d(x) + bias).

    x      : (N, Cin, H, W)   NCHW, like PyTorch.
    weight : (Cout, Cin, KH, KW)
    bias   : (Cout,)
    """
    assert stride == 1  # TODO(synk): strided conv not implemented.
    n, c_in, h, w = x.shape
    c_out, _, k_h, k_w = weight.shape

    compute_dtype = x.dtype          # bf16 stays bf16; accumulation is f32 on MXU
    lane = 128
    c_in_p = _round_up(c_in, lane)
    c_out_p = _round_up(c_out, lane)

    h_pad = h + 2 * padding
    w_real = w + 2 * padding
    w_row = _round_up(w_real, 8)     # sublane-aligned flattened row pitch
    h_out = h_pad - k_h + 1
    w_out = w_real - k_w + 1

    # Flattened output rows (padded-width pitch); extra columns / rows are
    # garbage that gets sliced off in the wrapper.
    m_total = h_out * w_row
    tile_m = min(512, _round_up(m_total, 8))
    m_padded = _round_up(m_total, tile_m)
    n_mt = m_padded // tile_m

    # Input flat length must cover every shifted window: max shift + tile span.
    halo = (k_h - 1) * w_row + (k_w - 1)
    rows_total = max(-(-(m_padded + halo) // w_row), h_pad)
    length = rows_total * w_row

    # Layout plumbing (one fused XLA op chain): NCHW -> NHWC, zero-pad spatial
    # dims + channels (lane-dense), flatten rows with pitch w_row.
    xp = jnp.transpose(x, (0, 2, 3, 1)).astype(compute_dtype)
    xp = jnp.pad(xp, ((0, 0),
                      (padding, rows_total - h - padding),
                      (padding, w_row - w - padding),
                      (0, c_in_p - c_in)))
    xf = xp.reshape(n, length, c_in_p)

    wf = jnp.transpose(weight, (2, 3, 1, 0)).reshape(k_h * k_w, c_in, c_out)
    wf = jnp.pad(wf, ((0, 0), (0, c_in_p - c_in), (0, c_out_p - c_out)))
    wf = wf.astype(compute_dtype)
    bf = jnp.pad(bias, (0, c_out_p - c_out)).reshape(1, c_out_p).astype(jnp.float32)

    kernel = functools.partial(_conv_bias_relu_kernel, k_h=k_h, k_w=k_w,
                               w_row=w_row, tile_m=tile_m)

    in_itm = jnp.dtype(compute_dtype).itemsize
    bytes_accessed = (n * length * c_in_p * in_itm
                      + wf.size * in_itm + bf.size * 4
                      + n * m_padded * c_out_p * in_itm)
    cost = pl.CostEstimate(flops=2 * n * h_out * w_out * c_in * c_out * k_h * k_w,
                           transcendentals=0,
                           bytes_accessed=bytes_accessed)

    # VMEM budget: resident image (double-buffered across batch), resident
    # weights, double-buffered output tile, f32 accumulator.  Cap at 64 MiB so
    # the same limit is valid on v7x (64 MiB physical VMEM).
    vmem_est = (2 * length * c_in_p * in_itm
                + wf.size * in_itm
                + 2 * tile_m * c_out_p * in_itm
                + tile_m * c_out_p * 4)
    vmem_limit = int(min(max(2 * vmem_est, 32 * 1024 * 1024), 64 * 1024 * 1024))

    out = pl.pallas_call(
        kernel,
        out_shape=jax.ShapeDtypeStruct((n, m_padded, c_out_p), compute_dtype),
        grid=(n, n_mt),
        in_specs=[
            # Whole flattened padded image; constant block index along the
            # m-tile axis -> DMA'd once per batch element, stays resident.
            pl.BlockSpec((1, length, c_in_p), lambda b, t: (b, 0, 0)),
            # Weights / bias: constant block index -> fetched once.
            pl.BlockSpec((k_h * k_w, c_in_p, c_out_p), lambda b, t: (0, 0, 0)),
            pl.BlockSpec((1, c_out_p), lambda b, t: (0, 0)),
        ],
        out_specs=pl.BlockSpec((1, tile_m, c_out_p), lambda b, t: (b, t, 0)),
        scratch_shapes=[pltpu.VMEM((tile_m, c_out_p), jnp.float32)],
        compiler_params=pltpu.CompilerParams(
            dimension_semantics=("parallel", "parallel"),  # batch & spatial tiles
            vmem_limit_bytes=vmem_limit),
        cost_estimate=cost,
    )(xf, wf, bf)

    # (N, M_pad, Cout_p) -> drop padded rows -> (N, H_out, w_row, Cout_p)
    # -> drop padded columns / channels -> NCHW.
    out = out[:, :m_total, :].reshape(n, h_out, w_row, c_out_p)
    out = out[:, :, :w_out, :c_out]
    return jnp.transpose(out, (0, 3, 1, 2)).astype(x.dtype)


def _conv_module_ref(x, weight, bias, *, stride=1, padding=1):
    """Pure-JAX reference: relu(conv2d(x) + bias)."""
    y = jax.lax.conv_general_dilated(
        x.astype(jnp.float32), weight.astype(jnp.float32),
        window_strides=(stride, stride),
        padding=[(padding, padding), (padding, padding)],
        dimension_numbers=("NCHW", "OIHW", "NCHW"),
        precision=jax.lax.Precision.HIGHEST)
    y = y + bias.reshape(1, -1, 1, 1).astype(jnp.float32)
    return jnp.maximum(y, 0.0).astype(x.dtype)


if __name__ == "__main__":
    key = jax.random.PRNGKey(0)
    k1, k2, k3 = jax.random.split(key, 3)
    batch, c_in, hw = 2, 4, 16
    c_out, ksize = 8, 3

    x = jax.random.normal(k1, (batch, c_in, hw, hw), dtype=jnp.float32)       # NCHW
    weight = 0.1 * jax.random.normal(k2, (c_out, c_in, ksize, ksize), dtype=jnp.float32)
    bias = 0.1 * jax.random.normal(k3, (c_out,), dtype=jnp.float32)

    y = conv_module_forward(x, weight, bias, stride=1, padding=1)
    jax.block_until_ready(y)

    y_ref = _conv_module_ref(x, weight, bias, stride=1, padding=1)
    assert y.shape == (batch, c_out, hw, hw) and y.dtype == x.dtype
    err = float(jnp.max(jnp.abs(y.astype(jnp.float32) - y_ref.astype(jnp.float32))))
    assert err < 1e-4, err
    print("KERNEL_OK")
</pallas_src>

<mosaic_0001>
module attributes {stable_mosaic.version = 11 : i64} {
  func.func @_conv_bias_relu_kernel(%arg0: i32, %arg1: i32, %arg2: memref<1x456x128xf32, #tpu.memory_space<vmem>>, %arg3: memref<9x128x128xf32, #tpu.memory_space<vmem>>, %arg4: memref<1x128xf32, #tpu.memory_space<vmem>>, %arg5: memref<1x384x128xf32, #tpu.memory_space<vmem>>, %arg6: memref<384x128xf32, #tpu.memory_space<vmem>>) attributes {dimension_semantics = [#tpu.dimension_semantics<parallel>, #tpu.dimension_semantics<parallel>], iteration_bounds = array<i64: 2, 1>, scalar_prefetch = 0 : i64, scratch_operands = 1 : i64, tpu.core_type = #tpu.core_type<tc>, window_params = [{transform_indices = @transform_0, window_bounds = array<i64: 1, 456, 128>}, {pipeline_mode = #tpu.pipeline_mode<synchronous>, transform_indices = @transform_1, window_bounds = array<i64: 9, 128, 128>}, {pipeline_mode = #tpu.pipeline_mode<synchronous>, transform_indices = @transform_2, window_bounds = array<i64: 1, 128>}, {transform_indices = @transform_3, window_bounds = array<i64: 1, 384, 128>}]} {
    %c384_i32 = arith.constant 384 : i32
    %0 = arith.muli %arg1, %c384_i32 : i32
    %1 = tpu.assume_multiple %0, 8 : i32
    %cst = arith.constant 0.000000e+00 : f32
    %2 = vector.broadcast %cst : f32 to vector<384x128xf32>
    %c0 = arith.constant 0 : index
    %c0_0 = arith.constant 0 : index
    %3 = vector.load %arg6[%c0, %c0_0] : memref<384x128xf32, #tpu.memory_space<vmem>>, vector<384x128xf32>
    tpu.vector_store %arg6[%c0, %c0_0], %2 {strides = array<i32>} : memref<384x128xf32, #tpu.memory_space<vmem>>, vector<384x128xf32>,
    %c0_i32 = arith.constant 0 : i32
    %4 = arith.addi %1, %c0_i32 : i32
    %5 = tpu.assume_multiple %4, 8 : i32
    %c0_1 = arith.constant 0 : index
    %6 = arith.index_cast %5 : i32 to index
    %c0_2 = arith.constant 0 : index
    %7 = vector.load %arg2[%c0_1, %6, %c0_2] : memref<1x456x128xf32, #tpu.memory_space<vmem>>, vector<1x384x128xf32>
    %8 = vector.shape_cast %7 : vector<1x384x128xf32> to vector<384x128xf32>
    %c0_3 = arith.constant 0 : index
    %c0_4 = arith.constant 0 : index
    %9 = vector.load %arg6[%c0_3, %c0_4] : memref<384x128xf32, #tpu.memory_space<vmem>>, vector<384x128xf32>
    %c0_5 = arith.constant 0 : index
    %c0_6 = arith.constant 0 : index
    %c0_7 = arith.constant 0 : index
    %10 = vector.load %arg3[%c0_5, %c0_6, %c0_7] : memref<9x128x128xf32, #tpu.memory_space<vmem>>, vector<1x128x128xf32>
    %11 = vector.shape_cast %10 : vector<1x128x128xf32> to vector<128x128xf32>
    %cst_8 = arith.constant dense<0.000000e+00> : vector<384x128xf32>
    %12 = tpu.matmul %8, %11, %cst_8 {dimension_numbers = #tpu.dot_dimension_numbers<[1], [0], [0], [1], [0, 0, 1, 1], [], []>} : vector<384x128xf32>, vector<128x128xf32>, vector<384x128xf32> -> vector<384x128xf32>
    %13 = arith.addf %9, %12 : vector<384x128xf32>
    %c0_9 = arith.constant 0 : index
    %c0_10 = arith.constant 0 : index
    %14 = vector.load %arg6[%c0_9, %c0_10] : memref<384x128xf32, #tpu.memory_space<vmem>>, vector<384x128xf32>
    tpu.vector_store %arg6[%c0_9, %c0_10], %13 {strides = array<i32>} : memref<384x128xf32, #tpu.memory_space<vmem>>, vector<384x128xf32>,
    %c1_i32 = arith.constant 1 : i32
    %15 = arith.addi %1, %c1_i32 : i32
    %c0_11 = arith.constant 0 : index
    %16 = arith.index_cast %15 : i32 to index
    %c0_12 = arith.constant 0 : index
    %17 = vector.load %arg2[%c0_11, %16, %c0_12] : memref<1x456x128xf32, #tpu.memory_space<vmem>>, vector<1x384x128xf32>
    %18 = vector.shape_cast %17 : vector<1x384x128xf32> to vector<384x128xf32>
    %c0_13 = arith.constant 0 : index
    %c0_14 = arith.constant 0 : index
    %19 = vector.load %arg6[%c0_13, %c0_14] : memref<384x128xf32, #tpu.memory_space<vmem>>, vector<384x128xf32>
    %c1 = arith.constant 1 : index
    %c0_15 = arith.constant 0 : index
    %c0_16 = arith.constant 0 : index
    %20 = vector.load %arg3[%c1, %c0_15, %c0_16] : memref<9x128x128xf32, #tpu.memory_space<vmem>>, vector<1x128x128xf32>
    %21 = vector.shape_cast %20 : vector<1x128x128xf32> to vector<128x128xf32>
    %cst_17 = arith.constant dense<0.000000e+00> : vector<384x128xf32>
    %22 = tpu.matmul %18, %21, %cst_17 {dimension_numbers = #tpu.dot_dimension_numbers<[1], [0], [0], [1], [0, 0, 1, 1], [], []>} : vector<384x128xf32>, vector<128x128xf32>, vector<384x128xf32> -> vector<384x128xf32>
    %23 = arith.addf %19, %22 : vector<384x128xf32>
    %c0_18 = arith.constant 0 : index
    %c0_19 = arith.constant 0 : index
    %24 = vector.load %arg6[%c0_18, %c0_19] : memref<384x128xf32, #tpu.memory_space<vmem>>, vector<384x128xf32>
    tpu.vector_store %arg6[%c0_18, %c0_19], %23 {strides = array<i32>} : memref<384x128xf32, #tpu.memory_space<vmem>>, vector<384x128xf32>,
    %c2_i32 = arith.constant 2 : i32
    %25 = arith.addi %1, %c2_i32 : i32
    %c0_20 = arith.constant 0 : index
    %26 = arith.index_cast %25 : i32 to index
    %c0_21 = arith.constant 0 : index
    %27 = vector.load %arg2[%c0_20, %26, %c0_21] : memref<1x456x128xf32, #tpu.memory_space<vmem>>, vector<1x384x128xf32>
    %28 = vector.shape_cast %27 : vector<1x384x128xf32> to vector<384x128xf32>
    %c0_22 = arith.constant 0 : index
    %c0_23 = arith.constant 0 : index
    %29 = vector.load %arg6[%c0_22, %c0_23] : memref<384x128xf32, #tpu.memory_space<vmem>>, vector<384x128xf32>
    %c2 = arith.constant 2 : index
    %c0_24 = arith.constant 0 : index
    %c0_25 = arith.constant 0 : index
    %30 = vector.load %arg3[%c2, %c0_24, %c0_25] : memref<9x128x128xf32, #tpu.memory_space<vmem>>, vector<1x128x128xf32>
    %31 = vector.shape_cast %30 : vector<1x128x128xf32> to vector<128x128xf32>
    %cst_26 = arith.constant dense<0.000000e+00> : vector<384x128xf32>
    %32 = tpu.matmul %28, %31, %cst_26 {dimension_numbers = #tpu.dot_dimension_numbers<[1], [0], [0], [1], [0, 0, 1, 1], [], []>} : vector<384x128xf32>, vector<128x128xf32>, vector<384x128xf32> -> vector<384x128xf32>
    %33 = arith.addf %29, %32 : vector<384x128xf32>
    %c0_27 = arith.constant 0 : index
    %c0_28 = arith.constant 0 : index
    %34 = vector.load %arg6[%c0_27, %c0_28] : memref<384x128xf32, #tpu.memory_space<vmem>>, vector<384x128xf32>
    tpu.vector_store %arg6[%c0_27, %c0_28], %33 {strides = array<i32>} : memref<384x128xf32, #tpu.memory_space<vmem>>, vector<384x128xf32>,
    %c24_i32 = arith.constant 24 : i32
    %35 = arith.addi %1, %c24_i32 : i32
    %36 = tpu.assume_multiple %35, 8 : i32
    %c0_29 = arith.constant 0 : index
    %37 = arith.index_cast %36 : i32 to index
    %c0_30 = arith.constant 0 : index
    %38 = vector.load %arg2[%c0_29, %37, %c0_30] : memref<1x456x128xf32, #tpu.memory_space<vmem>>, vector<1x384x128xf32>
    %39 = vector.shape_cast %38 : vector<1x384x128xf32> to vector<384x128xf32>
    %c0_31 = arith.constant 0 : index
    %c0_32 = arith.constant 0 : index
    %40 = vector.load %arg6[%c0_31, %c0_32] : memref<384x128xf32, #tpu.memory_space<vmem>>, vector<384x128xf32>
    %c3 = arith.constant 3 : index
    %c0_33 = arith.constant 0 : index
    %c0_34 = arith.constant 0 : index
    %41 = vector.load %arg3[%c3, %c0_33, %c0_34] : memref<9x128x128xf32, #tpu.memory_space<vmem>>, vector<1x128x128xf32>
    %42 = vector.shape_cast %41 : vector<1x128x128xf32> to vector<128x128xf32>
    %cst_35 = arith.constant dense<0.000000e+00> : vector<384x128xf32>
    %43 = tpu.matmul %39, %42, %cst_35 {dimension_numbers = #tpu.dot_dimension_numbers<[1], [0], [0], [1], [0, 0, 1, 1], [], []>} : vector<384x128xf32>, vector<128x128xf32>, vector<384x128xf32> -> vector<384x128xf32>
    %44 = arith.addf %40, %43 : vector<384x128xf32>
    %c0_36 = arith.constant 0 : index
    %c0_37 = arith.constant 0 : index
    %45 = vector.load %arg6[%c0_36, %c0_37] : memref<384x128xf32, #tpu.memory_space<vmem>>, vector<384x128xf32>
    tpu.vector_store %arg6[%c0_36, %c0_37], %44 {strides = array<i32>} : memref<384x128xf32, #tpu.memory_space<vmem>>, vector<384x128xf32>,
    %c25_i32 = arith.constant 25 : i32
    %46 = arith.addi %1, %c25_i32 : i32
    %c0_38 = arith.constant 0 : index
    %47 = arith.index_cast %46 : i32 to index
    %c0_39 = arith.constant 0 : index
    %48 = vector.load %arg2[%c0_38, %47, %c0_39] : memref<1x456x128xf32, #tpu.memory_space<vmem>>, vector<1x384x128xf32>
    %49 = vector.shape_cast %48 : vector<1x384x128xf32> to vector<384x128xf32>
    %c0_40 = arith.constant 0 : index
    %c0_41 = arith.constant 0 : index
    %50 = vector.load %arg6[%c0_40, %c0_41] : memref<384x128xf32, #tpu.memory_space<vmem>>, vector<384x128xf32>
    %c4 = arith.constant 4 : index
    %c0_42 = arith.constant 0 : index
    %c0_43 = arith.constant 0 : index
    %51 = vector.load %arg3[%c4, %c0_42, %c0_43] : memref<9x128x128xf32, #tpu.memory_space<vmem>>, vector<1x128x128xf32>
    %52 = vector.shape_cast %51 : vector<1x128x128xf32> to vector<128x128xf32>
    %cst_44 = arith.constant dense<0.000000e+00> : vector<384x128xf32>
    %53 = tpu.matmul %49, %52, %cst_44 {dimension_numbers = #tpu.dot_dimension_numbers<[1], [0], [0], [1], [0, 0, 1, 1], [], []>} : vector<384x128xf32>, vector<128x128xf32>, vector<384x128xf32> -> vector<384x128xf32>
    %54 = arith.addf %50, %53 : vector<384x128xf32>
    %c0_45 = arith.constant 0 : index
    %c0_46 = arith.constant 0 : index
    %55 = vector.load %arg6[%c0_45, %c0_46] : memref<384x128xf32, #tpu.memory_space<vmem>>, vector<384x128xf32>
    tpu.vector_store %arg6[%c0_45, %c0_46], %54 {strides = array<i32>} : memref<384x128xf32, #tpu.memory_space<vmem>>, vector<384x128xf32>,
    %c26_i32 = arith.constant 26 : i32
    %56 = arith.addi %1, %c26_i32 : i32
    %c0_47 = arith.constant 0 : index
    %57 = arith.index_cast %56 : i32 to index
    %c0_48 = arith.constant 0 : index
    %58 = vector.load %arg2[%c0_47, %57, %c0_48] : memref<1x456x128xf32, #tpu.memory_space<vmem>>, vector<1x384x128xf32>
    %59 = vector.shape_cast %58 : vector<1x384x128xf32> to vector<384x128xf32>
    %c0_49 = arith.constant 0 : index
    %c0_50 = arith.constant 0 : index
    %60 = vector.load %arg6[%c0_49, %c0_50] : memref<384x128xf32, #tpu.memory_space<vmem>>, vector<384x128xf32>
    %c5 = arith.constant 5 : index
    %c0_51 = arith.constant 0 : index
    %c0_52 = arith.constant 0 : index
    %61 = vector.load %arg3[%c5, %c0_51, %c0_52] : memref<9x128x128xf32, #tpu.memory_space<vmem>>, vector<1x128x128xf32>
    %62 = vector.shape_cast %61 : vector<1x128x128xf32> to vector<128x128xf32>
    %cst_53 = arith.constant dense<0.000000e+00> : vector<384x128xf32>
    %63 = tpu.matmul %59, %62, %cst_53 {dimension_numbers = #tpu.dot_dimension_numbers<[1], [0], [0], [1], [0, 0, 1, 1], [], []>} : vector<384x128xf32>, vector<128x128xf32>, vector<384x128xf32> -> vector<384x128xf32>
    %64 = arith.addf %60, %63 : vector<384x128xf32>
    %c0_54 = arith.constant 0 : index
    %c0_55 = arith.constant 0 : index
    %65 = vector.load %arg6[%c0_54, %c0_55] : memref<384x128xf32, #tpu.memory_space<vmem>>, vector<384x128xf32>
    tpu.vector_store %arg6[%c0_54, %c0_55], %64 {strides = array<i32>} : memref<384x128xf32, #tpu.memory_space<vmem>>, vector<384x128xf32>,
    %c48_i32 = arith.constant 48 : i32
    %66 = arith.addi %1, %c48_i32 : i32
    %67 = tpu.assume_multiple %66, 8 : i32
    %c0_56 = arith.constant 0 : index
    %68 = arith.index_cast %67 : i32 to index
    %c0_57 = arith.constant 0 : index
    %69 = vector.load %arg2[%c0_56, %68, %c0_57] : memref<1x456x128xf32, #tpu.memory_space<vmem>>, vector<1x384x128xf32>
    %70 = vector.shape_cast %69 : vector<1x384x128xf32> to vector<384x128xf32>
    %c0_58 = arith.constant 0 : index
    %c0_59 = arith.constant 0 : index
    %71 = vector.load %arg6[%c0_58, %c0_59] : memref<384x128xf32, #tpu.memory_space<vmem>>, vector<384x128xf32>
    %c6 = arith.constant 6 : index
    %c0_60 = arith.constant 0 : index
    %c0_61 = arith.constant 0 : index
    %72 = vector.load %arg3[%c6, %c0_60, %c0_61] : memref<9x128x128xf32, #tpu.memory_space<vmem>>, vector<1x128x128xf32>
    %73 = vector.shape_cast %72 : vector<1x128x128xf32> to vector<128x128xf32>
    %cst_62 = arith.constant dense<0.000000e+00> : vector<384x128xf32>
    %74 = tpu.matmul %70, %73, %cst_62 {dimension_numbers = #tpu.dot_dimension_numbers<[1], [0], [0], [1], [0, 0, 1, 1], [], []>} : vector<384x128xf32>, vector<128x128xf32>, vector<384x128xf32> -> vector<384x128xf32>
    %75 = arith.addf %71, %74 : vector<384x128xf32>
    %c0_63 = arith.constant 0 : index
    %c0_64 = arith.constant 0 : index
    %76 = vector.load %arg6[%c0_63, %c0_64] : memref<384x128xf32, #tpu.memory_space<vmem>>, vector<384x128xf32>
    tpu.vector_store %arg6[%c0_63, %c0_64], %75 {strides = array<i32>} : memref<384x128xf32, #tpu.memory_space<vmem>>, vector<384x128xf32>,
    %c49_i32 = arith.constant 49 : i32
    %77 = arith.addi %1, %c49_i32 : i32
    %c0_65 = arith.constant 0 : index
    %78 = arith.index_cast %77 : i32 to index
    %c0_66 = arith.constant 0 : index
    %79 = vector.load %arg2[%c0_65, %78, %c0_66] : memref<1x456x128xf32, #tpu.memory_space<vmem>>, vector<1x384x128xf32>
    %80 = vector.shape_cast %79 : vector<1x384x128xf32> to vector<384x128xf32>
    %c0_67 = arith.constant 0 : index
    %c0_68 = arith.constant 0 : index
    %81 = vector.load %arg6[%c0_67, %c0_68] : memref<384x128xf32, #tpu.memory_space<vmem>>, vector<384x128xf32>
    %c7 = arith.constant 7 : index
    %c0_69 = arith.constant 0 : index
    %c0_70 = arith.constant 0 : index
    %82 = vector.load %arg3[%c7, %c0_69, %c0_70] : memref<9x128x128xf32, #tpu.memory_space<vmem>>, vector<1x128x128xf32>
    %83 = vector.shape_cast %82 : vector<1x128x128xf32> to vector<128x128xf32>
    %cst_71 = arith.constant dense<0.000000e+00> : vector<384x128xf32>
    %84 = tpu.matmul %80, %83, %cst_71 {dimension_numbers = #tpu.dot_dimension_numbers<[1], [0], [0], [1], [0, 0, 1, 1], [], []>} : vector<384x128xf32>, vector<128x128xf32>, vector<384x128xf32> -> vector<384x128xf32>
    %85 = arith.addf %81, %84 : vector<384x128xf32>
    %c0_72 = arith.constant 0 : index
    %c0_73 = arith.constant 0 : index
    %86 = vector.load %arg6[%c0_72, %c0_73] : memref<384x128xf32, #tpu.memory_space<vmem>>, vector<384x128xf32>
    tpu.vector_store %arg6[%c0_72, %c0_73], %85 {strides = array<i32>} : memref<384x128xf32, #tpu.memory_space<vmem>>, vector<384x128xf32>,
    %c50_i32 = arith.constant 50 : i32
    %87 = arith.addi %1, %c50_i32 : i32
    %c0_74 = arith.constant 0 : index
    %88 = arith.index_cast %87 : i32 to index
    %c0_75 = arith.constant 0 : index
    %89 = vector.load %arg2[%c0_74, %88, %c0_75] : memref<1x456x128xf32, #tpu.memory_space<vmem>>, vector<1x384x128xf32>
    %90 = vector.shape_cast %89 : vector<1x384x128xf32> to vector<384x128xf32>
    %c0_76 = arith.constant 0 : index
    %c0_77 = arith.constant 0 : index
    %91 = vector.load %arg6[%c0_76, %c0_77] : memref<384x128xf32, #tpu.memory_space<vmem>>, vector<384x128xf32>
    %c8 = arith.constant 8 : index
    %c0_78 = arith.constant 0 : index
    %c0_79 = arith.constant 0 : index
    %92 = vector.load %arg3[%c8, %c0_78, %c0_79] : memref<9x128x128xf32, #tpu.memory_space<vmem>>, vector<1x128x128xf32>
    %93 = vector.shape_cast %92 : vector<1x128x128xf32> to vector<128x128xf32>
    %cst_80 = arith.constant dense<0.000000e+00> : vector<384x128xf32>
    %94 = tpu.matmul %90, %93, %cst_80 {dimension_numbers = #tpu.dot_dimension_numbers<[1], [0], [0], [1], [0, 0, 1, 1], [], []>} : vector<384x128xf32>, vector<128x128xf32>, vector<384x128xf32> -> vector<384x128xf32>
    %95 = arith.addf %91, %94 : vector<384x128xf32>
    %c0_81 = arith.constant 0 : index
    %c0_82 = arith.constant 0 : index
    %96 = vector.load %arg6[%c0_81, %c0_82] : memref<384x128xf32, #tpu.memory_space<vmem>>, vector<384x128xf32>
    tpu.vector_store %arg6[%c0_81, %c0_82], %95 {strides = array<i32>} : memref<384x128xf32, #tpu.memory_space<vmem>>, vector<384x128xf32>,
    %c0_83 = arith.constant 0 : index
    %c0_84 = arith.constant 0 : index
    %97 = vector.load %arg6[%c0_83, %c0_84] : memref<384x128xf32, #tpu.memory_space<vmem>>, vector<384x128xf32>
    %c0_85 = arith.constant 0 : index
    %c0_86 = arith.constant 0 : index
    %98 = vector.load %arg4[%c0_85, %c0_86] : memref<1x128xf32, #tpu.memory_space<vmem>>, vector<1x128xf32>
    %99 = vector.broadcast %98 : vector<1x128xf32> to vector<384x128xf32>
    %100 = arith.addf %97, %99 : vector<384x128xf32>
    %cst_87 = arith.constant 0.000000e+00 : f32
    %101 = vector.broadcast %cst_87 : f32 to vector<384x128xf32>
    %102 = arith.maximumf %100, %101 : vector<384x128xf32>
    %c0_88 = arith.constant 0 : index
    %c0_89 = arith.constant 0 : index
    %c0_90 = arith.constant 0 : index
    %103 = vector.load %arg5[%c0_88, %c0_89, %c0_90] : memref<1x384x128xf32, #tpu.memory_space<vmem>>, vector<1x384x128xf32>
    %104 = vector.shape_cast %103 : vector<1x384x128xf32> to vector<384x128xf32>
    %105 = vector.shape_cast %102 : vector<384x128xf32> to vector<1x384x128xf32>
    tpu.vector_store %arg5[%c0_88, %c0_89, %c0_90], %105 {strides = array<i32>} : memref<1x384x128xf32, #tpu.memory_space<vmem>>, vector<1x384x128xf32>,
    return
  }
  func.func @transform_0(%arg0: i32, %arg1: i32) -> (i32, i32, i32) {
    %c0_i32 = arith.constant 0 : i32
    %c0_i32_0 = arith.constant 0 : i32
    %c0_i32_1 = arith.constant 0 : i32
    return %arg0, %c0_i32, %c0_i32_0 : i32, i32, i32
  }
  func.func @transform_1(%arg0: i32, %arg1: i32) -> (i32, i32, i32) {
    %c0_i32 = arith.constant 0 : i32
    %c0_i32_0 = arith.constant 0 : i32
    %c0_i32_1 = arith.constant 0 : i32
    %c0_i32_2 = arith.constant 0 : i32
    return %c0_i32, %c0_i32_0, %c0_i32_1 : i32, i32, i32
  }
  func.func @transform_2(%arg0: i32, %arg1: i32) -> (i32, i32) {
    %c0_i32 = arith.constant 0 : i32
    %c0_i32_0 = arith.constant 0 : i32
    %c0_i32_1 = arith.constant 0 : i32
    return %c0_i32, %c0_i32_0 : i32, i32
  }
  func.func @transform_3(%arg0: i32, %arg1: i32) -> (i32, i32, i32) {
    %c0_i32 = arith.constant 0 : i32
    %c0_i32_0 = arith.constant 0 : i32
    return %arg0, %arg1, %c0_i32 : i32, i32, i32
  }
}

</mosaic_0001>

<bundles_post_ra>
// kernel: tpu_custom_call.1
= control target key start
LH: loop header
LB: loop body
LE: loop exit
PB: predicated region body
PF: predicated region fallthrough
CT: control target
= control target key end

     0   :  { %8 = vsyncpa [#allocation4], 0  ;;  %s9160_s0 = inlined_call_operand.hbm [shape: f32[2,456,128], index: 0, kind: input, shape index: {}]   ;;  %s9161_s1 = inlined_call_operand.hbm [shape: f32[9,128,128], index: 1, kind: input, shape index: {}]   ;;  %s9162_s2 = inlined_call_operand.vmem [shape: f32[1,128], index: 2, kind: input, shape index: {}]   ;;  %s9163_s3 = inlined_call_operand.hbm [shape: f32[2,384,128], index: 3, kind: output, shape index: {}]  }
   0x1   :  { %10 = vsyncpa [#allocation4 + $0x1], 0 }
   0x2   :  { %11 = vsyncpa [#allocation7], 0 }
   0x3   :  { %12 = vsyncpa [#allocation5], 0 }
   0x4   :  { %14 = vsyncpa [#allocation5 + $0x1], 0  ;;  %s7434_s12 = smov 0   ;;  %s7436_s13 = smov 0  }
   0x5   :  { %s7438_s14 = smov 0   ;;  %s7440_s15 = smov 0  }
   0x6   :  { %s7442_s16 = smov 0   ;;  %s7444_s17 = smov 0  }
   0x7 LB: > { %s5245_s18 = sadd.s32 4294967295, %s7405_s17   ;;  %s5246_s19 = sadd.s32 4294967294, %s7405_s17   ;;  %s7405_s17 = sphi %s7444_s17, %s20_s17   ;;  %s7401_s16 = sphi %s7442_s16, %s9384_s16   ;;  %s7397_s15 = sphi %s7440_s15, %s9383_s15   ;;  %s7393_s14 = sphi %s7438_s14, %s9382_s14   ;;  %s7389_s13 = sphi %s7436_s13, %s9381_s13   ;;  %s7385_s12 = sphi %s7434_s12, %s9380_s12  }
   0x8   : > { %p52_p0 = scmp.ne.s32.totalorder %s7389_s13, %s7385_s12  ;;  %p7468_p1 = scmp.eq.s32.totalorder %s5245_s18, 0 }
   0x9   : > { %p7472_p2 = scmp.eq.s32.totalorder %s5245_s18, 1  ;;  %p126_p3 = scmp.eq.s32.totalorder %s5246_s19, 1 }
   0xa   : > { %p7478_p4 = por %p7468_p1, %p52_p0  ;;  %p5247_p5 = scmp.ge.s32.totalorder %s7405_s17, 1 }
   0xb   : > { %p7483_p6 = por %p126_p3, %p52_p0  ;;  %p133_p7 = scmp.lt.s32.totalorder %s7405_s17, 3 }
   0xc   : > { %s9208_s22 = scalar_select %p7478_p4, 1, 0 }
   0xd   : > { %s9209_s23 = scalar_select %p7483_p6, 1, 0 }
   0xe   : > { %p7488_p8 = pnand %p5247_p5, %p133_p7  ;;  %s7407_s25 = smov [#allocation6]  }
   0xf   : > { %s145_s26 = sshll.u32 %s7407_s25, 4  ;;  %p5249_p10 = scmp.ge.s32.totalorder %s7405_s17, 2  ;;  %s146_s26 = int_to_ptr.vmem [resolvable:$true] %s145_s26 }
  0x10   : > { %p7198_p9 = pneg %p7488_p8  ;;  %s32_s28 = sadd.s32 1, %s7401_s16 }
  0x11   : > { %s7278_s29 = scalar_lea.vmem %s146_s26, 18432  ;;  %p7286_p5 = scmp.lt.s32.totalorder %s146_s26, %s146_s26 }
  0x12   : > { %p7497_p11 = pnand %p7198_p9, %p7468_p1  ;;  %p7279_p13 = scmp.ne.s32.totalorder %s146_s26, %s7278_s29 }
  0x13   : > { %p7287_p7 = scmp.lt.s32.totalorder %s7278_s29, %s7278_s29 }
  0x14   : > { %p7269_p12 = pneg %p7497_p11 }
  0x15   : > { %p7288_p6 = por %p7287_p7, %p7286_p5 }
  0x16   : > { %p7281_p0 = pnand %p7279_p13, %p7269_p12 }
  0x18   : > { %p7282_p3 = pneg %p7281_p0 }
  0x1a   : > { %p7289_p4 = pnand %p7288_p6, %p7282_p3 }
  0x1c   : > { %7292 = shalt.err (!%p7289_p4)
}
  0x1d   : > { %s7408_s30 = smov 128   ;;  %s7409_s4 = smov 8  }
  0x1e   : > { %7201 = dma.hbm_to_vmem [thread:$0]  (!%p7497_p11), %s9161_s1, 18432, %s146_s26, [#allocation7], %s7408_s30, %s7408_s30, %s7409_s4  }
  0x1f   : > { %p34_p4 = scmp.ge.s32.totalorder %s32_s28, 2  ;;  %s39_s7 = sadd.s32 1, %s7393_s14 }
  0x20   : > { %p46_p6 = scmp.ne.s32.totalorder %s7393_s14, %s7389_s13  ;;  %p47_p9 = scmp.eq.s32.totalorder %s7405_s17, 0 }
  0x21   : > { %s9386_s28 = smov (%p34_p4, %s32_s28), 0  ;;  %p7211_p0 = scmp.lt.s32.totalorder %s7405_s17, 2 }
  0x22   : > { %p48_p12 = por %p47_p9, %p46_p6  ;;  %p7520_p13 = por %p7472_p2, %p46_p6 }
  0x23   : > { %s36_s9 = ssub.s32 %s7401_s16, %s9386_s28  ;;  %s162_s10 = sand.u32 1, %s7393_s14  }
  0x24   : > { %p37_p3 = scmp.eq.s32.totalorder %s36_s9, 0  ;;  %s7185_s11 = smul.u32 456, %s162_s10 }
  0x25   : > { %s7186_s19 = smul.u32 7296, %s7401_s16  ;;  %p7532_p11 = pnand %p7211_p0, %p48_p12 }
  0x26   : > { %s7529_s18 = scalar_select %p37_p3, %s7393_s14, %s39_s7  }
  0x27   : > { %s166_s25 = scalar_lea.vmem [#allocation3], %s7185_s11  ;;  %s172_s5 = scalar_lea.hbm %s9160_s0, %s7186_s19 }
  0x28   : > { %s173_s26 = sshll.u32 %s166_s25, 4  ;;  %s163_s6 = scalar_lea.sflag [#allocation4], %s162_s10  ;;  %s174_s26 = int_to_ptr.vmem [resolvable:$true] %s173_s26 }
  0x29   : > { %p7295_p2 = pneg %p7532_p11  ;;  %s7306_s9 = scalar_lea.vmem %s174_s26, 7296 }
  0x2a   : > { %p7307_p5 = scmp.ne.s32.totalorder %s174_s26, %s7306_s9  ;;  %s7410_s7 = smov [#allocation3]  }
  0x2b   : > { %s7311_s11 = sshll.u32 %s7410_s7, 4  ;;  %s7312_s11 = int_to_ptr.vmem [resolvable:$false] %s7311_s11 }
  0x2c   : > { %p7309_p7 = pnand %p7307_p5, %p7295_p2  ;;  %s7313_s25 = scalar_lea.vmem %s7312_s11, 14592 }
  0x2d   : > { %p7314_p6 = scmp.lt.s32.totalorder %s174_s26, %s7312_s11  ;;  %p7315_p9 = scmp.lt.s32.totalorder %s7313_s25, %s7306_s9 }
  0x2e   : > { %p7310_p4 = pneg %p7309_p7 }
  0x2f   : > { %p7316_p12 = por %p7315_p9, %p7314_p6 }
  0x31   : > { %p7317_p0 = pnand %p7316_p12, %p7310_p4 }
  0x33   : > { %7320 = shalt.err (!%p7317_p0)
}
  0x34   : > { %7205 = dma.hbm_to_vmem [thread:$0]  (!%p7532_p11), %s172_s5, 7296, %s174_s26, %s163_s6, %s7408_s30, %s7408_s30, %s7409_s4  }
  0x35   : > { %185 = sbr.rel (%p7488_p8) target bundleno = 751 (0x2ef), region = 32 }
  0x3a   : > { %s7549_s10 = sand.u32 1, %s7389_s13   ;;  %p9214_p3 = scmp.ne.s32.totalorder %s9208_s22, 0 }
  0x3b   : > { %s7187_s19 = smul.u32 456, %s7549_s10  ;;  %s188_s29 = scalar_lea.sflag [#allocation4], %s7549_s10 }
  0x3d   : > { %s7553_s21 = scalar_lea.vmem [#allocation3], %s7187_s19 }
  0x3e   : > { %7372 = dma.done.wait (%p9214_p3), %s188_s29, 7296  }
  0x3f   : > { %7374 = vsyncadd (%p9214_p3), %s188_s29, 4294960000 }
  0x40   : > { %7376 = dma.done.wait (%p7468_p1), [#allocation7], 18432  }
  0x41   : > { %7378 = vsyncadd (%p7468_p1), [#allocation7], 4294948864  ;;  %v380_v0 = vld [vmem:[#allocation6 + $0x78] sm:$0xff]  ;;  %v379_v1 = vld [vmem:[#allocation6 + $0x70] sm:$0xff]  ;;  %s7188_s20 = smul.u32 384, %s7549_s10  ;;  %s7411_s7 = smov [#allocation8]  }
  0x42   : > { %7153 = vmatprep.subr.mxu1 %v380_v0  ;;  %6217 = vmatprep.subr.mxu0 %v380_v0  ;;  %v378_v2 = vld [vmem:[#allocation6 + $0x68] sm:$0xff]  ;;  %v377_v3 = vld [vmem:[#allocation6 + $0x60] sm:$0xff]  ;;  %v376_v4 = vld [vmem:[#allocation6 + $0x58] sm:$0xff]  ;;  %s7189_s4 = smul.u32 6144, %s7397_s15  ;;  %s5110_s15 = scalar_lea.sflag [#allocation5], %s7549_s10 }
  0x43   : > { %7169 = vmatpush3.msra.mxu1 %v380_v0  ;;  %6218 = vmatpush3.msra.mxu0 %v380_v0  ;;  %v375_v5 = vld [vmem:[#allocation6 + $0x50] sm:$0xff]  ;;  %v374_v6 = vld [vmem:[#allocation6 + $0x48] sm:$0xff]  ;;  %v373_v7 = vld [vmem:[#allocation6 + $0x40] sm:$0xff]  ;;  %s8965_s30 = scalar_lea.vmem [#allocation8], %s7188_s20  ;;  %s7325_s11 = sshll.u32 %s7411_s7, 4  ;;  %s7326_s11 = int_to_ptr.vmem [resolvable:$false] %s7325_s11 }
  0x44   : > { %7154 = vmatprep.subr.mxu1 %v379_v1  ;;  %6219 = vmatprep.subr.mxu0 %v379_v1  ;;  %v372_v8 = vld [vmem:[#allocation6 + $0x38] sm:$0xff]  ;;  %v371_v9 = vld [vmem:[#allocation6 + $0x30] sm:$0xff]  ;;  %v370_v10 = vld [vmem:[#allocation6 + $0x28] sm:$0xff]  ;;  %s5125_s26 = sshll.u32 %s8965_s30, 4  ;;  %s9108_s6 = scalar_lea.hbm %s9163_s3, %s7189_s4  ;;  %s9111_s26 = int_to_ptr.vmem [resolvable:$true] %s5125_s26 }
  0x45   : > { %7170 = vmatpush3.msra.mxu1 %v379_v1  ;;  %6220 = vmatpush3.msra.mxu0 %v379_v1  ;;  %v369_v11 = vld [vmem:[#allocation6 + $0x20] sm:$0xff]  ;;  %v368_v12 = vld [vmem:[#allocation6 + $0x18] sm:$0xff]  ;;  %v367_v13 = vld [vmem:[#allocation6 + $0x10] sm:$0xff]  ;;  %s7321_s9 = scalar_lea.vmem %s9111_s26, 6144  ;;  %s7327_s25 = scalar_lea.vmem %s7326_s11, 12288 }
  0x46   : > { %7155 = vmatprep.subr.mxu1 %v378_v2  ;;  %6221 = vmatprep.subr.mxu0 %v378_v2  ;;  %v366_v14 = vld [vmem:[#allocation6 + $0x8] sm:$0xff]  ;;  %v365_v15 = vld [vmem:[#allocation6] sm:$0xff]  ;;  %v293_v16 = vld [vmem:[%s7553_s21 + $0xc0] sm:$0xff]  ;;  %p7322_p1 = scmp.ne.s32.totalorder %s9111_s26, %s7321_s9  ;;  %p7328_p2 = scmp.lt.s32.totalorder %s9111_s26, %s7326_s11 }
  0x47   : > { %7171 = vmatpush3.msra.mxu1 %v378_v2  ;;  %6222 = vmatpush3.msra.mxu0 %v378_v2  ;;  %v269_v17 = vld [vmem:[%s7553_s21] sm:$0xff]  ;;  %v294_v18 = vld [vmem:[%s7553_s21 + $0xc8] sm:$0xff]  ;;  %v295_v22 = vld [vmem:[%s7553_s21 + $0xd0] sm:$0xff]  ;;  %p7329_p5 = scmp.lt.s32.totalorder %s7327_s25, %s7321_s9 }
  0x48   : > { %7156 = vmatprep.subr.mxu1 %v377_v3  ;;  %6223 = vmatprep.subr.mxu0 %v377_v3  ;;  %v896_v19 = vld [vmem:[#allocation6 + $0xf8] sm:$0xff]  ;;  %v895_v23 = vld [vmem:[#allocation6 + $0xf0] sm:$0xff]  ;;  %v271_v24 = vld [vmem:[%s7553_s21 + $0x10] sm:$0xff]  ;;  %p7323_p8 = pnand %p7322_p1, %p7520_p13 }
  0x49   : > { %7172 = vmatpush3.msra.mxu1 %v377_v3  ;;  %6224 = vmatpush3.msra.mxu0 %v377_v3  ;;  %v270_v20 = vld [vmem:[%s7553_s21 + $0x8] sm:$0xff]  ;;  %v296_v25 = vld [vmem:[%s7553_s21 + $0xd8] sm:$0xff]  ;;  %v297_v29 = vld [vmem:[%s7553_s21 + $0xe0] sm:$0xff]  ;;  %p7330_p7 = por %p7329_p5, %p7328_p2 }
  0x4a   : > { %7157 = vmatprep.subr.mxu1 %v376_v4  ;;  %6225 = vmatprep.subr.mxu0 %v376_v4  ;;  %v1412_v21 = vld [vmem:[#allocation6 + $0x178] sm:$0xff]  ;;  %v7571_v26 = vld [vmem:[%s7553_s21 + $0x18] sm:$0xff]  ;;  %v893_v34 = vld [vmem:[#allocation6 + $0xe0] sm:$0xff]  ;;  %p7324_p11 = pneg %p7323_p8 }
  0x4b   : > { %7173 = vmatpush3.msra.mxu1 %v376_v4  ;;  %6226 = vmatpush3.msra.mxu0 %v376_v4  ;;  %v1411_v27 = vld [vmem:[#allocation6 + $0x170] sm:$0xff]  ;;  %v894_v28 = vld [vmem:[#allocation6 + $0xe8] sm:$0xff]  ;;  %v298_v31 = vld [vmem:[%s7553_s21 + $0xe8] sm:$0xff] }
  0x4c   : > { %7158 = vmatprep.subr.mxu1 %v375_v5  ;;  %6227 = vmatprep.subr.mxu0 %v375_v5  ;;  %v7576_v30 = vld [vmem:[%s7553_s21 + $0x20] sm:$0xff]  ;;  %v1410_v32 = vld [vmem:[#allocation6 + $0x168] sm:$0xff]  ;;  %v7580_v33 = vld [vmem:[%s7553_s21 + $0x28] sm:$0xff]  ;;  %p7331_p4 = pnand %p7330_p7, %p7324_p11 }
  0x4d   : > { %7174 = vmatpush3.msra.mxu1 %v375_v5  ;;  %6228 = vmatpush3.msra.mxu0 %v375_v5  ;;  %v299_v35 = vld [vmem:[%s7553_s21 + $0xf0] sm:$0xff]  ;;  %v300_v38 = vld [vmem:[%s7553_s21 + $0xf8] sm:$0xff]  ;;  %v892_v39 = vld [vmem:[#allocation6 + $0xd8] sm:$0xff] }
  0x4e   : > { %7159 = vmatprep.subr.mxu1 %v374_v6  ;;  %6229 = vmatprep.subr.mxu0 %v374_v6  ;;  %v1409_v36 = vld [vmem:[#allocation6 + $0x160] sm:$0xff]  ;;  %v7590_v40 = vld [vmem:[%s7553_s21 + $0x38] sm:$0xff]  ;;  %v1408_v41 = vld [vmem:[#allocation6 + $0x158] sm:$0xff] }
  0x4f   : > { %7175 = vmatpush3.msra.mxu1 %v374_v6  ;;  %6230 = vmatpush3.msra.mxu0 %v374_v6  ;;  %v7586_v37 = vld [vmem:[%s7553_s21 + $0x30] sm:$0xff]  ;;  %v301_v42 = vld [vmem:[%s7553_s21 + $0x100] sm:$0xff]  ;;  %v302_v45 = vld [vmem:[%s7553_s21 + $0x108] sm:$0xff] }
  0x50   : > { %7160 = vmatprep.subr.mxu1 %v373_v7  ;;  %6231 = vmatprep.subr.mxu0 %v373_v7  ;;  %v891_v43 = vld [vmem:[#allocation6 + $0xd0] sm:$0xff]  ;;  %v7600_v46 = vld [vmem:[%s7553_s21 + $0x48] sm:$0xff]  ;;  %v890_v48 = vld [vmem:[#allocation6 + $0xc8] sm:$0xff] }
  0x51   : > { %7176 = vmatpush3.msra.mxu1 %v373_v7  ;;  %6232 = vmatpush3.msra.mxu0 %v373_v7  ;;  %v7596_v44 = vld [vmem:[%s7553_s21 + $0x40] sm:$0xff]  ;;  %v303_v49 = vld [vmem:[%s7553_s21 + $0x110] sm:$0xff]  ;;  %v304_v51 = vld [vmem:[%s7553_s21 + $0x118] sm:$0xff] }
  0x52   : > { %7161 = vmatprep.subr.mxu1 %v372_v8  ;;  %6233 = vmatprep.subr.mxu0 %v372_v8  ;;  %v1407_v47 = vld [vmem:[#allocation6 + $0x150] sm:$0xff]  ;;  %v7606_v50 = vld [vmem:[%s7553_s21 + $0x50] sm:$0xff]  ;;  %v306_v58 = vld [vmem:[%s7553_s21 + $0x128] sm:$0xff] }
  0x53   : > { %7177 = vmatpush3.msra.mxu1 %v372_v8  ;;  %6234 = vmatpush3.msra.mxu0 %v372_v8  ;;  %v1406_v52 = vld [vmem:[#allocation6 + $0x148] sm:$0xff]  ;;  %v889_v54 = vld [vmem:[#allocation6 + $0xc0] sm:$0xff]  ;;  %v305_v55 = vld [vmem:[%s7553_s21 + $0x120] sm:$0xff] }
  0x54   : > { %7162 = vmatprep.subr.mxu1 %v371_v9  ;;  %6235 = vmatprep.subr.mxu0 %v371_v9  ;;  %v7610_v53 = vld [vmem:[%s7553_s21 + $0x58] sm:$0xff]  ;;  %v1405_v56 = vld [vmem:[#allocation6 + $0x140] sm:$0xff]  ;;  %v7616_v57 = vld [vmem:[%s7553_s21 + $0x60] sm:$0xff] }
  0x55   : > { %7178 = vmatpush3.msra.mxu1 %v371_v9  ;;  %6236 = vmatpush3.msra.mxu0 %v371_v9  ;;  %v888_v59 = vld [vmem:[#allocation6 + $0xb8] sm:$0xff]  ;;  %v307_v62 = vld [vmem:[%s7553_s21 + $0x130] sm:$0xff]  ;;  %v887_v63 = vld [vmem:[#allocation6 + $0xb0] sm:$0xff] }
  0x56   : > { %7163 = vmatprep.subr.mxu1 %v370_v10  ;;  %6237 = vmatprep.subr.mxu0 %v370_v10  ;;  %v7620_v60 = vld [vmem:[%s7553_s21 + $0x68] sm:$0xff]  ;;  %v7626_v0 = vld [vmem:[%s7553_s21 + $0x70] sm:$0xff]  ;;  %v308_v1 = vld [vmem:[%s7553_s21 + $0x138] sm:$0xff] }
  0x57   : > { %7179 = vmatpush3.msra.mxu1 %v370_v10  ;;  %6238 = vmatpush3.msra.mxu0 %v370_v10  ;;  %v1404_v61 = vld [vmem:[#allocation6 + $0x138] sm:$0xff]  ;;  %v7630_v2 = vld [vmem:[%s7553_s21 + $0x78] sm:$0xff]  ;;  %v885_v10 = vld [vmem:[#allocation6 + $0xa0] sm:$0xff] }
  0x58   : > { %7164 = vmatprep.subr.mxu1 %v369_v11  ;;  %6239 = vmatprep.subr.mxu0 %v369_v11  ;;  %v1403_v3 = vld [vmem:[#allocation6 + $0x130] sm:$0xff]  ;;  %v886_v4 = vld [vmem:[#allocation6 + $0xa8] sm:$0xff]  ;;  %v310_v7 = vld [vmem:[%s7553_s21 + $0x148] sm:$0xff] }
  0x59   : > { %7180 = vmatpush3.msra.mxu1 %v369_v11  ;;  %6240 = vmatpush3.msra.mxu0 %v369_v11  ;;  %v309_v5 = vld [vmem:[%s7553_s21 + $0x140] sm:$0xff]  ;;  %v1402_v8 = vld [vmem:[#allocation6 + $0x128] sm:$0xff]  ;;  %v7640_v9 = vld [vmem:[%s7553_s21 + $0x88] sm:$0xff] }
  0x5a   : > { %7165 = vmatprep.subr.mxu1 %v368_v12  ;;  %6241 = vmatprep.subr.mxu0 %v368_v12  ;;  %v7636_v6 = vld [vmem:[%s7553_s21 + $0x80] sm:$0xff]  ;;  %v311_v11 = vld [vmem:[%s7553_s21 + $0x150] sm:$0xff] }
  0x5b   : > { %7181 = vmatpush3.msra.mxu1 %v368_v12  ;;  %6242 = vmatpush3.msra.mxu0 %v368_v12  ;;  %v1401_v12 = vld [vmem:[#allocation6 + $0x120] sm:$0xff] }
  0x5c   : > { %7166 = vmatprep.subr.mxu1 %v367_v13  ;;  %6243 = vmatprep.subr.mxu0 %v367_v13 }
  0x5d   : > { %7182 = vmatpush3.msra.mxu1 %v367_v13  ;;  %6244 = vmatpush3.msra.mxu0 %v367_v13  ;;  %v7646_v13 = vld [vmem:[%s7553_s21 + $0x90] sm:$0xff] }
  0x5e   : > { %7167 = vmatprep.subr.mxu1 %v366_v14  ;;  %6245 = vmatprep.subr.mxu0 %v366_v14 }
  0x5f   : > { %7183 = vmatpush3.msra.mxu1 %v366_v14  ;;  %6246 = vmatpush3.msra.mxu0 %v366_v14  ;;  %v312_v14 = vld [vmem:[%s7553_s21 + $0x158] sm:$0xff] }
  0x60   : > { %7168 = vmatprep.subr.mxu1 %v365_v15  ;;  %6247 = vmatprep.subr.mxu0 %v365_v15 }
  0x61   : > { %7184 = vmatpush3.msra.mxu1 %v365_v15  ;;  %6285 = vmatprep.mubr.f32.mxu1 %v293_v16  ;;  %v7650_v16 = vld [vmem:[%s7553_s21 + $0x98] sm:$0xff] }
  0x62   : > { %6248 = vmatpush3.msra.mxu0 %v365_v15  ;;  %6249 = vmatprep.mubr.f32.mxu0 %v269_v17  ;;  %v884_v15 = vld [vmem:[#allocation6 + $0x98] sm:$0xff] }
  0x63   : > { %6286 = vmatmul.mubr.f32.vlgmr.msra.gmra.mxu1 %v294_v18  ;;  %6321 = vmatprep.subr.mxu1 %v896_v19  ;;  %v1400_v17 = vld [vmem:[#allocation6 + $0x118] sm:$0xff] }
  0x64   : > { %6250 = vmatmul.mubr.f32.vlgmr.msra.gmra.mxu0 %v270_v20  ;;  %6322 = vmatpush3.msra.mxu1 %v896_v19  ;;  %v313_v18 = vld [vmem:[%s7553_s21 + $0x160] sm:$0xff] }
  0x65   : > { %6425 = vmatprep.subr.mxu0 %v1412_v21  ;;  %6288 = vmatprep.mubr.f32.mxu1 %v295_v22  ;;  %v883_v19 = vld [vmem:[#allocation6 + $0x90] sm:$0xff]  ;;  %v7660_v22 = vld [vmem:[%s7553_s21 + $0xa8] sm:$0xff] }
  0x66   : > { %6323 = vmatprep.subr.mxu1 %v895_v23  ;;  %6426 = vmatpush3.msra.mxu0 %v1412_v21  ;;  %v7656_v20 = vld [vmem:[%s7553_s21 + $0xa0] sm:$0xff]  ;;  %v314_v21 = vld [vmem:[%s7553_s21 + $0x168] sm:$0xff] }
  0x67   : > { %6252 = vmatprep.mubr.f32.mxu0 %v271_v24  ;;  %6289 = vmatmul.mubr.f32.gmra.mxu1 %v296_v25  ;;  %v882_v24 = vld [vmem:[#allocation6 + $0x88] sm:$0xff] }
  0x68   : > { %6324 = vmatpush3.msra.mxu1 %v895_v23  ;;  %6253 = vmatmul.mubr.f32.gmra.mxu0 %v7571_v26  ;;  %v1399_v23 = vld [vmem:[#allocation6 + $0x110] sm:$0xff]  ;;  %v315_v25 = vld [vmem:[%s7553_s21 + $0x170] sm:$0xff] }
  0x69   : > { %6427 = vmatprep.subr.mxu0 %v1411_v27  ;;  %6325 = vmatprep.subr.mxu1 %v894_v28 }
  0x6a   : > { %6428 = vmatpush3.msra.mxu0 %v1411_v27  ;;  %6291 = vmatprep.mubr.f32.mxu1 %v297_v29  ;;  %v7666_v27 = vld [vmem:[%s7553_s21 + $0xb0] sm:$0xff] }
  0x6b   : > { %6326 = vmatpush3.msra.mxu1 %v894_v28  ;;  %6255 = vmatprep.mubr.f32.mxu0 %v7576_v30  ;;  %v316_v28 = vld [vmem:[%s7553_s21 + $0x178] sm:$0xff] }
  0x6c   : > { %6292 = vmatmul.mubr.f32.gmra.mxu1 %v298_v31  ;;  %6429 = vmatprep.subr.mxu0 %v1410_v32  ;;  %v1398_v29 = vld [vmem:[#allocation6 + $0x108] sm:$0xff] }
  0x6d   : > { %6256 = vmatmul.mubr.f32.gmra.mxu0 %v7580_v33  ;;  %6327 = vmatprep.subr.mxu1 %v893_v34  ;;  %v7670_v31 = vld [vmem:[%s7553_s21 + $0xb8] sm:$0xff] }
  0x6e   : > { %6430 = vmatpush3.msra.mxu0 %v1410_v32  ;;  %6328 = vmatpush3.msra.mxu1 %v893_v34  ;;  %v881_v32 = vld [vmem:[#allocation6 + $0x80] sm:$0xff] }
  0x6f   : > { %6294 = vmatprep.mubr.f32.mxu1 %v299_v35  ;;  %6431 = vmatprep.subr.mxu0 %v1409_v36  ;;  %v5253_v34 = vld [vmem:[%s7553_s21 + $0x1] sm:$0xff] }
  0x70   : > { %6258 = vmatprep.mubr.f32.mxu0 %v7586_v37  ;;  %6295 = vmatmul.mubr.f32.gmra.mxu1 %v300_v38  ;;  %v1397_v35 = vld [vmem:[#allocation6 + $0x100] sm:$0xff] }
  0x71   : > { %6329 = vmatprep.subr.mxu1 %v892_v39  ;;  %6432 = vmatpush3.msra.mxu0 %v1409_v36  ;;  %v5254_v36 = vld [vmem:[%s7553_s21 + $0x9] sm:$0xff] }
  0x72   : > { %6259 = vmatmul.mubr.f32.gmra.mxu0 %v7590_v40  ;;  %6330 = vmatpush3.msra.mxu1 %v892_v39  ;;  %v5301_v38 = vld [vmem:[%s7553_s21 + $0x2] sm:$0xff] }
  0x73   : > { %6433 = vmatprep.subr.mxu0 %v1408_v41  ;;  %6297 = vmatprep.mubr.f32.mxu1 %v301_v42  ;;  %v1928_v39 = vld [vmem:[#allocation6 + $0x1f8] sm:$0xff] }
  0x74   : > { %6331 = vmatprep.subr.mxu1 %v891_v43  ;;  %6434 = vmatpush3.msra.mxu0 %v1408_v41  ;;  %v5302_v41 = vld [vmem:[%s7553_s21 + $0xa] sm:$0xff] }
  0x75   : > { %6261 = vmatprep.mubr.f32.mxu0 %v7596_v44  ;;  %6298 = vmatmul.mubr.f32.gmra.mxu1 %v302_v45  ;;  %v2444_v42 = vld [vmem:[#allocation6 + $0x278] sm:$0xff] }
  0x76   : > { %6332 = vmatpush3.msra.mxu1 %v891_v43  ;;  %6262 = vmatmul.mubr.f32.gmra.mxu0 %v7600_v46  ;;  %v5255_v43 = vld [vmem:[%s7553_s21 + $0x11] sm:$0xff]  ;;  %v7680_v45 = vld [vmem:[%s7553_s21 + $0x19] sm:$0xff] }
  0x77   : > { %6435 = vmatprep.subr.mxu0 %v1407_v47  ;;  %6333 = vmatprep.subr.mxu1 %v890_v48 }
  0x78   : > { %6436 = vmatpush3.msra.mxu0 %v1407_v47  ;;  %6300 = vmatprep.mubr.f32.mxu1 %v303_v49  ;;  %v5303_v47 = vld [vmem:[%s7553_s21 + $0x12] sm:$0xff]  ;;  %v5304_v49 = vld [vmem:[%s7553_s21 + $0x1a] sm:$0xff] }
  0x79   : > { %6334 = vmatpush3.msra.mxu1 %v890_v48  ;;  %6264 = vmatprep.mubr.f32.mxu0 %v7606_v50  ;;  %v1927_v48 = vld [vmem:[#allocation6 + $0x1f0] sm:$0xff] }
  0x7a   : > { %6301 = vmatmul.mubr.f32.gmra.mxu1 %v304_v51  ;;  %6437 = vmatprep.subr.mxu0 %v1406_v52  ;;  %v7685_v51 = vld [vmem:[%s7553_s21 + $0x21] sm:$0xff] }
  0x7b   : > { %6265 = vmatmul.mubr.f32.gmra.mxu0 %v7610_v53  ;;  %6335 = vmatprep.subr.mxu1 %v889_v54 }
  0x7c   : > { %6438 = vmatpush3.msra.mxu0 %v1406_v52  ;;  %6336 = vmatpush3.msra.mxu1 %v889_v54  ;;  %v5305_v52 = vld [vmem:[%s7553_s21 + $0x22] sm:$0xff] }
  0x7d   : > { %6303 = vmatprep.mubr.f32.mxu1 %v305_v55  ;;  %6439 = vmatprep.subr.mxu0 %v1405_v56  ;;  %v7690_v54 = vld [vmem:[%s7553_s21 + $0x29] sm:$0xff]  ;;  %v2443_v55 = vld [vmem:[#allocation6 + $0x270] sm:$0xff] }
  0x7e   : > { %6267 = vmatprep.mubr.f32.mxu0 %v7616_v57  ;;  %6304 = vmatmul.mubr.f32.gmra.mxu1 %v306_v58  ;;  %v5306_v58 = vld [vmem:[%s7553_s21 + $0x2a] sm:$0xff] }
  0x7f   : > { %6337 = vmatprep.subr.mxu1 %v888_v59  ;;  %6440 = vmatpush3.msra.mxu0 %v1405_v56  ;;  %v7694_v56 = vld [vmem:[%s7553_s21 + $0x31] sm:$0xff] }
  0x80   : > { %6268 = vmatmul.mubr.f32.gmra.mxu0 %v7620_v60  ;;  %6338 = vmatpush3.msra.mxu1 %v888_v59  ;;  %v1926_v59 = vld [vmem:[#allocation6 + $0x1e8] sm:$0xff] }
  0x81   : > { %6441 = vmatprep.subr.mxu0 %v1404_v61  ;;  %6306 = vmatprep.mubr.f32.mxu1 %v307_v62  ;;  %v7701_v62 = vld [vmem:[%s7553_s21 + $0x39] sm:$0xff] }
  0x82   : > { %6339 = vmatprep.subr.mxu1 %v887_v63  ;;  %6442 = vmatpush3.msra.mxu0 %v1404_v61  ;;  %v5307_v61 = vld [vmem:[%s7553_s21 + $0x32] sm:$0xff] }
  0x83   : > { %6270 = vmatprep.mubr.f32.mxu0 %v7626_v0  ;;  %6307 = vmatmul.mubr.f32.gmra.mxu1 %v308_v1  ;;  %v7704_v1 = vld [vmem:[%s7553_s21 + $0x41] sm:$0xff] }
  0x84   : > { %6340 = vmatpush3.msra.mxu1 %v887_v63  ;;  %6271 = vmatmul.mubr.f32.gmra.mxu0 %v7630_v2  ;;  %v2442_v63 = vld [vmem:[#allocation6 + $0x268] sm:$0xff] }
  0x85   : > { %6443 = vmatprep.subr.mxu0 %v1403_v3  ;;  %6341 = vmatprep.subr.mxu1 %v886_v4 }
  0x86   : > { %6444 = vmatpush3.msra.mxu0 %v1403_v3  ;;  %6309 = vmatprep.mubr.f32.mxu1 %v309_v5  ;;  %v5308_v3 = vld [vmem:[%s7553_s21 + $0x3a] sm:$0xff]  ;;  %v5309_v5 = vld [vmem:[%s7553_s21 + $0x42] sm:$0xff] }
  0x87   : > { %6342 = vmatpush3.msra.mxu1 %v886_v4  ;;  %6273 = vmatprep.mubr.f32.mxu0 %v7636_v6  ;;  %v1925_v4 = vld [vmem:[#allocation6 + $0x1e0] sm:$0xff] }
  0x88   : > { %6310 = vmatmul.mubr.f32.gmra.mxu1 %v310_v7  ;;  %6445 = vmatprep.subr.mxu0 %v1402_v8  ;;  %v7711_v7 = vld [vmem:[%s7553_s21 + $0x49] sm:$0xff] }
  0x89   : > { %6274 = vmatmul.mubr.f32.gmra.mxu0 %v7640_v9  ;;  %6343 = vmatprep.subr.mxu1 %v885_v10 }
  0x8a   : > { %6446 = vmatpush3.msra.mxu0 %v1402_v8  ;;  %6344 = vmatpush3.msra.mxu1 %v885_v10  ;;  %v2441_v8 = vld [vmem:[#allocation6 + $0x260] sm:$0xff] }
  0x8b   : > { %6312 = vmatprep.mubr.f32.mxu1 %v311_v11  ;;  %6447 = vmatprep.subr.mxu0 %v1401_v12  ;;  %v7714_v10 = vld [vmem:[%s7553_s21 + $0x51] sm:$0xff] }
  0x8c   : > { %6276 = vmatprep.mubr.f32.mxu0 %v7646_v13  ;;  %6313 = vmatmul.mubr.f32.gmra.mxu1 %v312_v14  ;;  %v5310_v11 = vld [vmem:[%s7553_s21 + $0x4a] sm:$0xff]  ;;  %v5311_v14 = vld [vmem:[%s7553_s21 + $0x52] sm:$0xff] }
  0x8d   : > { %6345 = vmatprep.subr.mxu1 %v884_v15  ;;  %6448 = vmatpush3.msra.mxu0 %v1401_v12  ;;  %v1924_v12 = vld [vmem:[#allocation6 + $0x1d8] sm:$0xff] }
  0x8e   : > { %6277 = vmatmul.mubr.f32.gmra.mxu0 %v7650_v16  ;;  %6346 = vmatpush3.msra.mxu1 %v884_v15  ;;  %v7721_v15 = vld [vmem:[%s7553_s21 + $0x59] sm:$0xff] }
  0x8f   : > { %6449 = vmatprep.subr.mxu0 %v1400_v17  ;;  %6315 = vmatprep.mubr.f32.mxu1 %v313_v18  ;;  %v7724_v18 = vld [vmem:[%s7553_s21 + $0x61] sm:$0xff] }
  0x90   : > { %6347 = vmatprep.subr.mxu1 %v883_v19  ;;  %6450 = vmatpush3.msra.mxu0 %v1400_v17  ;;  %v2440_v17 = vld [vmem:[#allocation6 + $0x258] sm:$0xff] }
  0x91   : > { %6279 = vmatprep.mubr.f32.mxu0 %v7656_v20  ;;  %6316 = vmatmul.mubr.f32.gmra.mxu1 %v314_v21  ;;  %v1923_v21 = vld [vmem:[#allocation6 + $0x1d0] sm:$0xff] }
  0x92   : > { %6348 = vmatpush3.msra.mxu1 %v883_v19  ;;  %6280 = vmatmul.mubr.f32.gmra.mxu0 %v7660_v22  ;;  %v5312_v19 = vld [vmem:[%s7553_s21 + $0x5a] sm:$0xff] }
  0x93   : > { %6451 = vmatprep.subr.mxu0 %v1399_v23  ;;  %6349 = vmatprep.subr.mxu1 %v882_v24 }
  0x94   : > { %6452 = vmatpush3.msra.mxu0 %v1399_v23  ;;  %6318 = vmatprep.mubr.f32.mxu1 %v315_v25  ;;  %v5313_v23 = vld [vmem:[%s7553_s21 + $0x62] sm:$0xff] }
  0x95   : > { %6350 = vmatpush3.msra.mxu1 %v882_v24  ;;  %6282 = vmatprep.mubr.f32.mxu0 %v7666_v27  ;;  %v7731_v24 = vld [vmem:[%s7553_s21 + $0x69] sm:$0xff]  ;;  %v2439_v25 = vld [vmem:[#allocation6 + $0x250] sm:$0xff] }
  0x96   : > { %6319 = vmatmul.mubr.f32.gmra.mxu1 %v316_v28  ;;  %6453 = vmatprep.subr.mxu0 %v1398_v29  ;;  %v7734_v28 = vld [vmem:[%s7553_s21 + $0x71] sm:$0xff] }
  0x97   : > { %6283 = vmatmul.mubr.f32.gmra.mxu0 %v7670_v31  ;;  %6351 = vmatprep.subr.mxu1 %v881_v32 }
  0x98   : > { %6454 = vmatpush3.msra.mxu0 %v1398_v29  ;;  %6352 = vmatpush3.msra.mxu1 %v881_v32  ;;  %v5314_v29 = vld [vmem:[%s7553_s21 + $0x6a] sm:$0xff] }
  0x99   : > { %6353 = vmatprep.mubr.f32.mxu1 %v5253_v34  ;;  %6455 = vmatprep.subr.mxu0 %v1397_v35  ;;  %v1922_v32 = vld [vmem:[#allocation6 + $0x1c8] sm:$0xff] }
  0x9a   : > { %6354 = vmatmul.mubr.f32.vlgmr.msra.gmra.mxu1 %v5254_v36  ;;  %6456 = vmatpush3.msra.mxu0 %v1397_v35  ;;  %v5315_v34 = vld [vmem:[%s7553_s21 + $0x72] sm:$0xff] }
  0x9b   : > { %6457 = vmatprep.mubr.f32.mxu0 %v5301_v38  ;;  %6529 = vmatprep.subr.mxu1 %v1928_v39  ;;  %v7741_v35 = vld [vmem:[%s7553_s21 + $0x79] sm:$0xff]  ;;  %v7744_v38 = vld [vmem:[%s7553_s21 + $0x81] sm:$0xff] }
  0x9c   : > { %6458 = vmatmul.mubr.f32.vlgmr.msra.gmra.mxu0 %v5302_v41  ;;  %6530 = vmatpush3.msra.mxu1 %v1928_v39  ;;  %v2438_v36 = vld [vmem:[#allocation6 + $0x248] sm:$0xff]  ;;  %v1921_v41 = vld [vmem:[#allocation6 + $0x1c0] sm:$0xff] }
  0x9d   : > { %6633 = vmatprep.subr.mxu0 %v2444_v42  ;;  %6356 = vmatprep.mubr.f32.mxu1 %v5255_v43  ;;  %v5316_v39 = vld [vmem:[%s7553_s21 + $0x7a] sm:$0xff]  ;;  %v7751_v43 = vld [vmem:[%s7553_s21 + $0x89] sm:$0xff] }
  0x9e   : > { %6634 = vmatpush3.msra.mxu0 %v2444_v42  ;;  %6357 = vmatmul.mubr.f32.gmra.mxu1 %v7680_v45  ;;  %v5317_v42 = vld [vmem:[%s7553_s21 + $0x82] sm:$0xff] }
  0x9f   : > { %6460 = vmatprep.mubr.f32.mxu0 %v5303_v47  ;;  %6531 = vmatprep.subr.mxu1 %v1927_v48  ;;  %v2437_v47 = vld [vmem:[#allocation6 + $0x240] sm:$0xff] }
  0xa0   : > { %6461 = vmatmul.mubr.f32.gmra.mxu0 %v5304_v49  ;;  %6359 = vmatprep.mubr.f32.mxu1 %v7685_v51  ;;  %v5318_v49 = vld [vmem:[%s7553_s21 + $0x8a] sm:$0xff] }
  0xa1   : > { %6532 = vmatpush3.msra.mxu1 %v1927_v48  ;;  %6463 = vmatprep.mubr.f32.mxu0 %v5305_v52  ;;  %v7754_v48 = vld [vmem:[%s7553_s21 + $0x91] sm:$0xff]  ;;  %v1920_v52 = vld [vmem:[#allocation6 + $0x1b8] sm:$0xff] }
  0xa2   : > { %6360 = vmatmul.mubr.f32.gmra.mxu1 %v7690_v54  ;;  %6635 = vmatprep.subr.mxu0 %v2443_v55 }
  0xa3   : > { %6636 = vmatpush3.msra.mxu0 %v2443_v55  ;;  %6362 = vmatprep.mubr.f32.mxu1 %v7694_v56  ;;  %v5319_v55 = vld [vmem:[%s7553_s21 + $0x92] sm:$0xff] }
  0xa4   : > { %6464 = vmatmul.mubr.f32.gmra.mxu0 %v5306_v58  ;;  %6533 = vmatprep.subr.mxu1 %v1926_v59  ;;  %v7761_v58 = vld [vmem:[%s7553_s21 + $0x99] sm:$0xff] }
  0xa5   : > { %6466 = vmatprep.mubr.f32.mxu0 %v5307_v61  ;;  %6534 = vmatpush3.msra.mxu1 %v1926_v59  ;;  %v2436_v59 = vld [vmem:[#allocation6 + $0x238] sm:$0xff] }
  0xa6   : > { %6363 = vmatmul.mubr.f32.gmra.mxu1 %v7701_v62  ;;  %6637 = vmatprep.subr.mxu0 %v2442_v63  ;;  %v7764_v61 = vld [vmem:[%s7553_s21 + $0xa1] sm:$0xff] }
  0xa7   : > { %6365 = vmatprep.mubr.f32.mxu1 %v7704_v1  ;;  %6638 = vmatpush3.msra.mxu0 %v2442_v63  ;;  %v5320_v63 = vld [vmem:[%s7553_s21 + $0x9a] sm:$0xff] }
  0xa8   : > { %6467 = vmatmul.mubr.f32.gmra.mxu0 %v5308_v3  ;;  %6535 = vmatprep.subr.mxu1 %v1925_v4  ;;  %v1919_v3 = vld [vmem:[#allocation6 + $0x1b0] sm:$0xff] }
  0xa9   : > { %6469 = vmatprep.mubr.f32.mxu0 %v5309_v5  ;;  %6536 = vmatpush3.msra.mxu1 %v1925_v4  ;;  %v5321_v4 = vld [vmem:[%s7553_s21 + $0xa2] sm:$0xff] }
  0xaa   : > { %6366 = vmatmul.mubr.f32.gmra.mxu1 %v7711_v7  ;;  %6639 = vmatprep.subr.mxu0 %v2441_v8  ;;  %v7771_v5 = vld [vmem:[%s7553_s21 + $0xa9] sm:$0xff] }
  0xab   : > { %6368 = vmatprep.mubr.f32.mxu1 %v7714_v10  ;;  %6640 = vmatpush3.msra.mxu0 %v2441_v8  ;;  %v2435_v8 = vld [vmem:[#allocation6 + $0x230] sm:$0xff] }
  0xac   : > { %6470 = vmatmul.mubr.f32.gmra.mxu0 %v5310_v11  ;;  %6537 = vmatprep.subr.mxu1 %v1924_v12  ;;  %v7774_v11 = vld [vmem:[%s7553_s21 + $0xb1] sm:$0xff] }
  0xad   : > { %6472 = vmatprep.mubr.f32.mxu0 %v5311_v14  ;;  %6538 = vmatpush3.msra.mxu1 %v1924_v12  ;;  %v5322_v12 = vld [vmem:[%s7553_s21 + $0xaa] sm:$0xff] }
  0xae   : > { %6369 = vmatmul.mubr.f32.gmra.mxu1 %v7721_v15  ;;  %6641 = vmatprep.subr.mxu0 %v2440_v17  ;;  %v1918_v14 = vld [vmem:[#allocation6 + $0x1a8] sm:$0xff] }
  0xaf   : > { %6371 = vmatprep.mubr.f32.mxu1 %v7724_v18  ;;  %6642 = vmatpush3.msra.mxu0 %v2440_v17  ;;  %v5323_v17 = vld [vmem:[%s7553_s21 + $0xb2] sm:$0xff] }
  0xb0   : > { %6473 = vmatmul.mubr.f32.gmra.mxu0 %v5312_v19  ;;  %6539 = vmatprep.subr.mxu1 %v1923_v21  ;;  %v7781_v19 = vld [vmem:[%s7553_s21 + $0xb9] sm:$0xff] }
  0xb1   : > { %6475 = vmatprep.mubr.f32.mxu0 %v5313_v23  ;;  %6540 = vmatpush3.msra.mxu1 %v1923_v21  ;;  %v2434_v21 = vld [vmem:[#allocation6 + $0x228] sm:$0xff]  ;;  %v7784_v23 = vld [vmem:[%s7553_s21 + $0xc1] sm:$0xff] }
  0xb2   : > { %6372 = vmatmul.mubr.f32.gmra.mxu1 %v7731_v24  ;;  %6643 = vmatprep.subr.mxu0 %v2439_v25 }
  0xb3   : > { %6374 = vmatprep.mubr.f32.mxu1 %v7734_v28  ;;  %6644 = vmatpush3.msra.mxu0 %v2439_v25  ;;  %v5324_v25 = vld [vmem:[%s7553_s21 + $0xba] sm:$0xff] }
  0xb4   : > { %6476 = vmatmul.mubr.f32.gmra.mxu0 %v5314_v29  ;;  %6541 = vmatprep.subr.mxu1 %v1922_v32  ;;  %v1917_v29 = vld [vmem:[#allocation6 + $0x1a0] sm:$0xff] }
  0xb5   : > { %6478 = vmatprep.mubr.f32.mxu0 %v5315_v34  ;;  %6542 = vmatpush3.msra.mxu1 %v1922_v32  ;;  %v5325_v32 = vld [vmem:[%s7553_s21 + $0xc2] sm:$0xff] }
  0xb6   : > { %6375 = vmatmul.mubr.f32.gmra.mxu1 %v7741_v35  ;;  %6645 = vmatprep.subr.mxu0 %v2438_v36  ;;  %v7791_v34 = vld [vmem:[%s7553_s21 + $0xc9] sm:$0xff] }
  0xb7   : > { %6377 = vmatprep.mubr.f32.mxu1 %v7744_v38  ;;  %6646 = vmatpush3.msra.mxu0 %v2438_v36  ;;  %v2433_v36 = vld [vmem:[#allocation6 + $0x220] sm:$0xff] }
  0xb8   : > { %6479 = vmatmul.mubr.f32.gmra.mxu0 %v5316_v39  ;;  %6543 = vmatprep.subr.mxu1 %v1921_v41  ;;  %v7794_v39 = vld [vmem:[%s7553_s21 + $0xd1] sm:$0xff] }
  0xb9   : > { %6481 = vmatprep.mubr.f32.mxu0 %v5317_v42  ;;  %6544 = vmatpush3.msra.mxu1 %v1921_v41  ;;  %v5326_v41 = vld [vmem:[%s7553_s21 + $0xca] sm:$0xff] }
  0xba   : > { %6378 = vmatmul.mubr.f32.gmra.mxu1 %v7751_v43  ;;  %6647 = vmatprep.subr.mxu0 %v2437_v47  ;;  %v1916_v42 = vld [vmem:[#allocation6 + $0x198] sm:$0xff] }
  0xbb   : > { %6380 = vmatprep.mubr.f32.mxu1 %v7754_v48  ;;  %6648 = vmatpush3.msra.mxu0 %v2437_v47  ;;  %v5327_v47 = vld [vmem:[%s7553_s21 + $0xd2] sm:$0xff] }
  0xbc   : > { %6482 = vmatmul.mubr.f32.gmra.mxu0 %v5318_v49  ;;  %6545 = vmatprep.subr.mxu1 %v1920_v52  ;;  %v7801_v49 = vld [vmem:[%s7553_s21 + $0xd9] sm:$0xff] }
  0xbd   : > { %6484 = vmatprep.mubr.f32.mxu0 %v5319_v55  ;;  %6546 = vmatpush3.msra.mxu1 %v1920_v52  ;;  %v2432_v52 = vld [vmem:[#allocation6 + $0x218] sm:$0xff] }
  0xbe   : > { %6381 = vmatmul.mubr.f32.gmra.mxu1 %v7761_v58  ;;  %6649 = vmatprep.subr.mxu0 %v2436_v59  ;;  %v7804_v55 = vld [vmem:[%s7553_s21 + $0xe1] sm:$0xff] }
  0xbf   : > { %6383 = vmatprep.mubr.f32.mxu1 %v7764_v61  ;;  %6650 = vmatpush3.msra.mxu0 %v2436_v59  ;;  %v5328_v59 = vld [vmem:[%s7553_s21 + $0xda] sm:$0xff] }
  0xc0   : > { %6485 = vmatmul.mubr.f32.gmra.mxu0 %v5320_v63  ;;  %6547 = vmatprep.subr.mxu1 %v1919_v3  ;;  %v1915_v63 = vld [vmem:[#allocation6 + $0x190] sm:$0xff] }
  0xc1   : > { %6487 = vmatprep.mubr.f32.mxu0 %v5321_v4  ;;  %6548 = vmatpush3.msra.mxu1 %v1919_v3  ;;  %v5329_v3 = vld [vmem:[%s7553_s21 + $0xe2] sm:$0xff] }
  0xc2   : > { %6384 = vmatmul.mubr.f32.gmra.mxu1 %v7771_v5  ;;  %6651 = vmatprep.subr.mxu0 %v2435_v8  ;;  %v7811_v4 = vld [vmem:[%s7553_s21 + $0xe9] sm:$0xff] }
  0xc3   : > { %6386 = vmatprep.mubr.f32.mxu1 %v7774_v11  ;;  %6652 = vmatpush3.msra.mxu0 %v2435_v8  ;;  %v2431_v8 = vld [vmem:[#allocation6 + $0x210] sm:$0xff] }
  0xc4   : > { %6488 = vmatmul.mubr.f32.gmra.mxu0 %v5322_v12  ;;  %6549 = vmatprep.subr.mxu1 %v1918_v14  ;;  %v7814_v12 = vld [vmem:[%s7553_s21 + $0xf1] sm:$0xff] }
  0xc5   : > { %6490 = vmatprep.mubr.f32.mxu0 %v5323_v17  ;;  %6550 = vmatpush3.msra.mxu1 %v1918_v14  ;;  %v5330_v14 = vld [vmem:[%s7553_s21 + $0xea] sm:$0xff] }
  0xc6   : > { %6387 = vmatmul.mubr.f32.gmra.mxu1 %v7781_v19  ;;  %6653 = vmatprep.subr.mxu0 %v2434_v21  ;;  %v1914_v17 = vld [vmem:[#allocation6 + $0x188] sm:$0xff] }
  0xc7   : > { %6389 = vmatprep.mubr.f32.mxu1 %v7784_v23  ;;  %6654 = vmatpush3.msra.mxu0 %v2434_v21  ;;  %v5331_v21 = vld [vmem:[%s7553_s21 + $0xf2] sm:$0xff] }
  0xc8   : > { %6491 = vmatmul.mubr.f32.gmra.mxu0 %v5324_v25  ;;  %6551 = vmatprep.subr.mxu1 %v1917_v29  ;;  %v7821_v25 = vld [vmem:[%s7553_s21 + $0xf9] sm:$0xff] }
  0xc9   : > { %6493 = vmatprep.mubr.f32.mxu0 %v5325_v32  ;;  %6552 = vmatpush3.msra.mxu1 %v1917_v29  ;;  %v2430_v29 = vld [vmem:[#allocation6 + $0x208] sm:$0xff]  ;;  %v7824_v32 = vld [vmem:[%s7553_s21 + $0x101] sm:$0xff] }
  0xca   : > { %6390 = vmatmul.mubr.f32.gmra.mxu1 %v7791_v34  ;;  %6655 = vmatprep.subr.mxu0 %v2433_v36 }
  0xcb   : > { %6392 = vmatprep.mubr.f32.mxu1 %v7794_v39  ;;  %6656 = vmatpush3.msra.mxu0 %v2433_v36  ;;  %v5332_v36 = vld [vmem:[%s7553_s21 + $0xfa] sm:$0xff] }
  0xcc   : > { %6494 = vmatmul.mubr.f32.gmra.mxu0 %v5326_v41  ;;  %6553 = vmatprep.subr.mxu1 %v1916_v42  ;;  %v1913_v41 = vld [vmem:[#allocation6 + $0x180] sm:$0xff] }
  0xcd   : > { %6496 = vmatprep.mubr.f32.mxu0 %v5327_v47  ;;  %6554 = vmatpush3.msra.mxu1 %v1916_v42  ;;  %v5333_v42 = vld [vmem:[%s7553_s21 + $0x102] sm:$0xff] }
  0xce   : > { %6393 = vmatmul.mubr.f32.gmra.mxu1 %v7801_v49  ;;  %6657 = vmatprep.subr.mxu0 %v2432_v52  ;;  %v7831_v47 = vld [vmem:[%s7553_s21 + $0x109] sm:$0xff] }
  0xcf   : > { %6395 = vmatprep.mubr.f32.mxu1 %v7804_v55  ;;  %6658 = vmatpush3.msra.mxu0 %v2432_v52  ;;  %v2429_v52 = vld [vmem:[#allocation6 + $0x200] sm:$0xff] }
  0xd0   : > { %6497 = vmatmul.mubr.f32.gmra.mxu0 %v5328_v59  ;;  %6555 = vmatprep.subr.mxu1 %v1915_v63  ;;  %v7834_v59 = vld [vmem:[%s7553_s21 + $0x111] sm:$0xff] }
  0xd1   : > { %6499 = vmatprep.mubr.f32.mxu0 %v5329_v3  ;;  %6556 = vmatpush3.msra.mxu1 %v1915_v63  ;;  %v5334_v63 = vld [vmem:[%s7553_s21 + $0x10a] sm:$0xff] }
  0xd2   : > { %6396 = vmatmul.mubr.f32.gmra.mxu1 %v7811_v4  ;;  %6659 = vmatprep.subr.mxu0 %v2431_v8  ;;  %v7837_v3 = vld [vmem:[#allocation6 + $0x2f8] sm:$0xff] }
  0xd3   : > { %6398 = vmatprep.mubr.f32.mxu1 %v7814_v12  ;;  %6660 = vmatpush3.msra.mxu0 %v2431_v8  ;;  %v5335_v8 = vld [vmem:[%s7553_s21 + $0x112] sm:$0xff] }
  0xd4   : > { %6500 = vmatmul.mubr.f32.gmra.mxu0 %v5330_v14  ;;  %6557 = vmatprep.subr.mxu1 %v1914_v17  ;;  %v7841_v14 = vld [vmem:[#allocation6 + $0x378] sm:$0xff] }
  0xd5   : > { %6502 = vmatprep.mubr.f32.mxu0 %v5331_v21  ;;  %6558 = vmatpush3.msra.mxu1 %v1914_v17  ;;  %v7845_v17 = vld [vmem:[%s7553_s21 + $0x119] sm:$0xff]  ;;  %v7848_v21 = vld [vmem:[%s7553_s21 + $0x121] sm:$0xff] }
  0xd6   : > { %6399 = vmatmul.mubr.f32.gmra.mxu1 %v7821_v25  ;;  %6661 = vmatprep.subr.mxu0 %v2430_v29  ;;  %9215 = vst [vmem:[#allocation12_spill] sm:$0xff] %v7845_v17  ;;  %9216 = vst [vmem:[#allocation13_spill] sm:$0xff] %v7848_v21 }
  0xd7   : > { %6401 = vmatprep.mubr.f32.mxu1 %v7824_v32  ;;  %6662 = vmatpush3.msra.mxu0 %v2430_v29  ;;  %v5336_v29 = vld [vmem:[%s7553_s21 + $0x11a] sm:$0xff] }
  0xd8   : > { %6503 = vmatmul.mubr.f32.gmra.mxu0 %v5332_v36  ;;  %6559 = vmatprep.subr.mxu1 %v1913_v41  ;;  %v5337_v36 = vld [vmem:[%s7553_s21 + $0x122] sm:$0xff] }
  0xd9   : > { %6505 = vmatprep.mubr.f32.mxu0 %v5333_v42  ;;  %6560 = vmatpush3.msra.mxu1 %v1913_v41  ;;  %v7857_v41 = vld [vmem:[%s7553_s21 + $0x129] sm:$0xff]  ;;  %v7860_v42 = vld [vmem:[%s7553_s21 + $0x131] sm:$0xff] }
  0xda   : > { %6402 = vmatmul.mubr.f32.gmra.mxu1 %v7831_v47  ;;  %6663 = vmatprep.subr.mxu0 %v2429_v52  ;;  %9217 = vst [vmem:[#allocation14_spill] sm:$0xff] %v7857_v41  ;;  %9218 = vst [vmem:[#allocation15_spill] sm:$0xff] %v7860_v42 }
  0xdb   : > { %6404 = vmatprep.mubr.f32.mxu1 %v7834_v59  ;;  %6664 = vmatpush3.msra.mxu0 %v2429_v52  ;;  %v5338_v52 = vld [vmem:[%s7553_s21 + $0x12a] sm:$0xff] }
  0xdc   : > { %6506 = vmatmul.mubr.f32.gmra.mxu0 %v5334_v63  ;;  %6737 = vmatprep.subr.mxu1 %v7837_v3  ;;  %v5339_v63 = vld [vmem:[%s7553_s21 + $0x132] sm:$0xff] }
  0xdd   : > { %6508 = vmatprep.mubr.f32.mxu0 %v5335_v8  ;;  %6841 = vmatprep.subr.mxu0 %v7841_v14  ;;  %v7867_v8 = vld [vmem:[%s7553_s21 + $0x139] sm:$0xff] }
  0xde   : > { %6405 = vmatmul.mubr.f32.gmra.mxu1 %v7845_v17  ;;  %9219 = vst [vmem:[#allocation16_spill] sm:$0xff] %v7867_v8  ;;  %v7897_v17 = vld [vmem:[%s7553_s21 + $0x169] sm:$0xff] }
  0xdf   : > { %6407 = vmatprep.mubr.f32.mxu1 %v7848_v21  ;;  %v7870_v21 = vld [vmem:[%s7553_s21 + $0x141] sm:$0xff] }
  0xe0   : > { %6509 = vmatmul.mubr.f32.gmra.mxu0 %v5336_v29  ;;  %9220 = vst [vmem:[#allocation17_spill] sm:$0xff] %v7870_v21  ;;  %v5340_v29 = vld [vmem:[%s7553_s21 + $0x13a] sm:$0xff] }
  0xe1   : > { %6511 = vmatprep.mubr.f32.mxu0 %v5337_v36  ;;  %v5341_v36 = vld [vmem:[%s7553_s21 + $0x142] sm:$0xff] }
  0xe2   : > { %6408 = vmatmul.mubr.f32.gmra.mxu1 %v7857_v41  ;;  %v7877_v41 = vld [vmem:[%s7553_s21 + $0x149] sm:$0xff] }
  0xe3   : > { %6410 = vmatprep.mubr.f32.mxu1 %v7860_v42  ;;  %9221 = vst [vmem:[#allocation18_spill] sm:$0xff] %v7877_v41  ;;  %v7880_v42 = vld [vmem:[%s7553_s21 + $0x151] sm:$0xff] }
  0xe4   : > { %6512 = vmatmul.mubr.f32.gmra.mxu0 %v5338_v52  ;;  %9222 = vst [vmem:[#allocation19_spill] sm:$0xff] %v7880_v42  ;;  %v5342_v52 = vld [vmem:[%s7553_s21 + $0x14a] sm:$0xff] }
  0xe5   : > { %6514 = vmatprep.mubr.f32.mxu0 %v5339_v63  ;;  %v5343_v63 = vld [vmem:[%s7553_s21 + $0x152] sm:$0xff] }
  0xe6   : > { %6411 = vmatmul.mubr.f32.gmra.mxu1 %v7867_v8  ;;  %v7887_v8 = vld [vmem:[%s7553_s21 + $0x159] sm:$0xff] }
  0xe7   : > { %6413 = vmatprep.mubr.f32.mxu1 %v7870_v21  ;;  %9223 = vst [vmem:[#allocation20_spill] sm:$0xff] %v7887_v8  ;;  %v7890_v21 = vld [vmem:[%s7553_s21 + $0x161] sm:$0xff] }
  0xe8   : > { %6515 = vmatmul.mubr.f32.gmra.mxu0 %v5340_v29  ;;  %v5344_v29 = vld [vmem:[%s7553_s21 + $0x15a] sm:$0xff] }
  0xe9   : > { %6517 = vmatprep.mubr.f32.mxu0 %v5341_v36  ;;  %v5345_v36 = vld [vmem:[%s7553_s21 + $0x162] sm:$0xff] }
  0xea   : > { %6414 = vmatmul.mubr.f32.gmra.mxu1 %v7877_v41  ;;  %v7900_v41 = vld [vmem:[%s7553_s21 + $0x171] sm:$0xff] }
  0xeb   : > { %6416 = vmatprep.mubr.f32.mxu1 %v7880_v42  ;;  %v5346_v42 = vld [vmem:[%s7553_s21 + $0x16a] sm:$0xff] }
  0xec   : > { %6518 = vmatmul.mubr.f32.gmra.mxu0 %v5342_v52  ;;  %v5347_v52 = vld [vmem:[%s7553_s21 + $0x172] sm:$0xff] }
  0xed   : > { %6520 = vmatprep.mubr.f32.mxu0 %v5343_v63  ;;  %v7907_v63 = vld [vmem:[%s7553_s21 + $0x179] sm:$0xff] }
  0xee   : > { %6417 = vmatmul.mubr.f32.gmra.mxu1 %v7887_v8  ;;  %v5348_v8 = vld [vmem:[%s7553_s21 + $0x17a] sm:$0xff] }
  0xef   : > { %6419 = vmatprep.mubr.f32.mxu1 %v7890_v21 }
  0xf0   : > { %6521 = vmatmul.mubr.f32.gmra.mxu0 %v5344_v29  ;;  %v2959_v29 = vld [vmem:[#allocation6 + $0x2f0] sm:$0xff] }
  0xf1   : > { %6523 = vmatprep.mubr.f32.mxu0 %v5345_v36  ;;  %v3475_v36 = vld [vmem:[#allocation6 + $0x370] sm:$0xff] }
  0xf2   : > { %6420 = vmatmul.mubr.f32.gmra.mxu1 %v7897_v17 }
  0xf3   : > { %6422 = vmatprep.mubr.f32.mxu1 %v7900_v41 }
  0xf4   : > { %6524 = vmatmul.mubr.f32.gmra.mxu0 %v5346_v42  ;;  %v2958_v42 = vld [vmem:[#allocation6 + $0x2e8] sm:$0xff] }
  0xf5   : > { %6526 = vmatprep.mubr.f32.mxu0 %v5347_v52  ;;  %v3461_v52 = vld [vmem:[#allocation6 + $0x300] sm:$0xff] }
  0xf6   : > { %6423 = vmatmul.mubr.f32.gmra.mxu1 %v7907_v63 }
  0xf7   : > { %6561 = vmatprep.mubr.f32.mxu1 %v7571_v26  ;;  %v3474_v26 = vld [vmem:[#allocation6 + $0x368] sm:$0xff] }
  0xf8   : > { %6527 = vmatmul.mubr.f32.gmra.mxu0 %v5348_v8 }
  0xf9   : > { %6665 = vmatprep.mubr.f32.mxu0 %v7680_v45  ;;  %v2949_v45 = vld [vmem:[#allocation6 + $0x2a0] sm:$0xff] }
  0xfa   : > { %6562 = vmatmul.mubr.f32.vlgmr.msra.gmra.mxu1 %v7576_v30  ;;  %v2957_v30 = vld [vmem:[#allocation6 + $0x2e0] sm:$0xff] }
  0xfb   : > { %6738 = vmatpush3.msra.mxu1 %v7837_v3  ;;  %6564 = vmatprep.mubr.f32.mxu1 %v7580_v33  ;;  %v3473_v33 = vld [vmem:[#allocation6 + $0x360] sm:$0xff] }
  0xfc   : > { %6666 = vmatmul.mubr.f32.vlgmr.msra.gmra.mxu0 %v7685_v51  ;;  %6739 = vmatprep.subr.mxu1 %v2959_v29  ;;  %v3465_v51 = vld [vmem:[#allocation6 + $0x320] sm:$0xff] }
  0xfd   : > { %6842 = vmatpush3.msra.mxu0 %v7841_v14  ;;  %6668 = vmatprep.mubr.f32.mxu0 %v7690_v54  ;;  %v7970_v54 = vld [vmem:[%s7553_s21 + $0xd8] sm:$0xff]  ;;  %v2945_v3 = vld [vmem:[#allocation6 + $0x280] sm:$0xff] }
  0xfe   : > { %6565 = vmatmul.mubr.f32.gmra.mxu1 %v7586_v37  ;;  %6843 = vmatprep.subr.mxu0 %v3475_v36  ;;  %v2956_v37 = vld [vmem:[#allocation6 + $0x2d8] sm:$0xff] }
  0xff   : > { %6567 = vmatprep.mubr.f32.mxu1 %v7590_v40  ;;  %6740 = vmatpush3.msra.mxu1 %v2959_v29  ;;  %v3472_v40 = vld [vmem:[#allocation6 + $0x358] sm:$0xff] }
 0x100   : > { %6669 = vmatmul.mubr.f32.gmra.mxu0 %v7694_v56  ;;  %6741 = vmatprep.subr.mxu1 %v2958_v42 }
 0x101   : > { %6671 = vmatprep.mubr.f32.mxu0 %v7701_v62  ;;  %6844 = vmatpush3.msra.mxu0 %v3475_v36 }
 0x102   : > { %6568 = vmatmul.mubr.f32.gmra.mxu1 %v7596_v44  ;;  %6845 = vmatprep.subr.mxu0 %v3474_v26  ;;  %v2955_v44 = vld [vmem:[#allocation6 + $0x2d0] sm:$0xff] }
 0x103   : > { %6570 = vmatprep.mubr.f32.mxu1 %v7600_v46  ;;  %6742 = vmatpush3.msra.mxu1 %v2958_v42  ;;  %v3471_v46 = vld [vmem:[#allocation6 + $0x350] sm:$0xff]  ;;  %v8045_v42 = vld [vmem:[#allocation6 + $0x3f8] sm:$0xff] }
 0x104   : > { %6672 = vmatmul.mubr.f32.gmra.mxu0 %v7704_v1  ;;  %6743 = vmatprep.subr.mxu1 %v2957_v30  ;;  %v2948_v1 = vld [vmem:[#allocation6 + $0x298] sm:$0xff] }
 0x105   : > { %6674 = vmatprep.mubr.f32.mxu0 %v7711_v7  ;;  %6846 = vmatpush3.msra.mxu0 %v3474_v26 }
 0x106   : > { %6571 = vmatmul.mubr.f32.gmra.mxu1 %v7606_v50  ;;  %6847 = vmatprep.subr.mxu0 %v3473_v33  ;;  %v2954_v50 = vld [vmem:[#allocation6 + $0x2c8] sm:$0xff] }
 0x107   : > { %6573 = vmatprep.mubr.f32.mxu1 %v7610_v53  ;;  %6744 = vmatpush3.msra.mxu1 %v2957_v30  ;;  %v3470_v53 = vld [vmem:[#allocation6 + $0x348] sm:$0xff] }
 0x108   : > { %6675 = vmatmul.mubr.f32.gmra.mxu0 %v7714_v10  ;;  %6745 = vmatprep.subr.mxu1 %v2956_v37  ;;  %v7982_v10 = vld [vmem:[%s7553_s21 + $0xe0] sm:$0xff] }
 0x109   : > { %6677 = vmatprep.mubr.f32.mxu0 %v7721_v15  ;;  %6848 = vmatpush3.msra.mxu0 %v3473_v33 }
 0x10a   : > { %6574 = vmatmul.mubr.f32.gmra.mxu1 %v7616_v57  ;;  %6849 = vmatprep.subr.mxu0 %v3472_v40  ;;  %v2953_v57 = vld [vmem:[#allocation6 + $0x2c0] sm:$0xff] }
 0x10b   : > { %6576 = vmatprep.mubr.f32.mxu1 %v7620_v60  ;;  %6746 = vmatpush3.msra.mxu1 %v2956_v37  ;;  %v3469_v60 = vld [vmem:[#allocation6 + $0x340] sm:$0xff] }
 0x10c   : > { %6678 = vmatmul.mubr.f32.gmra.mxu0 %v7724_v18  ;;  %6747 = vmatprep.subr.mxu1 %v2955_v44  ;;  %v3464_v18 = vld [vmem:[#allocation6 + $0x318] sm:$0xff] }
 0x10d   : > { %6680 = vmatprep.mubr.f32.mxu0 %v7731_v24  ;;  %6850 = vmatpush3.msra.mxu0 %v3472_v40  ;;  %v7988_v24 = vld [vmem:[%s7553_s21 + $0xe8] sm:$0xff] }
 0x10e   : > { %6577 = vmatmul.mubr.f32.gmra.mxu1 %v7626_v0  ;;  %6851 = vmatprep.subr.mxu0 %v3471_v46  ;;  %v2952_v0 = vld [vmem:[#allocation6 + $0x2b8] sm:$0xff]  ;;  %v9225_v40 = vld [vmem:[#allocation12_spill] sm:$0xff] }
 0x10f   : > { %6579 = vmatprep.mubr.f32.mxu1 %v7630_v2  ;;  %6748 = vmatpush3.msra.mxu1 %v2955_v44  ;;  %v3468_v2 = vld [vmem:[#allocation6 + $0x338] sm:$0xff] }
 0x110   : > { %6681 = vmatmul.mubr.f32.gmra.mxu0 %v7734_v28  ;;  %6749 = vmatprep.subr.mxu1 %v2954_v50  ;;  %v8062_v37 = vld [vmem:[%s7553_s21 + $0x128] sm:$0xff] }
 0x111   : > { %6683 = vmatprep.mubr.f32.mxu0 %v7741_v35  ;;  %6852 = vmatpush3.msra.mxu0 %v3471_v46 }
 0x112   : > { %6580 = vmatmul.mubr.f32.gmra.mxu1 %v7636_v6  ;;  %6853 = vmatprep.subr.mxu0 %v3470_v53  ;;  %v2951_v6 = vld [vmem:[#allocation6 + $0x2b0] sm:$0xff] }
 0x113   : > { %6582 = vmatprep.mubr.f32.mxu1 %v7640_v9  ;;  %6750 = vmatpush3.msra.mxu1 %v2954_v50  ;;  %v3467_v9 = vld [vmem:[#allocation6 + $0x330] sm:$0xff]  ;;  %v9227_v50 = vld [vmem:[#allocation13_spill] sm:$0xff] }
 0x114   : > { %6684 = vmatmul.mubr.f32.gmra.mxu0 %v7744_v38  ;;  %6751 = vmatprep.subr.mxu1 %v2953_v57  ;;  %v2947_v38 = vld [vmem:[#allocation6 + $0x290] sm:$0xff] }
 0x115   : > { %6686 = vmatprep.mubr.f32.mxu0 %v7751_v43  ;;  %6854 = vmatpush3.msra.mxu0 %v3470_v53 }
 0x116   : > { %6583 = vmatmul.mubr.f32.gmra.mxu1 %v7646_v13  ;;  %6855 = vmatprep.subr.mxu0 %v3469_v60  ;;  %v2950_v13 = vld [vmem:[#allocation6 + $0x2a8] sm:$0xff] }
 0x117   : > { %6585 = vmatprep.mubr.f32.mxu1 %v7650_v16  ;;  %6752 = vmatpush3.msra.mxu1 %v2953_v57  ;;  %v7954_v16 = vld [vmem:[%s7553_s21 + $0xc0] sm:$0xff]  ;;  %v8080_v57 = vld [vmem:[%s7553_s21 + $0x138] sm:$0xff] }
 0x118   : > { %6687 = vmatmul.mubr.f32.gmra.mxu0 %v7754_v48  ;;  %6753 = vmatprep.subr.mxu1 %v2952_v0  ;;  %v8000_v48 = vld [vmem:[%s7553_s21 + $0xf0] sm:$0xff]  ;;  %9229 = vst [vmem:[#allocation22_spill] sm:$0xff] %v8080_v57 }
 0x119   : > { %6689 = vmatprep.mubr.f32.mxu0 %v7761_v58  ;;  %6856 = vmatpush3.msra.mxu0 %v3469_v60  ;;  %v3463_v58 = vld [vmem:[#allocation6 + $0x310] sm:$0xff] }
 0x11a   : > { %6586 = vmatmul.mubr.f32.gmra.mxu1 %v7656_v20  ;;  %6857 = vmatprep.subr.mxu0 %v3468_v2  ;;  %v3466_v20 = vld [vmem:[#allocation6 + $0x328] sm:$0xff]  ;;  %v9230_v60 = vld [vmem:[#allocation14_spill] sm:$0xff] }
 0x11b   : > { %6588 = vmatprep.mubr.f32.mxu1 %v7660_v22  ;;  %6754 = vmatpush3.msra.mxu1 %v2952_v0  ;;  %v7958_v22 = vld [vmem:[%s7553_s21 + $0xc8] sm:$0xff] }
 0x11c   : > { %6690 = vmatmul.mubr.f32.gmra.mxu0 %v7764_v61  ;;  %6755 = vmatprep.subr.mxu1 %v2951_v6  ;;  %v8004_v61 = vld [vmem:[%s7553_s21 + $0xf8] sm:$0xff] }
 0x11d   : > { %6692 = vmatprep.mubr.f32.mxu0 %v7771_v5  ;;  %6858 = vmatpush3.msra.mxu0 %v3468_v2 }
 0x11e   : > { %6589 = vmatmul.mubr.f32.gmra.mxu1 %v7666_v27  ;;  %6859 = vmatprep.subr.mxu0 %v3467_v9  ;;  %v7964_v27 = vld [vmem:[%s7553_s21 + $0xd0] sm:$0xff] }
 0x11f   : > { %6591 = vmatprep.mubr.f32.mxu1 %v7670_v31  ;;  %6756 = vmatpush3.msra.mxu1 %v2951_v6  ;;  %v8090_v6 = vld [vmem:[%s7553_s21 + $0x140] sm:$0xff] }
 0x120   : > { %6693 = vmatmul.mubr.f32.gmra.mxu0 %v7774_v11  ;;  %6757 = vmatprep.subr.mxu1 %v2950_v13  ;;  %9232 = vst [vmem:[#allocation23_spill] sm:$0xff] %v8090_v6 }
 0x121   : > { %6695 = vmatprep.mubr.f32.mxu0 %v7781_v19  ;;  %6860 = vmatpush3.msra.mxu0 %v3467_v9  ;;  %v2946_v19 = vld [vmem:[#allocation6 + $0x288] sm:$0xff]  ;;  %v9233_v9 = vld [vmem:[#allocation15_spill] sm:$0xff] }
 0x122   : > { %6592 = vmatmul.mubr.f32.gmra.mxu1 %v7954_v16  ;;  %6861 = vmatprep.subr.mxu0 %v3466_v20 }
 0x123   : > { %6594 = vmatprep.mubr.f32.mxu1 %v7958_v22  ;;  %v7966_v31 = vpop.f32.mrf.mxu1  ;;  %6758 = vmatpush3.msra.mxu1 %v2950_v13 }
 0x124   : > { %6696 = vmatmul.mubr.f32.gmra.mxu0 %v7784_v23  ;;  %v7972_v56 = vpop.f32.mrf.mxu0  ;;  %6759 = vmatprep.subr.mxu1 %v2949_v45 }
 0x125   : > { %6698 = vmatprep.mubr.f32.mxu0 %v7791_v34  ;;  %v7975_v62 = vpop.f32.mrf.mxu1  ;;  %6862 = vmatpush3.msra.mxu0 %v3466_v20  ;;  %v8016_v34 = vld [vmem:[%s7553_s21 + $0x100] sm:$0xff] }
 0x126   : > { %6595 = vmatmul.mubr.f32.gmra.mxu1 %v7964_v27  ;;  %v7978_v7 = vpop.f32.mrf.mxu0  ;;  %6863 = vmatprep.subr.mxu0 %v3465_v51 }
 0x127   : > { %6597 = vmatprep.mubr.f32.mxu1 %v7970_v54  ;;  %v7984_v15 = vpop.f32.mrf.mxu1  ;;  %6760 = vmatpush3.msra.mxu1 %v2949_v45  ;;  %v8098_v45 = vld [vmem:[%s7553_s21 + $0x148] sm:$0xff] }
 0x128   : > { %6699 = vmatmul.mubr.f32.gmra.mxu0 %v7794_v39  ;;  %v7990_v28 = vpop.f32.mrf.mxu0  ;;  %6761 = vmatprep.subr.mxu1 %v2948_v1  ;;  %9235 = vst [vmem:[#allocation24_spill] sm:$0xff] %v8098_v45 }
 0x129   : > { %6701 = vmatprep.mubr.f32.mxu0 %v7801_v49  ;;  %v7993_v35 = vpop.f32.mrf.mxu1  ;;  %6864 = vmatpush3.msra.mxu0 %v3465_v51  ;;  %v3462_v49 = vld [vmem:[#allocation6 + $0x308] sm:$0xff]  ;;  %v9236_v51 = vld [vmem:[#allocation16_spill] sm:$0xff] }
 0x12a   : > { %6598 = vmatmul.mubr.f32.gmra.mxu1 %v7982_v10  ;;  %v7996_v43 = vpop.f32.mrf.mxu0  ;;  %6865 = vmatprep.subr.mxu0 %v3464_v18 }
 0x12b   : > { %6600 = vmatprep.mubr.f32.mxu1 %v7988_v24  ;;  %6762 = vmatpush3.msra.mxu1 %v2948_v1 }
 0x12c   : > { %6702 = vmatmul.mubr.f32.gmra.mxu0 %v7804_v55  ;;  %v8006_v5 = vpop.f32.mrf.mxu1  ;;  %6763 = vmatprep.subr.mxu1 %v2947_v38  ;;  %v8022_v55 = vld [vmem:[%s7553_s21 + $0x108] sm:$0xff] }
 0x12d   : > { %6704 = vmatprep.mubr.f32.mxu0 %v7811_v4  ;;  %v8009_v11 = vpop.f32.mrf.mxu0  ;;  %6866 = vmatpush3.msra.mxu0 %v3464_v18 }
 0x12e   : > { %6601 = vmatmul.mubr.f32.gmra.mxu1 %v8000_v48  ;;  %v8012_v23 = vpop.f32.mrf.mxu1  ;;  %6867 = vmatprep.subr.mxu0 %v3463_v58 }
 0x12f   : > { %6603 = vmatprep.mubr.f32.mxu1 %v8004_v61  ;;  %v8018_v39 = vpop.f32.mrf.mxu0  ;;  %6764 = vmatpush3.msra.mxu1 %v2947_v38  ;;  %v8108_v38 = vld [vmem:[%s7553_s21 + $0x150] sm:$0xff] }
 0x130   : > { %6705 = vmatmul.mubr.f32.gmra.mxu0 %v7814_v12  ;;  %v8024_v4 = vpop.f32.mrf.mxu1  ;;  %6765 = vmatprep.subr.mxu1 %v2946_v19  ;;  %v8034_v12 = vld [vmem:[%s7553_s21 + $0x110] sm:$0xff]  ;;  %9238 = vst [vmem:[#allocation25_spill] sm:$0xff] %v8108_v38 }
 0x131   : > { %6707 = vmatprep.mubr.f32.mxu0 %v7821_v25  ;;  %6868 = vmatpush3.msra.mxu0 %v3463_v58  ;;  %v8040_v25 = vld [vmem:[%s7553_s21 + $0x118] sm:$0xff] }
 0x132   : > { %6604 = vmatmul.mubr.f32.gmra.mxu1 %v8016_v34  ;;  %v8028_v14 = vpop.f32.mrf.mxu0  ;;  %v8030_v8 = vpop.f32.mrf.mxu1  ;;  %6869 = vmatprep.subr.mxu0 %v3462_v49  ;;  %v9239_v58 = vld [vmem:[#allocation17_spill] sm:$0xff] }
 0x133   : > { %6606 = vmatprep.mubr.f32.mxu1 %v8022_v55  ;;  %6766 = vmatpush3.msra.mxu1 %v2946_v19 }
 0x134   : > { %6708 = vmatmul.mubr.f32.gmra.mxu0 %v7824_v32  ;;  %v8037_v29 = vpop.f32.mrf.mxu0  ;;  %6767 = vmatprep.subr.mxu1 %v2945_v3  ;;  %v8052_v32 = vld [vmem:[%s7553_s21 + $0x120] sm:$0xff] }
 0x135   : > { %6710 = vmatprep.mubr.f32.mxu0 %v7831_v47  ;;  %v8043_v36 = vpop.f32.mrf.mxu1  ;;  %6870 = vmatpush3.msra.mxu0 %v3462_v49  ;;  %v8056_v47 = vld [vmem:[#allocation6 + $0x478] sm:$0xff]  ;;  %v8114_v49 = vld [vmem:[%s7553_s21 + $0x158] sm:$0xff] }
 0x136   : > { %6607 = vmatmul.mubr.f32.gmra.mxu1 %v8034_v12  ;;  %v8048_v26 = vpop.f32.mrf.mxu0  ;;  %6871 = vmatprep.subr.mxu0 %v3461_v52  ;;  %9240 = vst [vmem:[#allocation17_spill] sm:$0xff] %v8114_v49 }
 0x137   : > { %6609 = vmatprep.mubr.f32.mxu1 %v8040_v25  ;;  %v8054_v30 = vpop.f32.mrf.mxu1  ;;  %6768 = vmatpush3.msra.mxu1 %v2945_v3  ;;  %v9241_v3 = vld [vmem:[#allocation18_spill] sm:$0xff] }
 0x138   : > { %9224 = vst [vmem:[#allocation21_spill] sm:$0xff] %v8054_v30  ;;  %6711 = vmatmul.mubr.f32.gmra.mxu0 %v7834_v59  ;;  %v8059_v33 = vpop.f32.mrf.mxu0  ;;  %6945 = vmatprep.subr.mxu1 %v8045_v42  ;;  %v8072_v59 = vld [vmem:[%s7553_s21 + $0x130] sm:$0xff] }
 0x139   : > { %6713 = vmatprep.mubr.f32.mxu0 %v9225_v40  ;;  %6872 = vmatpush3.msra.mxu0 %v3461_v52 }
 0x13a   : > { %6610 = vmatmul.mubr.f32.gmra.mxu1 %v8052_v32  ;;  %v8067_v44 = vpop.f32.mrf.mxu1  ;;  %7049 = vmatprep.subr.mxu0 %v8056_v47 }
 0x13b   : > { %9226 = vst [vmem:[#allocation12_spill] sm:$0xff] %v8067_v44  ;;  %6612 = vmatprep.mubr.f32.mxu1 %v8062_v37  ;;  %v8074_v46 = vpop.f32.mrf.mxu0 }
 0x13c   : > { %6714 = vmatmul.mubr.f32.gmra.mxu0 %v9227_v50  ;;  %v8077_v53 = vpop.f32.mrf.mxu1  ;;  %v8124_v50 = vld [vmem:[%s7553_s21 + $0x160] sm:$0xff] }
 0x13d   : > { %9228 = vst [vmem:[#allocation13_spill] sm:$0xff] %v8077_v53  ;;  %6716 = vmatprep.mubr.f32.mxu0 %v9230_v60  ;;  %v8083_v0 = vpop.f32.mrf.mxu0  ;;  %9243 = vst [vmem:[#allocation26_spill] sm:$0xff] %v8124_v50  ;;  %v9244_v60 = vld [vmem:[#allocation19_spill] sm:$0xff] }
 0x13e   : > { %6613 = vmatmul.mubr.f32.gmra.mxu1 %v8072_v59  ;;  %v8086_v2 = vpop.f32.mrf.mxu1 }
 0x13f   : > { %9231 = vst [vmem:[#allocation14_spill] sm:$0xff] %v8086_v2  ;;  %6615 = vmatprep.mubr.f32.mxu1 %v8080_v57  ;;  %v5493_v2 = vld [vmem:[%s7553_s21 + $0x30] sm:$0xff] }
 0x140   : > { %6717 = vmatmul.mubr.f32.gmra.mxu0 %v9233_v9  ;;  %v8093_v13 = vpop.f32.mrf.mxu0  ;;  %v8095_v20 = vpop.f32.mrf.mxu1 }
 0x141   : > { %9234 = vst [vmem:[#allocation15_spill] sm:$0xff] %v8095_v20  ;;  %6719 = vmatprep.mubr.f32.mxu0 %v9236_v51  ;;  %v8130_v51 = vld [vmem:[%s7553_s21 + $0x168] sm:$0xff] }
 0x142   : > { %6616 = vmatmul.mubr.f32.gmra.mxu1 %v8090_v6  ;;  %v8102_v1 = vpop.f32.mrf.mxu0  ;;  %9246 = vst [vmem:[#allocation27_spill] sm:$0xff] %v8130_v51 }
 0x143   : > { %6618 = vmatprep.mubr.f32.mxu1 %v8098_v45  ;;  %v8105_v18 = vpop.f32.mrf.mxu1  ;;  %v3991_v45 = vld [vmem:[#allocation6 + $0x3f0] sm:$0xff] }
 0x144   : > { %9237 = vst [vmem:[#allocation16_spill] sm:$0xff] %v8105_v18  ;;  %6720 = vmatmul.mubr.f32.gmra.mxu0 %v9239_v58  ;;  %v8111_v19 = vpop.f32.mrf.mxu0  ;;  %v9247_v58 = vld [vmem:[#allocation20_spill] sm:$0xff] }
 0x145   : > { %6722 = vmatprep.mubr.f32.mxu0 %v9241_v3  ;;  %v8117_v52 = vpop.f32.mrf.mxu1 }
 0x146   : > { %9242 = vst [vmem:[#allocation18_spill] sm:$0xff] %v8117_v52  ;;  %6619 = vmatmul.mubr.f32.gmra.mxu1 %v8108_v38  ;;  %v8120_v40 = vpop.f32.mrf.mxu0 }
 0x147   : > { %6621 = vmatprep.mubr.f32.mxu1 %v8114_v49  ;;  %v5445_v49 = vld [vmem:[%s7553_s21 + $0x1a] sm:$0xff] }
 0x148   : > { %6723 = vmatmul.mubr.f32.gmra.mxu0 %v9244_v60  ;;  %v8127_v9 = vpop.f32.mrf.mxu1  ;;  %v8142_v60 = vld [vmem:[%s7553_s21 + $0x170] sm:$0xff] }
 0x149   : > { %9245 = vst [vmem:[#allocation19_spill] sm:$0xff] %v8127_v9  ;;  %6725 = vmatprep.mubr.f32.mxu0 %v9247_v58  ;;  %v8133_v3 = vpop.f32.mrf.mxu0  ;;  %9249 = vst [vmem:[#allocation28_spill] sm:$0xff] %v8142_v60  ;;  %v8148_v58 = vld [vmem:[%s7553_s21 + $0x178] sm:$0xff] }
 0x14a   : > { %6622 = vmatmul.mubr.f32.gmra.mxu1 %v8124_v50  ;;  %v8136_v52 = vpop.f32.mrf.mxu1  ;;  %9251 = vst [vmem:[#allocation30_spill] sm:$0xff] %v8148_v58 }
 0x14b   : > { %9248 = vst [vmem:[#allocation20_spill] sm:$0xff] %v8136_v52  ;;  %v8138_v18 = vpop.f32.mrf.mxu0  ;;  %6624 = vmatprep.mubr.f32.mxu1 %v8130_v51  ;;  %v8158_v51 = vld [vmem:[%s7553_s21 + $0x180] sm:$0xff] }
 0x14c   : > { %6726 = vmatmul.mubr.f32.gmra.mxu0 %v7890_v21  ;;  %v8145_v9 = vpop.f32.mrf.mxu1  ;;  %9253 = vst [vmem:[#allocation32_spill] sm:$0xff] %v8158_v51 }
 0x14d   : > { %9250 = vst [vmem:[#allocation29_spill] sm:$0xff] %v8145_v9  ;;  %6728 = vmatprep.mubr.f32.mxu0 %v7897_v17  ;;  %v8164_v9 = vld [vmem:[%s7553_s21 + $0x188] sm:$0xff] }
 0x14e   : > { %6625 = vmatmul.mubr.f32.gmra.mxu1 %v8142_v60  ;;  %v8152_v52 = vpop.f32.mrf.mxu0  ;;  %v8154_v50 = vpop.f32.mrf.mxu1  ;;  %9254 = vst [vmem:[#allocation33_spill] sm:$0xff] %v8164_v9  ;;  %v5442_v60 = vld [vmem:[%s7553_s21 + $0x181] sm:$0xff] }
 0x14f   : > { %9252 = vst [vmem:[#allocation31_spill] sm:$0xff] %v8154_v50  ;;  %6627 = vmatprep.mubr.f32.mxu1 %v8148_v58  ;;  %v5443_v58 = vld [vmem:[%s7553_s21 + $0x189] sm:$0xff] }
 0x150   : > { %6729 = vmatmul.mubr.f32.gmra.mxu0 %v7900_v41  ;;  %v8161_v21 = vpop.f32.mrf.mxu0  ;;  %v8178_v41 = vld [vmem:[%s7553_s21 + $0x190] sm:$0xff] }
 0x151   : > { %v8166_v17 = vpop.f32.mrf.mxu1  ;;  %6731 = vmatprep.mubr.f32.mxu0 %v7907_v63  ;;  %9257 = vst [vmem:[#allocation36_spill] sm:$0xff] %v8178_v41  ;;  %v5444_v63 = vld [vmem:[%s7553_s21 + $0x191] sm:$0xff] }
 0x152   : > { %9255 = vst [vmem:[#allocation34_spill] sm:$0xff] %v8166_v17  ;;  %6628 = vmatmul.mubr.f32.gmra.mxu1 %v8158_v51  ;;  %v8171_v50 = vpop.f32.mrf.mxu0 }
 0x153   : > { %v8174_v20 = vpop.f32.mrf.mxu1  ;;  %6630 = vmatprep.mubr.f32.mxu1 %v8164_v9 }
 0x154   : > { %9256 = vst [vmem:[#allocation35_spill] sm:$0xff] %v8174_v20  ;;  %6732 = vmatmul.mubr.f32.gmra.mxu0 %v5442_v60  ;;  %v8180_v17 = vpop.f32.mrf.mxu0  ;;  %v5446_v20 = vld [vmem:[%s7553_s21 + $0x22] sm:$0xff]  ;;  %v5447_v60 = vld [vmem:[%s7553_s21 + $0x2a] sm:$0xff] }
 0x155   : > { %6734 = vmatprep.mubr.f32.mxu0 %v5443_v58  ;;  %v5494_v58 = vld [vmem:[%s7553_s21 + $0x38] sm:$0xff] }
 0x156   : > { %v8184_v51 = vpop.f32.mrf.mxu1  ;;  %6631 = vmatmul.mubr.f32.gmra.mxu1 %v8178_v41 }
 0x157   : > { %9258 = vst [vmem:[#allocation37_spill] sm:$0xff] %v8184_v51  ;;  %v8188_v38 = vpop.f32.mrf.mxu0  ;;  %6769 = vmatprep.mubr.f32.mxu1 %v5445_v49  ;;  %v5495_v51 = vld [vmem:[%s7553_s21 + $0x40] sm:$0xff]  ;;  %v8201_v49 = vld [vmem:[%s7553_s21 + $0x32] sm:$0xff] }
 0x158   : > { %6735 = vmatmul.mubr.f32.gmra.mxu0 %v5444_v63  ;;  %v8191_v9 = vpop.f32.mrf.mxu1  ;;  %v4507_v63 = vld [vmem:[#allocation6 + $0x470] sm:$0xff] }
 0x159   : > { %9259 = vst [vmem:[#allocation38_spill] sm:$0xff] %v8191_v9  ;;  %v8194_v53 = vpop.f32.mrf.mxu0  ;;  %6873 = vmatprep.mubr.f32.mxu0 %v5493_v2  ;;  %v8204_v2 = vld [vmem:[%s7553_s21 + $0x3a] sm:$0xff] }
 0x15a   : > { %v6355_v44 = vpop.f32.mrf.mxu1  ;;  %6770 = vmatmul.mubr.f32.vlgmr.msra.gmra.mxu1 %v5446_v20  ;;  %9260 = vst [vmem:[#allocation39_spill] sm:$0xff] %v8204_v2 }
 0x15b   : > { %v1203_v41 = vadd.f32 %v6355_v44, %v7972_v56  ;;  %6946 = vmatpush3.msra.mxu1 %v8045_v42  ;;  %6772 = vmatprep.mubr.f32.mxu1 %v5447_v60  ;;  %v5496_v56 = vld [vmem:[%s7553_s21 + $0x48] sm:$0xff]  ;;  %v3990_v42 = vld [vmem:[#allocation6 + $0x3e8] sm:$0xff] }
 0x15c   : > { %v6459_v9 = vpop.f32.mrf.mxu0  ;;  %6874 = vmatmul.mubr.f32.vlgmr.msra.gmra.mxu0 %v5494_v58  ;;  %v963_v6 = vpop.f32.mrf.mxu1  ;;  %6947 = vmatprep.subr.mxu1 %v3991_v45  ;;  %v5497_v58 = vld [vmem:[%s7553_s21 + $0x50] sm:$0xff] }
 0x15d   : > { %v8206_v30 = vadd.f32 %v6459_v9, %v1203_v41  ;;  %v1202_v20 = vadd.f32 %v963_v6, %v7978_v7  ;;  %7050 = vmatpush3.msra.mxu0 %v8056_v47  ;;  %6876 = vmatprep.mubr.f32.mxu0 %v5495_v51  ;;  %v8218_v7 = vld [vmem:[%s7553_s21 + $0x42] sm:$0xff]  ;;  %v4506_v47 = vld [vmem:[#allocation6 + $0x468] sm:$0xff] }
 0x15e   : > { %v1479_v44 = vpop.f32.mrf.mxu0  ;;  %v6358_v60 = vpop.f32.mrf.mxu1  ;;  %6773 = vmatmul.mubr.f32.gmra.mxu1 %v8201_v49  ;;  %7051 = vmatprep.subr.mxu0 %v4507_v63  ;;  %v8221_v41 = vld [vmem:[%s7553_s21 + $0x4a] sm:$0xff] }
 0x15f   : > { %9261 = vst [vmem:[#allocation40_spill] sm:$0xff] %v8206_v30  ;;  %v8213_v57 = vadd.f32 %v1479_v44, %v1202_v20  ;;  %v1205_v9 = vadd.f32 %v6358_v60, %v7990_v28  ;;  %6775 = vmatprep.mubr.f32.mxu1 %v8204_v2  ;;  %6948 = vmatpush3.msra.mxu1 %v3991_v45  ;;  %9263 = vst [vmem:[#allocation42_spill] sm:$0xff] %v8221_v41  ;;  %v5498_v28 = vld [vmem:[%s7553_s21 + $0x58] sm:$0xff]  ;;  %v3989_v45 = vld [vmem:[#allocation6 + $0x3e0] sm:$0xff] }
 0x160   : > { %v6462_v6 = vpop.f32.mrf.mxu0  ;;  %6877 = vmatmul.mubr.f32.gmra.mxu0 %v5496_v56  ;;  %v973_v51 = vpop.f32.mrf.mxu1  ;;  %6949 = vmatprep.subr.mxu1 %v3990_v42 }
 0x161   : > { %9262 = vst [vmem:[#allocation41_spill] sm:$0xff] %v8213_v57  ;;  %v8223_v30 = vadd.f32 %v6462_v6, %v1205_v9  ;;  %v1204_v20 = vadd.f32 %v973_v51, %v7996_v43  ;;  %6879 = vmatprep.mubr.f32.mxu0 %v5497_v58  ;;  %7052 = vmatpush3.msra.mxu0 %v4507_v63  ;;  %v5499_v57 = vld [vmem:[%s7553_s21 + $0x60] sm:$0xff]  ;;  %v8234_v9 = vld [vmem:[%s7553_s21 + $0x52] sm:$0xff] }
 0x162   : > { %v1489_v44 = vpop.f32.mrf.mxu0  ;;  %v6361_v60 = vpop.f32.mrf.mxu1  ;;  %6776 = vmatmul.mubr.f32.gmra.mxu1 %v8218_v7  ;;  %7053 = vmatprep.subr.mxu0 %v4506_v47  ;;  %v4505_v43 = vld [vmem:[#allocation6 + $0x460] sm:$0xff]  ;;  %v8237_v6 = vld [vmem:[%s7553_s21 + $0x5a] sm:$0xff] }
 0x163   : > { %v8229_v56 = vadd.f32 %v1489_v44, %v1204_v20  ;;  %v1207_v2 = vadd.f32 %v6361_v60, %v8009_v11  ;;  %6778 = vmatprep.mubr.f32.mxu1 %v8221_v41  ;;  %6950 = vmatpush3.msra.mxu1 %v3990_v42  ;;  %9265 = vst [vmem:[#allocation44_spill] sm:$0xff] %v8237_v6  ;;  %v5500_v11 = vld [vmem:[%s7553_s21 + $0x68] sm:$0xff] }
 0x164   : > { %v6465_v63 = vpop.f32.mrf.mxu0  ;;  %6880 = vmatmul.mubr.f32.gmra.mxu0 %v5498_v28  ;;  %v983_v58 = vpop.f32.mrf.mxu1  ;;  %6951 = vmatprep.subr.mxu1 %v3989_v45  ;;  %v3988_v44 = vld [vmem:[#allocation6 + $0x3d8] sm:$0xff] }
 0x165   : > { %9264 = vst [vmem:[#allocation43_spill] sm:$0xff] %v8229_v56  ;;  %v8239_v51 = vadd.f32 %v6465_v63, %v1207_v2  ;;  %v1206_v20 = vadd.f32 %v983_v58, %v8018_v39  ;;  %6882 = vmatprep.mubr.f32.mxu0 %v5499_v57  ;;  %7054 = vmatpush3.msra.mxu0 %v4506_v47  ;;  %v5501_v56 = vld [vmem:[%s7553_s21 + $0x70] sm:$0xff]  ;;  %v8250_v2 = vld [vmem:[%s7553_s21 + $0x62] sm:$0xff] }
 0x166   : > { %v1499_v60 = vpop.f32.mrf.mxu0  ;;  %v6364_v42 = vpop.f32.mrf.mxu1  ;;  %6779 = vmatmul.mubr.f32.gmra.mxu1 %v8234_v9  ;;  %7055 = vmatprep.subr.mxu0 %v4505_v43  ;;  %v4504_v39 = vld [vmem:[#allocation6 + $0x458] sm:$0xff] }
 0x167   : > { %v8245_v28 = vadd.f32 %v1499_v60, %v1206_v20  ;;  %v1209_v41 = vadd.f32 %v6364_v42, %v8028_v14  ;;  %6781 = vmatprep.mubr.f32.mxu1 %v8237_v6  ;;  %6952 = vmatpush3.msra.mxu1 %v3989_v45  ;;  %v8253_v63 = vld [vmem:[%s7553_s21 + $0x6a] sm:$0xff]  ;;  %v5502_v14 = vld [vmem:[%s7553_s21 + $0x78] sm:$0xff] }
 0x168   : > { %v6468_v57 = vpop.f32.mrf.mxu0  ;;  %6883 = vmatmul.mubr.f32.gmra.mxu0 %v5500_v11  ;;  %v993_v47 = vpop.f32.mrf.mxu1  ;;  %9267 = vst [vmem:[#allocation46_spill] sm:$0xff] %v8253_v63  ;;  %6953 = vmatprep.subr.mxu1 %v3988_v44  ;;  %v3987_v60 = vld [vmem:[#allocation6 + $0x3d0] sm:$0xff] }
 0x169   : > { %9266 = vst [vmem:[#allocation45_spill] sm:$0xff] %v8245_v28  ;;  %v8255_v58 = vadd.f32 %v6468_v57, %v1209_v41  ;;  %v1208_v20 = vadd.f32 %v993_v47, %v8037_v29  ;;  %6885 = vmatprep.mubr.f32.mxu0 %v5501_v56  ;;  %7056 = vmatpush3.msra.mxu0 %v4505_v43  ;;  %v5503_v28 = vld [vmem:[%s7553_s21 + $0x80] sm:$0xff]  ;;  %v8266_v41 = vld [vmem:[%s7553_s21 + $0x72] sm:$0xff] }
 0x16a   : > { %v1509_v42 = vpop.f32.mrf.mxu0  ;;  %v6367_v45 = vpop.f32.mrf.mxu1  ;;  %6782 = vmatmul.mubr.f32.gmra.mxu1 %v8250_v2  ;;  %7057 = vmatprep.subr.mxu0 %v4504_v39  ;;  %v4503_v29 = vld [vmem:[#allocation6 + $0x450] sm:$0xff] }
 0x16b   : > { %v8261_v11 = vadd.f32 %v1509_v42, %v1208_v20  ;;  %v1211_v6 = vadd.f32 %v6367_v45, %v8048_v26  ;;  %6784 = vmatprep.mubr.f32.mxu1 %v8253_v63  ;;  %6954 = vmatpush3.msra.mxu1 %v3988_v44  ;;  %v8269_v57 = vld [vmem:[%s7553_s21 + $0x7a] sm:$0xff]  ;;  %v5504_v26 = vld [vmem:[%s7553_s21 + $0x88] sm:$0xff] }
 0x16c   : > { %v6471_v56 = vpop.f32.mrf.mxu0  ;;  %6886 = vmatmul.mubr.f32.gmra.mxu0 %v5502_v14  ;;  %v1003_v43 = vpop.f32.mrf.mxu1  ;;  %9269 = vst [vmem:[#allocation48_spill] sm:$0xff] %v8269_v57  ;;  %6955 = vmatprep.subr.mxu1 %v3987_v60  ;;  %v3986_v42 = vld [vmem:[#allocation6 + $0x3c8] sm:$0xff] }
 0x16d   : > { %9268 = vst [vmem:[#allocation47_spill] sm:$0xff] %v8261_v11  ;;  %v8271_v47 = vadd.f32 %v6471_v56, %v1211_v6  ;;  %v1210_v20 = vadd.f32 %v1003_v43, %v8059_v33  ;;  %6888 = vmatprep.mubr.f32.mxu0 %v5503_v28  ;;  %7058 = vmatpush3.msra.mxu0 %v4504_v39  ;;  %v5505_v11 = vld [vmem:[%s7553_s21 + $0x90] sm:$0xff]  ;;  %v8282_v6 = vld [vmem:[%s7553_s21 + $0x82] sm:$0xff] }
 0x16e   : > { %v1519_v45 = vpop.f32.mrf.mxu0  ;;  %v6370_v44 = vpop.f32.mrf.mxu1  ;;  %6785 = vmatmul.mubr.f32.gmra.mxu1 %v8266_v41  ;;  %7059 = vmatprep.subr.mxu0 %v4503_v29  ;;  %v4502_v33 = vld [vmem:[#allocation6 + $0x448] sm:$0xff] }
 0x16f   : > { %v8277_v14 = vadd.f32 %v1519_v45, %v1210_v20  ;;  %v1213_v63 = vadd.f32 %v6370_v44, %v8074_v46  ;;  %6787 = vmatprep.mubr.f32.mxu1 %v8269_v57  ;;  %6956 = vmatpush3.msra.mxu1 %v3987_v60  ;;  %v8285_v56 = vld [vmem:[%s7553_s21 + $0x8a] sm:$0xff]  ;;  %v5506_v46 = vld [vmem:[%s7553_s21 + $0x98] sm:$0xff] }
 0x170   : > { %v6474_v28 = vpop.f32.mrf.mxu0  ;;  %6889 = vmatmul.mubr.f32.gmra.mxu0 %v5504_v26  ;;  %v1013_v39 = vpop.f32.mrf.mxu1  ;;  %9271 = vst [vmem:[#allocation50_spill] sm:$0xff] %v8285_v56  ;;  %6957 = vmatprep.subr.mxu1 %v3986_v42  ;;  %v3985_v45 = vld [vmem:[#allocation6 + $0x3c0] sm:$0xff] }
 0x171   : > { %9270 = vst [vmem:[#allocation49_spill] sm:$0xff] %v8277_v14  ;;  %v8287_v43 = vadd.f32 %v6474_v28, %v1213_v63  ;;  %v1212_v20 = vadd.f32 %v1013_v39, %v8083_v0  ;;  %6891 = vmatprep.mubr.f32.mxu0 %v5505_v11  ;;  %7060 = vmatpush3.msra.mxu0 %v4503_v29  ;;  %v5507_v14 = vld [vmem:[%s7553_s21 + $0xa0] sm:$0xff]  ;;  %v8298_v63 = vld [vmem:[%s7553_s21 + $0x92] sm:$0xff] }
 0x172   : > { %v1529_v44 = vpop.f32.mrf.mxu0  ;;  %v6373_v60 = vpop.f32.mrf.mxu1  ;;  %6788 = vmatmul.mubr.f32.gmra.mxu1 %v8282_v6  ;;  %7061 = vmatprep.subr.mxu0 %v4502_v33  ;;  %v4501_v0 = vld [vmem:[#allocation6 + $0x440] sm:$0xff]  ;;  %v8301_v28 = vld [vmem:[%s7553_s21 + $0x9a] sm:$0xff] }
 0x173   : > { %v8293_v26 = vadd.f32 %v1529_v44, %v1212_v20  ;;  %v1215_v57 = vadd.f32 %v6373_v60, %v8093_v13  ;;  %6790 = vmatprep.mubr.f32.mxu1 %v8285_v56  ;;  %6958 = vmatpush3.msra.mxu1 %v3986_v42  ;;  %v5508_v13 = vld [vmem:[%s7553_s21 + $0xa8] sm:$0xff] }
 0x174   : > { %v6477_v11 = vpop.f32.mrf.mxu0  ;;  %6892 = vmatmul.mubr.f32.gmra.mxu0 %v5506_v46  ;;  %v1023_v29 = vpop.f32.mrf.mxu1  ;;  %6959 = vmatprep.subr.mxu1 %v3985_v45  ;;  %v3984_v44 = vld [vmem:[#allocation6 + $0x3b8] sm:$0xff] }
 0x175   : > { %9272 = vst [vmem:[#allocation51_spill] sm:$0xff] %v8293_v26  ;;  %v8303_v39 = vadd.f32 %v6477_v11, %v1215_v57  ;;  %v1214_v20 = vadd.f32 %v1023_v29, %v8102_v1  ;;  %6894 = vmatprep.mubr.f32.mxu0 %v5507_v14  ;;  %7062 = vmatpush3.msra.mxu0 %v4502_v33  ;;  %v5509_v26 = vld [vmem:[%s7553_s21 + $0xb0] sm:$0xff]  ;;  %v8314_v57 = vld [vmem:[%s7553_s21 + $0xa2] sm:$0xff] }
 0x176   : > { %v1539_v60 = vpop.f32.mrf.mxu0  ;;  %v6376_v42 = vpop.f32.mrf.mxu1  ;;  %6791 = vmatmul.mubr.f32.gmra.mxu1 %v8298_v63  ;;  %7063 = vmatprep.subr.mxu0 %v4501_v0  ;;  %v4500_v1 = vld [vmem:[#allocation6 + $0x438] sm:$0xff] }
 0x177   : > { %v8309_v46 = vadd.f32 %v1539_v60, %v1214_v20  ;;  %v1217_v56 = vadd.f32 %v6376_v42, %v8111_v19  ;;  %6793 = vmatprep.mubr.f32.mxu1 %v8301_v28  ;;  %6960 = vmatpush3.msra.mxu1 %v3985_v45  ;;  %v8317_v11 = vld [vmem:[%s7553_s21 + $0xaa] sm:$0xff]  ;;  %v5510_v60 = vld [vmem:[%s7553_s21 + $0xb8] sm:$0xff] }
 0x178   : > { %v6480_v14 = vpop.f32.mrf.mxu0  ;;  %6895 = vmatmul.mubr.f32.gmra.mxu0 %v5508_v13  ;;  %v1033_v33 = vpop.f32.mrf.mxu1  ;;  %6961 = vmatprep.subr.mxu1 %v3984_v44  ;;  %v3983_v19 = vld [vmem:[#allocation6 + $0x3b0] sm:$0xff] }
 0x179   : > { %9273 = vst [vmem:[#allocation52_spill] sm:$0xff] %v8309_v46  ;;  %v8319_v29 = vadd.f32 %v6480_v14, %v1217_v56  ;;  %v1216_v20 = vadd.f32 %v1033_v33, %v8120_v40  ;;  %6897 = vmatprep.mubr.f32.mxu0 %v5509_v26  ;;  %7064 = vmatpush3.msra.mxu0 %v4501_v0  ;;  %v8329_v56 = vld [vmem:[%s7553_s21 + $0xb2] sm:$0xff]  ;;  %v8332_v14 = vld [vmem:[%s7553_s21 + $0xba] sm:$0xff] }
 0x17a   : > { %v1549_v42 = vpop.f32.mrf.mxu0  ;;  %v6379_v46 = vpop.f32.mrf.mxu1  ;;  %6794 = vmatmul.mubr.f32.gmra.mxu1 %v8314_v57  ;;  %7065 = vmatprep.subr.mxu0 %v4500_v1  ;;  %v4499_v40 = vld [vmem:[#allocation6 + $0x430] sm:$0xff] }
 0x17b   : > { %v8324_v45 = vadd.f32 %v1549_v42, %v1216_v20  ;;  %v1219_v13 = vadd.f32 %v6379_v46, %v8133_v3  ;;  %6796 = vmatprep.mubr.f32.mxu1 %v8317_v11  ;;  %6962 = vmatpush3.msra.mxu1 %v3984_v44  ;;  %v3982_v3 = vld [vmem:[#allocation6 + $0x3a8] sm:$0xff] }
 0x17c   : > { %v6483_v26 = vpop.f32.mrf.mxu0  ;;  %6898 = vmatmul.mubr.f32.gmra.mxu0 %v5510_v60  ;;  %v1043_v0 = vpop.f32.mrf.mxu1  ;;  %6963 = vmatprep.subr.mxu1 %v3983_v19 }
 0x17d   : > { %v8334_v33 = vadd.f32 %v6483_v26, %v1219_v13  ;;  %v1218_v20 = vadd.f32 %v1043_v0, %v8138_v18  ;;  %6900 = vmatprep.mubr.f32.mxu0 %v7954_v16  ;;  %7066 = vmatpush3.msra.mxu0 %v4500_v1  ;;  %v8344_v13 = vld [vmem:[%s7553_s21 + $0xc2] sm:$0xff]  ;;  %v4498_v18 = vld [vmem:[#allocation6 + $0x428] sm:$0xff] }
 0x17e   : > { %v1559_v46 = vpop.f32.mrf.mxu0  ;;  %v6382_v42 = vpop.f32.mrf.mxu1  ;;  %6797 = vmatmul.mubr.f32.gmra.mxu1 %v8329_v56  ;;  %7067 = vmatprep.subr.mxu0 %v4499_v40  ;;  %v8348_v1 = vld [vmem:[%s7553_s21 + $0xca] sm:$0xff] }
 0x17f   : > { %v8339_v44 = vadd.f32 %v1559_v46, %v1218_v20  ;;  %v1221_v60 = vadd.f32 %v6382_v42, %v8152_v52  ;;  %6799 = vmatprep.mubr.f32.mxu1 %v8332_v14  ;;  %6964 = vmatpush3.msra.mxu1 %v3983_v19  ;;  %v3981_v52 = vld [vmem:[#allocation6 + $0x3a0] sm:$0xff] }
 0x180   : > { %v6486_v26 = vpop.f32.mrf.mxu0  ;;  %6901 = vmatmul.mubr.f32.gmra.mxu0 %v7958_v22  ;;  %v1053_v16 = vpop.f32.mrf.mxu1  ;;  %6965 = vmatprep.subr.mxu1 %v3982_v3 }
 0x181   : > { %v8350_v0 = vadd.f32 %v6486_v26, %v1221_v60  ;;  %v1220_v20 = vadd.f32 %v1053_v16, %v8161_v21  ;;  %6903 = vmatprep.mubr.f32.mxu0 %v7964_v27  ;;  %7068 = vmatpush3.msra.mxu0 %v4499_v40  ;;  %v8360_v60 = vld [vmem:[%s7553_s21 + $0xd2] sm:$0xff]  ;;  %v8364_v40 = vld [vmem:[%s7553_s21 + $0xda] sm:$0xff] }
 0x182   : > { %v1569_v46 = vpop.f32.mrf.mxu0  ;;  %v6385_v19 = vpop.f32.mrf.mxu1  ;;  %6800 = vmatmul.mubr.f32.gmra.mxu1 %v8344_v13  ;;  %7069 = vmatprep.subr.mxu0 %v4498_v18  ;;  %v4497_v21 = vld [vmem:[#allocation6 + $0x420] sm:$0xff] }
 0x183   : > { %v8355_v22 = vadd.f32 %v1569_v46, %v1220_v20  ;;  %v1223_v42 = vadd.f32 %v6385_v19, %v8171_v50  ;;  %6802 = vmatprep.mubr.f32.mxu1 %v8348_v1  ;;  %6966 = vmatpush3.msra.mxu1 %v3982_v3  ;;  %v3980_v50 = vld [vmem:[#allocation6 + $0x398] sm:$0xff] }
 0x184   : > { %v6489_v26 = vpop.f32.mrf.mxu0  ;;  %6904 = vmatmul.mubr.f32.gmra.mxu0 %v7970_v54  ;;  %v1063_v27 = vpop.f32.mrf.mxu1  ;;  %6967 = vmatprep.subr.mxu1 %v3981_v52 }
 0x185   : > { %v8366_v16 = vadd.f32 %v6489_v26, %v1223_v42  ;;  %v1222_v20 = vadd.f32 %v1063_v27, %v8180_v17  ;;  %6906 = vmatprep.mubr.f32.mxu0 %v7982_v10  ;;  %7070 = vmatpush3.msra.mxu0 %v4498_v18  ;;  %v8376_v42 = vld [vmem:[%s7553_s21 + $0xe2] sm:$0xff]  ;;  %v8380_v18 = vld [vmem:[%s7553_s21 + $0xea] sm:$0xff] }
 0x186   : > { %v1579_v46 = vpop.f32.mrf.mxu0  ;;  %v6388_v3 = vpop.f32.mrf.mxu1  ;;  %6803 = vmatmul.mubr.f32.gmra.mxu1 %v8360_v60  ;;  %7071 = vmatprep.subr.mxu0 %v4497_v21  ;;  %v4496_v17 = vld [vmem:[#allocation6 + $0x418] sm:$0xff] }
 0x187   : > { %v8371_v54 = vadd.f32 %v1579_v46, %v1222_v20  ;;  %v1225_v19 = vadd.f32 %v6388_v3, %v8188_v38  ;;  %6805 = vmatprep.mubr.f32.mxu1 %v8364_v40  ;;  %6968 = vmatpush3.msra.mxu1 %v3981_v52  ;;  %v3979_v38 = vld [vmem:[#allocation6 + $0x390] sm:$0xff] }
 0x188   : > { %v6492_v26 = vpop.f32.mrf.mxu0  ;;  %6907 = vmatmul.mubr.f32.gmra.mxu0 %v7988_v24  ;;  %v1073_v10 = vpop.f32.mrf.mxu1  ;;  %6969 = vmatprep.subr.mxu1 %v3980_v50 }
 0x189   : > { %v8382_v27 = vadd.f32 %v6492_v26, %v1225_v19  ;;  %v1224_v20 = vadd.f32 %v1073_v10, %v8194_v53  ;;  %6909 = vmatprep.mubr.f32.mxu0 %v8000_v48  ;;  %7072 = vmatpush3.msra.mxu0 %v4497_v21  ;;  %v8392_v19 = vld [vmem:[%s7553_s21 + $0xf2] sm:$0xff]  ;;  %v8396_v21 = vld [vmem:[%s7553_s21 + $0xfa] sm:$0xff] }
 0x18a   : > { %v1589_v46 = vpop.f32.mrf.mxu0  ;;  %v6391_v52 = vpop.f32.mrf.mxu1  ;;  %6806 = vmatmul.mubr.f32.gmra.mxu1 %v8376_v42  ;;  %7073 = vmatprep.subr.mxu0 %v4496_v17  ;;  %v4495_v53 = vld [vmem:[#allocation6 + $0x410] sm:$0xff] }
 0x18b   : > { %v8387_v24 = vadd.f32 %v1589_v46, %v1224_v20  ;;  %v1227_v3 = vadd.f32 %v6391_v52, %v7966_v31  ;;  %6808 = vmatprep.mubr.f32.mxu1 %v8380_v18  ;;  %6970 = vmatpush3.msra.mxu1 %v3980_v50  ;;  %v3978_v31 = vld [vmem:[#allocation6 + $0x388] sm:$0xff] }
 0x18c   : > { %v6495_v26 = vpop.f32.mrf.mxu0  ;;  %6910 = vmatmul.mubr.f32.gmra.mxu0 %v8004_v61  ;;  %v1083_v48 = vpop.f32.mrf.mxu1  ;;  %6971 = vmatprep.subr.mxu1 %v3979_v38 }
 0x18d   : > { %v8398_v10 = vadd.f32 %v6495_v26, %v1227_v3  ;;  %v1226_v20 = vadd.f32 %v1083_v48, %v7975_v62  ;;  %6912 = vmatprep.mubr.f32.mxu0 %v8016_v34  ;;  %7074 = vmatpush3.msra.mxu0 %v4496_v17  ;;  %v8408_v3 = vld [vmem:[%s7553_s21 + $0x102] sm:$0xff]  ;;  %v4494_v62 = vld [vmem:[#allocation6 + $0x408] sm:$0xff] }
 0x18e   : > { %v1599_v46 = vpop.f32.mrf.mxu0  ;;  %v6394_v50 = vpop.f32.mrf.mxu1  ;;  %6809 = vmatmul.mubr.f32.gmra.mxu1 %v8392_v19  ;;  %7075 = vmatprep.subr.mxu0 %v4495_v53  ;;  %v8412_v17 = vld [vmem:[%s7553_s21 + $0x10a] sm:$0xff] }
 0x18f   : > { %v8403_v61 = vadd.f32 %v1599_v46, %v1226_v20  ;;  %v1229_v52 = vadd.f32 %v6394_v50, %v7984_v15  ;;  %6811 = vmatprep.mubr.f32.mxu1 %v8396_v21  ;;  %6972 = vmatpush3.msra.mxu1 %v3979_v38  ;;  %v3977_v15 = vld [vmem:[#allocation6 + $0x380] sm:$0xff] }
 0x190   : > { %v6498_v26 = vpop.f32.mrf.mxu0  ;;  %6913 = vmatmul.mubr.f32.gmra.mxu0 %v8022_v55  ;;  %v1093_v34 = vpop.f32.mrf.mxu1  ;;  %6973 = vmatprep.subr.mxu1 %v3978_v31 }
 0x191   : > { %v8414_v48 = vadd.f32 %v6498_v26, %v1229_v52  ;;  %v1228_v20 = vadd.f32 %v1093_v34, %v7993_v35  ;;  %6915 = vmatprep.mubr.f32.mxu0 %v8034_v12  ;;  %7076 = vmatpush3.msra.mxu0 %v4495_v53  ;;  %v8424_v52 = vld [vmem:[%s7553_s21 + $0x112] sm:$0xff]  ;;  %v8428_v53 = vld [vmem:[%s7553_s21 + $0x11a] sm:$0xff] }
 0x192   : > { %v1609_v46 = vpop.f32.mrf.mxu0  ;;  %v6397_v38 = vpop.f32.mrf.mxu1  ;;  %6812 = vmatmul.mubr.f32.gmra.mxu1 %v8408_v3  ;;  %7077 = vmatprep.subr.mxu0 %v4494_v62  ;;  %v4493_v35 = vld [vmem:[#allocation6 + $0x400] sm:$0xff] }
 0x193   : > { %v8419_v55 = vadd.f32 %v1609_v46, %v1228_v20  ;;  %v1231_v50 = vadd.f32 %v6397_v38, %v8006_v5  ;;  %6814 = vmatprep.mubr.f32.mxu1 %v8412_v17  ;;  %6974 = vmatpush3.msra.mxu1 %v3978_v31  ;;  %v8440_v38 = vld [vmem:[%s7553_s21 + $0x122] sm:$0xff] }
 0x194   : > { %v6501_v26 = vpop.f32.mrf.mxu0  ;;  %6916 = vmatmul.mubr.f32.gmra.mxu0 %v8040_v25  ;;  %v1103_v12 = vpop.f32.mrf.mxu1  ;;  %6975 = vmatprep.subr.mxu1 %v3977_v15 }
 0x195   : > { %v8430_v34 = vadd.f32 %v6501_v26, %v1231_v50  ;;  %v1230_v20 = vadd.f32 %v1103_v12, %v8012_v23  ;;  %6918 = vmatprep.mubr.f32.mxu0 %v8052_v32  ;;  %7078 = vmatpush3.msra.mxu0 %v4494_v62  ;;  %v8444_v32 = vld [vmem:[%s7553_s21 + $0x12a] sm:$0xff] }
 0x196   : > { %v1619_v5 = vpop.f32.mrf.mxu0  ;;  %v6400_v46 = vpop.f32.mrf.mxu1  ;;  %6815 = vmatmul.mubr.f32.gmra.mxu1 %v8424_v52  ;;  %7079 = vmatprep.subr.mxu0 %v4493_v35  ;;  %9274 = vst [vmem:[#allocation53_spill] sm:$0xff] %v8444_v32 }
 0x197   : > { %v8435_v31 = vadd.f32 %v1619_v5, %v1230_v20  ;;  %v1233_v25 = vadd.f32 %v6400_v46, %v8024_v4  ;;  %6817 = vmatprep.mubr.f32.mxu1 %v8428_v53  ;;  %6976 = vmatpush3.msra.mxu1 %v3977_v15  ;;  %v9278_v46 = vld [vmem:[#allocation22_spill] sm:$0xff] }
 0x198   : > { %v6504_v50 = vpop.f32.mrf.mxu0  ;;  %6919 = vmatmul.mubr.f32.gmra.mxu0 %v8062_v37  ;;  %v1113_v23 = vpop.f32.mrf.mxu1  ;;  %v8456_v37 = vld [vmem:[%s7553_s21 + $0x132] sm:$0xff] }
 0x199   : > { %v8446_v62 = vadd.f32 %v6504_v50, %v1233_v25  ;;  %v1232_v26 = vadd.f32 %v1113_v23, %v8030_v8  ;;  %6921 = vmatprep.mubr.f32.mxu0 %v8072_v59  ;;  %7080 = vmatpush3.msra.mxu0 %v4493_v35  ;;  %9277 = vst [vmem:[#allocation56_spill] sm:$0xff] %v8456_v37  ;;  %v8460_v59 = vld [vmem:[%s7553_s21 + $0x13a] sm:$0xff] }
 0x19a   : > { %v1629_v4 = vpop.f32.mrf.mxu0  ;;  %v6403_v12 = vpop.f32.mrf.mxu1  ;;  %6818 = vmatmul.mubr.f32.gmra.mxu1 %v8440_v38  ;;  %9279 = vst [vmem:[#allocation22_spill] sm:$0xff] %v8460_v59  ;;  %v9281_v25 = vld [vmem:[#allocation21_spill] sm:$0xff]  ;;  %v9282_v23 = vld [vmem:[#allocation23_spill] sm:$0xff] }
 0x19b   : > { %9275 = vst [vmem:[#allocation54_spill] sm:$0xff] %v8446_v62  ;;  %v8451_v20 = vadd.f32 %v1629_v4, %v1232_v26  ;;  %v1235_v15 = vadd.f32 %v6403_v12, %v8043_v36  ;;  %6820 = vmatprep.mubr.f32.mxu1 %v8444_v32  ;;  %v9284_v12 = vld [vmem:[#allocation12_spill] sm:$0xff] }
 0x19c   : > { %v6507_v5 = vpop.f32.mrf.mxu0  ;;  %6922 = vmatmul.mubr.f32.gmra.mxu0 %v9278_v46  ;;  %v1123_v8 = vpop.f32.mrf.mxu1  ;;  %v8472_v46 = vld [vmem:[%s7553_s21 + $0x142] sm:$0xff] }
 0x19d   : > { %9276 = vst [vmem:[#allocation55_spill] sm:$0xff] %v8451_v20  ;;  %v8462_v35 = vadd.f32 %v6507_v5, %v1235_v15  ;;  %v1234_v50 = vadd.f32 %v1123_v8, %v9281_v25  ;;  %6924 = vmatprep.mubr.f32.mxu0 %v9282_v23  ;;  %9285 = vst [vmem:[#allocation23_spill] sm:$0xff] %v8472_v46  ;;  %v9286_v15 = vld [vmem:[#allocation24_spill] sm:$0xff]  ;;  %v9289_v23 = vld [vmem:[#allocation13_spill] sm:$0xff] }
 0x19e   : > { %v1639_v26 = vpop.f32.mrf.mxu0  ;;  %v6406_v36 = vpop.f32.mrf.mxu1  ;;  %6821 = vmatmul.mubr.f32.gmra.mxu1 %v8456_v37  ;;  %v8476_v8 = vld [vmem:[%s7553_s21 + $0x14a] sm:$0xff] }
 0x19f   : > { %9280 = vst [vmem:[#allocation57_spill] sm:$0xff] %v8462_v35  ;;  %v8467_v4 = vadd.f32 %v1639_v26, %v1234_v50  ;;  %v1237_v20 = vadd.f32 %v6406_v36, %v9284_v12  ;;  %6823 = vmatprep.mubr.f32.mxu1 %v8460_v59  ;;  %9287 = vst [vmem:[#allocation12_spill] sm:$0xff] %v8476_v8  ;;  %v9290_v50 = vld [vmem:[#allocation25_spill] sm:$0xff] }
 0x1a0   : > { %v6510_v32 = vpop.f32.mrf.mxu0  ;;  %6925 = vmatmul.mubr.f32.gmra.mxu0 %v9286_v15  ;;  %v1133_v5 = vpop.f32.mrf.mxu1  ;;  %v8488_v15 = vld [vmem:[%s7553_s21 + $0x152] sm:$0xff] }
 0x1a1   : > { %9283 = vst [vmem:[#allocation21_spill] sm:$0xff] %v8467_v4  ;;  %v8478_v25 = vadd.f32 %v6510_v32, %v1237_v20  ;;  %v1236_v35 = vadd.f32 %v1133_v5, %v9289_v23  ;;  %6927 = vmatprep.mubr.f32.mxu0 %v9290_v50  ;;  %v9292_v4 = vld [vmem:[#allocation14_spill] sm:$0xff]  ;;  %9293 = vst [vmem:[#allocation25_spill] sm:$0xff] %v8488_v15  ;;  %v9294_v32 = vld [vmem:[#allocation17_spill] sm:$0xff] }
 0x1a2   : > { %v1649_v26 = vpop.f32.mrf.mxu0  ;;  %v6409_v36 = vpop.f32.mrf.mxu1  ;;  %6824 = vmatmul.mubr.f32.gmra.mxu1 %v8472_v46  ;;  %v8492_v5 = vld [vmem:[%s7553_s21 + $0x15a] sm:$0xff] }
 0x1a3   : > { %9288 = vst [vmem:[#allocation24_spill] sm:$0xff] %v8478_v25  ;;  %v8483_v12 = vadd.f32 %v1649_v26, %v1236_v35  ;;  %v1239_v59 = vadd.f32 %v6409_v36, %v9292_v4  ;;  %6826 = vmatprep.mubr.f32.mxu1 %v8476_v8  ;;  %9295 = vst [vmem:[#allocation14_spill] sm:$0xff] %v8492_v5  ;;  %v9297_v50 = vld [vmem:[#allocation15_spill] sm:$0xff]  ;;  %v9298_v35 = vld [vmem:[#allocation26_spill] sm:$0xff] }
 0x1a4   : > { %v6513_v37 = vpop.f32.mrf.mxu0  ;;  %6928 = vmatmul.mubr.f32.gmra.mxu0 %v9294_v32  ;;  %v1143_v20 = vpop.f32.mrf.mxu1  ;;  %v8504_v32 = vld [vmem:[%s7553_s21 + $0x162] sm:$0xff] }
 0x1a5   : > { %9291 = vst [vmem:[#allocation13_spill] sm:$0xff] %v8483_v12  ;;  %v8494_v23 = vadd.f32 %v6513_v37, %v1239_v59  ;;  %v1238_v25 = vadd.f32 %v1143_v20, %v9297_v50  ;;  %6930 = vmatprep.mubr.f32.mxu0 %v9298_v35  ;;  %v9300_v12 = vld [vmem:[#allocation16_spill] sm:$0xff]  ;;  %9301 = vst [vmem:[#allocation26_spill] sm:$0xff] %v8504_v32  ;;  %v9302_v37 = vld [vmem:[#allocation27_spill] sm:$0xff] }
 0x1a6   : > { %v1659_v26 = vpop.f32.mrf.mxu0  ;;  %v6412_v4 = vpop.f32.mrf.mxu1  ;;  %6827 = vmatmul.mubr.f32.gmra.mxu1 %v8488_v15  ;;  %v8508_v20 = vld [vmem:[%s7553_s21 + $0x16a] sm:$0xff]  ;;  %v9305_v35 = vld [vmem:[#allocation18_spill] sm:$0xff] }
 0x1a7   : > { %9296 = vst [vmem:[#allocation17_spill] sm:$0xff] %v8494_v23  ;;  %v8499_v36 = vadd.f32 %v1659_v26, %v1238_v25  ;;  %v1241_v8 = vadd.f32 %v6412_v4, %v9300_v12  ;;  %6829 = vmatprep.mubr.f32.mxu1 %v8492_v5  ;;  %9303 = vst [vmem:[#allocation16_spill] sm:$0xff] %v8508_v20  ;;  %v9306_v25 = vld [vmem:[#allocation28_spill] sm:$0xff] }
 0x1a8   : > { %v6516_v46 = vpop.f32.mrf.mxu0  ;;  %6931 = vmatmul.mubr.f32.gmra.mxu0 %v9302_v37  ;;  %v1153_v59 = vpop.f32.mrf.mxu1  ;;  %v8520_v37 = vld [vmem:[%s7553_s21 + $0x172] sm:$0xff] }
 0x1a9   : > { %9299 = vst [vmem:[#allocation15_spill] sm:$0xff] %v8499_v36  ;;  %v8510_v50 = vadd.f32 %v6516_v46, %v1241_v8  ;;  %v1240_v23 = vadd.f32 %v1153_v59, %v9305_v35  ;;  %6933 = vmatprep.mubr.f32.mxu0 %v9306_v25  ;;  %v9308_v36 = vld [vmem:[#allocation19_spill] sm:$0xff]  ;;  %9309 = vst [vmem:[#allocation28_spill] sm:$0xff] %v8520_v37  ;;  %v9310_v46 = vld [vmem:[#allocation30_spill] sm:$0xff] }
 0x1aa   : > { %v1669_v26 = vpop.f32.mrf.mxu0  ;;  %v6415_v12 = vpop.f32.mrf.mxu1  ;;  %6830 = vmatmul.mubr.f32.gmra.mxu1 %v8504_v32  ;;  %v8524_v59 = vld [vmem:[%s7553_s21 + $0x17a] sm:$0xff]  ;;  %v9313_v25 = vld [vmem:[#allocation20_spill] sm:$0xff] }
 0x1ab   : > { %9304 = vst [vmem:[#allocation27_spill] sm:$0xff] %v8510_v50  ;;  %v8515_v4 = vadd.f32 %v1669_v26, %v1240_v23  ;;  %v1243_v5 = vadd.f32 %v6415_v12, %v9308_v36  ;;  %6832 = vmatprep.mubr.f32.mxu1 %v8508_v20  ;;  %9311 = vst [vmem:[#allocation19_spill] sm:$0xff] %v8524_v59  ;;  %v9314_v23 = vld [vmem:[#allocation32_spill] sm:$0xff] }
 0x1ac   : > { %v6519_v15 = vpop.f32.mrf.mxu0  ;;  %6934 = vmatmul.mubr.f32.gmra.mxu0 %v9310_v46  ;;  %v1163_v8 = vpop.f32.mrf.mxu1  ;;  %v8536_v20 = vld [vmem:[%s7553_s21 + $0x182] sm:$0xff] }
 0x1ad   : > { %9307 = vst [vmem:[#allocation18_spill] sm:$0xff] %v8515_v4  ;;  %v8526_v35 = vadd.f32 %v6519_v15, %v1243_v5  ;;  %v1242_v50 = vadd.f32 %v1163_v8, %v9313_v25  ;;  %6936 = vmatprep.mubr.f32.mxu0 %v9314_v23  ;;  %v9316_v4 = vld [vmem:[#allocation29_spill] sm:$0xff]  ;;  %9317 = vst [vmem:[#allocation32_spill] sm:$0xff] %v8536_v20 }
 0x1ae   : > { %v1679_v36 = vpop.f32.mrf.mxu0  ;;  %v6418_v26 = vpop.f32.mrf.mxu1  ;;  %6833 = vmatmul.mubr.f32.gmra.mxu1 %v8520_v37  ;;  %v9318_v5 = vld [vmem:[#allocation33_spill] sm:$0xff] }
 0x1af   : > { %9312 = vst [vmem:[#allocation30_spill] sm:$0xff] %v8526_v35  ;;  %v8531_v12 = vadd.f32 %v1679_v36, %v1242_v50  ;;  %v1245_v46 = vadd.f32 %v6418_v26, %v9316_v4  ;;  %6835 = vmatprep.mubr.f32.mxu1 %v8524_v59  ;;  %v8540_v25 = vld [vmem:[%s7553_s21 + $0x18a] sm:$0xff]  ;;  %v5538_v36 = vld [vmem:[%s7553_s21 + $0x198] sm:$0xff] }
 0x1b0   : > { %v6522_v15 = vpop.f32.mrf.mxu0  ;;  %6937 = vmatmul.mubr.f32.gmra.mxu0 %v9318_v5  ;;  %v1173_v8 = vpop.f32.mrf.mxu1  ;;  %9319 = vst [vmem:[#allocation29_spill] sm:$0xff] %v8540_v25  ;;  %v9321_v35 = vld [vmem:[#allocation31_spill] sm:$0xff]  ;;  %v9322_v50 = vld [vmem:[#allocation36_spill] sm:$0xff]  ;;  %v9324_v5 = vld [vmem:[#allocation34_spill] sm:$0xff] }
 0x1b1   : > { %9315 = vst [vmem:[#allocation20_spill] sm:$0xff] %v8531_v12  ;;  %v8542_v23 = vadd.f32 %v6522_v15, %v1245_v46  ;;  %v1244_v37 = vadd.f32 %v1173_v8, %v9321_v35  ;;  %6939 = vmatprep.mubr.f32.mxu0 %v9322_v50  ;;  %v5539_v12 = vld [vmem:[%s7553_s21 + $0x1a0] sm:$0xff]  ;;  %v8554_v46 = vld [vmem:[%s7553_s21 + $0x192] sm:$0xff] }
 0x1b2   : > { %v1689_v4 = vpop.f32.mrf.mxu0  ;;  %v6421_v26 = vpop.f32.mrf.mxu1  ;;  %6836 = vmatmul.mubr.f32.gmra.mxu1 %v8536_v20  ;;  %9325 = vst [vmem:[#allocation36_spill] sm:$0xff] %v8554_v46  ;;  %v5541_v8 = vld [vmem:[%s7553_s21 + $0x31] sm:$0xff]  ;;  %v5540_v20 = vld [vmem:[%s7553_s21 + $0x1a8] sm:$0xff] }
 0x1b3   : > { %9320 = vst [vmem:[#allocation33_spill] sm:$0xff] %v8542_v23  ;;  %v8549_v59 = vadd.f32 %v1689_v4, %v1244_v37  ;;  %v1247_v32 = vadd.f32 %v6421_v26, %v9324_v5  ;;  %6838 = vmatprep.mubr.f32.mxu1 %v8540_v25  ;;  %v9327_v23 = vld [vmem:[#allocation35_spill] sm:$0xff]  ;;  %v9328_v5 = vld [vmem:[#allocation37_spill] sm:$0xff] }
 0x1b4   : > { %v6525_v15 = vpop.f32.mrf.mxu0  ;;  %6940 = vmatmul.mubr.f32.gmra.mxu0 %v5538_v36  ;;  %v1183_v35 = vpop.f32.mrf.mxu1  ;;  %v5542_v36 = vld [vmem:[%s7553_s21 + $0x39] sm:$0xff] }
 0x1b5   : > { %9323 = vst [vmem:[#allocation31_spill] sm:$0xff] %v8549_v59  ;;  %v8557_v50 = vadd.f32 %v6525_v15, %v1247_v32  ;;  %v1246_v62 = vadd.f32 %v1183_v35, %v9327_v23  ;;  %6942 = vmatprep.mubr.f32.mxu0 %v5539_v12  ;;  %v5543_v15 = vld [vmem:[%s7553_s21 + $0x41] sm:$0xff] }
 0x1b6   : > { %v1699_v37 = vpop.f32.mrf.mxu0  ;;  %v6424_v4 = vpop.f32.mrf.mxu1  ;;  %6839 = vmatmul.mubr.f32.gmra.mxu1 %v8554_v46  ;;  %v9330_v12 = vld [vmem:[#allocation38_spill] sm:$0xff] }
 0x1b7   : > { %9326 = vst [vmem:[#allocation34_spill] sm:$0xff] %v8557_v50  ;;  %v8562_v26 = vadd.f32 %v1699_v37, %v1246_v62  ;;  %v1249_v59 = vadd.f32 %v6424_v4, %v9328_v5  ;;  %6977 = vmatprep.mubr.f32.mxu1 %v5541_v8  ;;  %v9331_v37 = vld [vmem:[#allocation40_spill] sm:$0xff]  ;;  %v9332_v5 = vld [vmem:[#allocation39_spill] sm:$0xff] }
 0x1b8   : > { %v6528_v25 = vpop.f32.mrf.mxu0  ;;  %6943 = vmatmul.mubr.f32.gmra.mxu0 %v5540_v20  ;;  %v1193_v32 = vpop.f32.mrf.mxu1  ;;  %v5544_v8 = vld [vmem:[%s7553_s21 + $0x49] sm:$0xff] }
 0x1b9   : > { %v8567_v50 = vadd.f32 %v6528_v25, %v1249_v59  ;;  %v1248_v23 = vadd.f32 %v1193_v32, %v9330_v12  ;;  %7081 = vmatprep.mubr.f32.mxu0 %v8201_v49  ;;  %v5545_v25 = vld [vmem:[%s7553_s21 + $0x51] sm:$0xff] }
 0x1ba   : > { %v1709_v35 = vpop.f32.mrf.mxu0  ;;  %v6563_v46 = vpop.f32.mrf.mxu1  ;;  %6978 = vmatmul.mubr.f32.vlgmr.msra.gmra.mxu1 %v5542_v36  ;;  %v9333_v32 = vld [vmem:[#allocation41_spill] sm:$0xff] }
 0x1bb   : > { %9329 = vst [vmem:[#allocation35_spill] sm:$0xff] %v8567_v50  ;;  %v8571_v62 = vadd.f32 %v1709_v35, %v1248_v23  ;;  %v2235_v4 = vadd.f32 %v6563_v46, %v9331_v37  ;;  %6980 = vmatprep.mubr.f32.mxu1 %v5543_v15  ;;  %v5546_v15 = vld [vmem:[%s7553_s21 + $0x59] sm:$0xff] }
 0x1bc   : > { %v6667_v20 = vpop.f32.mrf.mxu0  ;;  %7082 = vmatmul.mubr.f32.vlgmr.msra.gmra.mxu0 %v9332_v5  ;;  %v1995_v59 = vpop.f32.mrf.mxu1  ;;  %v9334_v37 = vld [vmem:[#allocation42_spill] sm:$0xff] }
 0x1bd   : > { %v8577_v50 = vadd.f32 %v6667_v20, %v2235_v4  ;;  %v2234_v49 = vadd.f32 %v1995_v59, %v9333_v32  ;;  %7084 = vmatprep.mubr.f32.mxu0 %v8218_v7  ;;  %v5547_v20 = vld [vmem:[%s7553_s21 + $0x61] sm:$0xff] }
 0x1be   : > { %v2511_v36 = vpop.f32.mrf.mxu0  ;;  %v6566_v12 = vpop.f32.mrf.mxu1  ;;  %6981 = vmatmul.mubr.f32.gmra.mxu1 %v5544_v8  ;;  %v9335_v59 = vld [vmem:[#allocation43_spill] sm:$0xff] }
 0x1bf   : > { %v8581_v23 = vadd.f32 %v2511_v36, %v2234_v49  ;;  %v2237_v46 = vadd.f32 %v6566_v12, %v8223_v30  ;;  %6983 = vmatprep.mubr.f32.mxu1 %v5545_v25  ;;  %v5548_v25 = vld [vmem:[%s7553_s21 + $0x69] sm:$0xff] }
 0x1c0   : > { %v6670_v35 = vpop.f32.mrf.mxu0  ;;  %7085 = vmatmul.mubr.f32.gmra.mxu0 %v9334_v37  ;;  %v2005_v4 = vpop.f32.mrf.mxu1  ;;  %v9336_v12 = vld [vmem:[#allocation44_spill] sm:$0xff] }
 0x1c1   : > { %v8587_v5 = vadd.f32 %v6670_v35, %v2237_v46  ;;  %v2236_v7 = vadd.f32 %v2005_v4, %v9335_v59  ;;  %7087 = vmatprep.mubr.f32.mxu0 %v8234_v9  ;;  %v5549_v35 = vld [vmem:[%s7553_s21 + $0x71] sm:$0xff] }
 0x1c2   : > { %v2521_v8 = vpop.f32.mrf.mxu0  ;;  %v6569_v32 = vpop.f32.mrf.mxu1  ;;  %6984 = vmatmul.mubr.f32.gmra.mxu1 %v5546_v15  ;;  %v9337_v4 = vld [vmem:[#allocation45_spill] sm:$0xff] }
 0x1c3   : > { %v8591_v49 = vadd.f32 %v2521_v8, %v2236_v7  ;;  %v2239_v30 = vadd.f32 %v6569_v32, %v8239_v51  ;;  %6986 = vmatprep.mubr.f32.mxu1 %v5547_v20  ;;  %v5550_v20 = vld [vmem:[%s7553_s21 + $0x79] sm:$0xff] }
 0x1c4   : > { %v6673_v36 = vpop.f32.mrf.mxu0  ;;  %7088 = vmatmul.mubr.f32.gmra.mxu0 %v9336_v12  ;;  %v2015_v46 = vpop.f32.mrf.mxu1  ;;  %v9338_v32 = vld [vmem:[#allocation46_spill] sm:$0xff] }
 0x1c5   : > { %v8597_v37 = vadd.f32 %v6673_v36, %v2239_v30  ;;  %v2238_v9 = vadd.f32 %v2015_v46, %v9337_v4  ;;  %7090 = vmatprep.mubr.f32.mxu0 %v8250_v2  ;;  %v5551_v36 = vld [vmem:[%s7553_s21 + $0x81] sm:$0xff] }
 0x1c6   : > { %v2531_v15 = vpop.f32.mrf.mxu0  ;;  %v6572_v59 = vpop.f32.mrf.mxu1  ;;  %6987 = vmatmul.mubr.f32.gmra.mxu1 %v5548_v25  ;;  %v9339_v46 = vld [vmem:[#allocation47_spill] sm:$0xff] }
 0x1c7   : > { %v8601_v7 = vadd.f32 %v2531_v15, %v2238_v9  ;;  %v2241_v51 = vadd.f32 %v6572_v59, %v8255_v58  ;;  %6989 = vmatprep.mubr.f32.mxu1 %v5549_v35  ;;  %v5552_v35 = vld [vmem:[%s7553_s21 + $0x89] sm:$0xff] }
 0x1c8   : > { %v6676_v8 = vpop.f32.mrf.mxu0  ;;  %7091 = vmatmul.mubr.f32.gmra.mxu0 %v9338_v32  ;;  %v2025_v30 = vpop.f32.mrf.mxu1  ;;  %v9340_v59 = vld [vmem:[#allocation48_spill] sm:$0xff] }
 0x1c9   : > { %v8607_v12 = vadd.f32 %v6676_v8, %v2241_v51  ;;  %v2240_v2 = vadd.f32 %v2025_v30, %v9339_v46  ;;  %7093 = vmatprep.mubr.f32.mxu0 %v8266_v41  ;;  %v5553_v8 = vld [vmem:[%s7553_s21 + $0x91] sm:$0xff] }
 0x1ca   : > { %v2541_v25 = vpop.f32.mrf.mxu0  ;;  %v6575_v4 = vpop.f32.mrf.mxu1  ;;  %6990 = vmatmul.mubr.f32.gmra.mxu1 %v5550_v20  ;;  %v9341_v30 = vld [vmem:[#allocation49_spill] sm:$0xff] }
 0x1cb   : > { %v8611_v9 = vadd.f32 %v2541_v25, %v2240_v2  ;;  %v2243_v58 = vadd.f32 %v6575_v4, %v8271_v47  ;;  %6992 = vmatprep.mubr.f32.mxu1 %v5551_v36  ;;  %v5554_v36 = vld [vmem:[%s7553_s21 + $0x99] sm:$0xff] }
 0x1cc   : > { %v6679_v15 = vpop.f32.mrf.mxu0  ;;  %7094 = vmatmul.mubr.f32.gmra.mxu0 %v9340_v59  ;;  %v2035_v51 = vpop.f32.mrf.mxu1  ;;  %v9342_v4 = vld [vmem:[#allocation50_spill] sm:$0xff] }
 0x1cd   : > { %v8617_v32 = vadd.f32 %v6679_v15, %v2243_v58  ;;  %v2242_v41 = vadd.f32 %v2035_v51, %v9341_v30  ;;  %7096 = vmatprep.mubr.f32.mxu0 %v8282_v6  ;;  %v5555_v15 = vld [vmem:[%s7553_s21 + $0xa1] sm:$0xff] }
 0x1ce   : > { %v2551_v20 = vpop.f32.mrf.mxu0  ;;  %v6578_v46 = vpop.f32.mrf.mxu1  ;;  %6993 = vmatmul.mubr.f32.gmra.mxu1 %v5552_v35  ;;  %v9343_v51 = vld [vmem:[#allocation51_spill] sm:$0xff] }
 0x1cf   : > { %v8621_v2 = vadd.f32 %v2551_v20, %v2242_v41  ;;  %v2245_v47 = vadd.f32 %v6578_v46, %v8287_v43  ;;  %6995 = vmatprep.mubr.f32.mxu1 %v5553_v8  ;;  %v5556_v8 = vld [vmem:[%s7553_s21 + $0xa9] sm:$0xff] }
 0x1d0   : > { %v6682_v25 = vpop.f32.mrf.mxu0  ;;  %7097 = vmatmul.mubr.f32.gmra.mxu0 %v9342_v4  ;;  %v2045_v58 = vpop.f32.mrf.mxu1  ;;  %v9344_v4 = vld [vmem:[#allocation52_spill] sm:$0xff] }
 0x1d1   : > { %v8627_v59 = vadd.f32 %v6682_v25, %v2245_v47  ;;  %v2244_v6 = vadd.f32 %v2045_v58, %v9343_v51  ;;  %7099 = vmatprep.mubr.f32.mxu0 %v8298_v63  ;;  %v5557_v47 = vld [vmem:[%s7553_s21 + $0xb1] sm:$0xff] }
 0x1d2   : > { %v2561_v35 = vpop.f32.mrf.mxu0  ;;  %v6581_v30 = vpop.f32.mrf.mxu1  ;;  %6996 = vmatmul.mubr.f32.gmra.mxu1 %v5554_v36 }
 0x1d3   : > { %v8631_v41 = vadd.f32 %v2561_v35, %v2244_v6  ;;  %v2247_v43 = vadd.f32 %v6581_v30, %v8303_v39  ;;  %6998 = vmatprep.mubr.f32.mxu1 %v5555_v15  ;;  %v5558_v15 = vld [vmem:[%s7553_s21 + $0xb9] sm:$0xff]  ;;  %v5559_v35 = vld [vmem:[%s7553_s21 + $0xc1] sm:$0xff] }
 0x1d4   : > { %v6685_v20 = vpop.f32.mrf.mxu0  ;;  %7100 = vmatmul.mubr.f32.gmra.mxu0 %v8301_v28  ;;  %v2055_v46 = vpop.f32.mrf.mxu1 }
 0x1d5   : > { %v8637_v25 = vadd.f32 %v6685_v20, %v2247_v43  ;;  %v2246_v63 = vadd.f32 %v2055_v46, %v9344_v4  ;;  %7102 = vmatprep.mubr.f32.mxu0 %v8314_v57  ;;  %v5560_v46 = vld [vmem:[%s7553_s21 + $0xc9] sm:$0xff]  ;;  %v5561_v4 = vld [vmem:[%s7553_s21 + $0xd1] sm:$0xff] }
 0x1d6   : > { %v2571_v36 = vpop.f32.mrf.mxu0  ;;  %v6584_v58 = vpop.f32.mrf.mxu1  ;;  %6999 = vmatmul.mubr.f32.gmra.mxu1 %v5556_v8 }
 0x1d7   : > { %v8641_v51 = vadd.f32 %v2571_v36, %v2246_v63  ;;  %v2249_v39 = vadd.f32 %v6584_v58, %v8319_v29  ;;  %7001 = vmatprep.mubr.f32.mxu1 %v5557_v47 }
 0x1d8   : > { %v6688_v28 = vpop.f32.mrf.mxu0  ;;  %7103 = vmatmul.mubr.f32.gmra.mxu0 %v8317_v11  ;;  %v2065_v6 = vpop.f32.mrf.mxu1 }
 0x1d9   : > { %v8647_v30 = vadd.f32 %v6688_v28, %v2249_v39  ;;  %v2248_v57 = vadd.f32 %v2065_v6, %v8324_v45  ;;  %7105 = vmatprep.mubr.f32.mxu0 %v8329_v56  ;;  %v5562_v39 = vld [vmem:[%s7553_s21 + $0xd9] sm:$0xff]  ;;  %v5563_v28 = vld [vmem:[%s7553_s21 + $0xe1] sm:$0xff] }
 0x1da   : > { %v2581_v43 = vpop.f32.mrf.mxu0  ;;  %v6587_v8 = vpop.f32.mrf.mxu1  ;;  %7002 = vmatmul.mubr.f32.gmra.mxu1 %v5558_v15 }
 0x1db   : > { %v8651_v20 = vadd.f32 %v2581_v43, %v2248_v57  ;;  %v2251_v29 = vadd.f32 %v6587_v8, %v8334_v33  ;;  %7004 = vmatprep.mubr.f32.mxu1 %v5559_v35  ;;  %v5564_v43 = vld [vmem:[%s7553_s21 + $0xe9] sm:$0xff] }
 0x1dc   : > { %v6691_v11 = vpop.f32.mrf.mxu0  ;;  %7106 = vmatmul.mubr.f32.gmra.mxu0 %v8332_v14  ;;  %v2075_v47 = vpop.f32.mrf.mxu1 }
 0x1dd   : > { %v8657_v63 = vadd.f32 %v6691_v11, %v2251_v29  ;;  %v2250_v45 = vadd.f32 %v2075_v47, %v8339_v44  ;;  %7108 = vmatprep.mubr.f32.mxu0 %v8344_v13  ;;  %v5565_v29 = vld [vmem:[%s7553_s21 + $0xf1] sm:$0xff] }
 0x1de   : > { %v2591_v56 = vpop.f32.mrf.mxu0  ;;  %v6590_v36 = vpop.f32.mrf.mxu1  ;;  %7005 = vmatmul.mubr.f32.gmra.mxu1 %v5560_v46 }
 0x1df   : > { %v8661_v58 = vadd.f32 %v2591_v56, %v2250_v45  ;;  %v2253_v33 = vadd.f32 %v6590_v36, %v8350_v0  ;;  %7007 = vmatprep.mubr.f32.mxu1 %v5561_v4  ;;  %v5566_v4 = vld [vmem:[%s7553_s21 + $0xf9] sm:$0xff]  ;;  %v5567_v56 = vld [vmem:[%s7553_s21 + $0x101] sm:$0xff] }
 0x1e0   : > { %v6694_v14 = vpop.f32.mrf.mxu0  ;;  %7109 = vmatmul.mubr.f32.gmra.mxu0 %v8348_v1  ;;  %v2085_v15 = vpop.f32.mrf.mxu1 }
 0x1e1   : > { %v8667_v6 = vadd.f32 %v6694_v14, %v2253_v33  ;;  %v2252_v44 = vadd.f32 %v2085_v15, %v8355_v22  ;;  %7111 = vmatprep.mubr.f32.mxu0 %v8360_v60  ;;  %v5568_v14 = vld [vmem:[%s7553_s21 + $0x109] sm:$0xff] }
 0x1e2   : > { %v2601_v13 = vpop.f32.mrf.mxu0  ;;  %v6593_v35 = vpop.f32.mrf.mxu1  ;;  %7008 = vmatmul.mubr.f32.gmra.mxu1 %v5562_v39 }
 0x1e3   : > { %v8671_v57 = vadd.f32 %v2601_v13, %v2252_v44  ;;  %v2255_v0 = vadd.f32 %v6593_v35, %v8366_v16  ;;  %7010 = vmatprep.mubr.f32.mxu1 %v5563_v28  ;;  %v5569_v28 = vld [vmem:[%s7553_s21 + $0x111] sm:$0xff] }
 0x1e4   : > { %v6697_v1 = vpop.f32.mrf.mxu0  ;;  %7112 = vmatmul.mubr.f32.gmra.mxu0 %v8364_v40  ;;  %v2095_v8 = vpop.f32.mrf.mxu1 }
 0x1e5   : > { %v8677_v46 = vadd.f32 %v6697_v1, %v2255_v0  ;;  %v2254_v22 = vadd.f32 %v2095_v8, %v8371_v54  ;;  %7114 = vmatprep.mubr.f32.mxu0 %v8376_v42  ;;  %v5570_v0 = vld [vmem:[%s7553_s21 + $0x119] sm:$0xff]  ;;  %v5571_v1 = vld [vmem:[%s7553_s21 + $0x121] sm:$0xff] }
 0x1e6   : > { %v2611_v60 = vpop.f32.mrf.mxu0  ;;  %v6596_v11 = vpop.f32.mrf.mxu1  ;;  %7011 = vmatmul.mubr.f32.gmra.mxu1 %v5564_v43 }
 0x1e7   : > { %v8681_v47 = vadd.f32 %v2611_v60, %v2254_v22  ;;  %v2257_v16 = vadd.f32 %v6596_v11, %v8382_v27  ;;  %7013 = vmatprep.mubr.f32.mxu1 %v5565_v29  ;;  %v5572_v60 = vld [vmem:[%s7553_s21 + $0x129] sm:$0xff] }
 0x1e8   : > { %v6700_v40 = vpop.f32.mrf.mxu0  ;;  %7115 = vmatmul.mubr.f32.gmra.mxu0 %v8380_v18  ;;  %v2105_v45 = vpop.f32.mrf.mxu1 }
 0x1e9   : > { %v8687_v36 = vadd.f32 %v6700_v40, %v2257_v16  ;;  %v2256_v54 = vadd.f32 %v2105_v45, %v8387_v24  ;;  %7117 = vmatprep.mubr.f32.mxu0 %v8392_v19  ;;  %v5573_v16 = vld [vmem:[%s7553_s21 + $0x131] sm:$0xff] }
 0x1ea   : > { %v2621_v42 = vpop.f32.mrf.mxu0  ;;  %v6599_v33 = vpop.f32.mrf.mxu1  ;;  %7014 = vmatmul.mubr.f32.gmra.mxu1 %v5566_v4 }
 0x1eb   : > { %v8691_v39 = vadd.f32 %v2621_v42, %v2256_v54  ;;  %v2259_v27 = vadd.f32 %v6599_v33, %v8398_v10  ;;  %7016 = vmatprep.mubr.f32.mxu1 %v5567_v56  ;;  %v5574_v54 = vld [vmem:[%s7553_s21 + $0x139] sm:$0xff] }
 0x1ec   : > { %v6703_v18 = vpop.f32.mrf.mxu0  ;;  %7118 = vmatmul.mubr.f32.gmra.mxu0 %v8396_v21  ;;  %v2115_v15 = vpop.f32.mrf.mxu1  ;;  %v9346_v42 = vld [vmem:[#allocation53_spill] sm:$0xff] }
 0x1ed   : > { %v8697_v44 = vadd.f32 %v6703_v18, %v2259_v27  ;;  %v2258_v24 = vadd.f32 %v2115_v15, %v8403_v61  ;;  %7120 = vmatprep.mubr.f32.mxu0 %v8408_v3  ;;  %v5575_v27 = vld [vmem:[%s7553_s21 + $0x141] sm:$0xff] }
 0x1ee   : > { %v2631_v19 = vpop.f32.mrf.mxu0  ;;  %v6602_v13 = vpop.f32.mrf.mxu1  ;;  %7017 = vmatmul.mubr.f32.gmra.mxu1 %v5568_v14  ;;  %v9348_v18 = vld [vmem:[#allocation56_spill] sm:$0xff] }
 0x1ef   : > { %v8701_v35 = vadd.f32 %v2631_v19, %v2258_v24  ;;  %v2261_v10 = vadd.f32 %v6602_v13, %v8414_v48  ;;  %7019 = vmatprep.mubr.f32.mxu1 %v5569_v28  ;;  %v9349_v19 = vld [vmem:[#allocation57_spill] sm:$0xff] }
 0x1f0   : > { %v6706_v21 = vpop.f32.mrf.mxu0  ;;  %7121 = vmatmul.mubr.f32.gmra.mxu0 %v8412_v17  ;;  %v2125_v43 = vpop.f32.mrf.mxu1 }
 0x1f1   : > { %v8707_v8 = vadd.f32 %v6706_v21, %v2261_v10  ;;  %v2260_v61 = vadd.f32 %v2125_v43, %v8419_v55  ;;  %7123 = vmatprep.mubr.f32.mxu0 %v8424_v52  ;;  %v5576_v10 = vld [vmem:[%s7553_s21 + $0x149] sm:$0xff]  ;;  %v9350_v21 = vld [vmem:[#allocation22_spill] sm:$0xff] }
 0x1f2   : > { %v2641_v3 = vpop.f32.mrf.mxu0  ;;  %v6605_v29 = vpop.f32.mrf.mxu1  ;;  %7020 = vmatmul.mubr.f32.gmra.mxu1 %v5570_v0 }
 0x1f3   : > { %v8711_v22 = vadd.f32 %v2641_v3, %v2260_v61  ;;  %v2263_v48 = vadd.f32 %v6605_v29, %v8430_v34  ;;  %7022 = vmatprep.mubr.f32.mxu1 %v5571_v1  ;;  %v9345_v34 = vld [vmem:[#allocation54_spill] sm:$0xff]  ;;  %v9351_v3 = vld [vmem:[#allocation21_spill] sm:$0xff] }
 0x1f4   : > { %v6709_v17 = vpop.f32.mrf.mxu0  ;;  %7124 = vmatmul.mubr.f32.gmra.mxu0 %v8428_v53  ;;  %v2135_v11 = vpop.f32.mrf.mxu1  ;;  %v5577_v1 = vld [vmem:[%s7553_s21 + $0x151] sm:$0xff] }
 0x1f5   : > { %v8717_v4 = vadd.f32 %v6709_v17, %v2263_v48  ;;  %v2262_v55 = vadd.f32 %v2135_v11, %v8435_v31  ;;  %7126 = vmatprep.mubr.f32.mxu0 %v8440_v38  ;;  %v9347_v31 = vld [vmem:[#allocation55_spill] sm:$0xff] }
 0x1f6   : > { %v2651_v52 = vpop.f32.mrf.mxu0  ;;  %v6608_v40 = vpop.f32.mrf.mxu1  ;;  %7023 = vmatmul.mubr.f32.gmra.mxu1 %v5572_v60  ;;  %v9352_v48 = vld [vmem:[#allocation23_spill] sm:$0xff] }
 0x1f7   : > { %v8721_v45 = vadd.f32 %v2651_v52, %v2262_v55  ;;  %v2265_v56 = vadd.f32 %v6608_v40, %v9345_v34  ;;  %7025 = vmatprep.mubr.f32.mxu1 %v5573_v16  ;;  %v9353_v16 = vld [vmem:[#allocation24_spill] sm:$0xff]  ;;  %v5578_v52 = vld [vmem:[%s7553_s21 + $0x159] sm:$0xff] }
 0x1f8   : > { %v6712_v53 = vpop.f32.mrf.mxu0  ;;  %7127 = vmatmul.mubr.f32.gmra.mxu0 %v9346_v42  ;;  %v2145_v33 = vpop.f32.mrf.mxu1  ;;  %v9354_v34 = vld [vmem:[#allocation12_spill] sm:$0xff]  ;;  %v9355_v42 = vld [vmem:[#allocation13_spill] sm:$0xff] }
 0x1f9   : > { %v8727_v14 = vadd.f32 %v6712_v53, %v2265_v56  ;;  %v2264_v38 = vadd.f32 %v2145_v33, %v9347_v31  ;;  %7129 = vmatprep.mubr.f32.mxu0 %v9348_v18 }
 0x1fa   : > { %v2661_v15 = vpop.f32.mrf.mxu0  ;;  %v6611_v28 = vpop.f32.mrf.mxu1  ;;  %7026 = vmatmul.mubr.f32.gmra.mxu1 %v5574_v54  ;;  %v5579_v54 = vld [vmem:[%s7553_s21 + $0x161] sm:$0xff] }
 0x1fb   : > { %v8731_v24 = vadd.f32 %v2661_v15, %v2264_v38  ;;  %v2267_v13 = vadd.f32 %v6611_v28, %v9349_v19  ;;  %7028 = vmatprep.mubr.f32.mxu1 %v5575_v27  ;;  %v9356_v27 = vld [vmem:[#allocation25_spill] sm:$0xff] }
 0x1fc   : > { %v6715_v0 = vpop.f32.mrf.mxu0  ;;  %7130 = vmatmul.mubr.f32.gmra.mxu0 %v9350_v21  ;;  %v2155_v43 = vpop.f32.mrf.mxu1  ;;  %v9357_v15 = vld [vmem:[#allocation17_spill] sm:$0xff] }
 0x1fd   : > { %v8737_v61 = vadd.f32 %v6715_v0, %v2267_v13  ;;  %v2266_v29 = vadd.f32 %v2155_v43, %v9351_v3  ;;  %7132 = vmatprep.mubr.f32.mxu0 %v9352_v48  ;;  %v5580_v19 = vld [vmem:[%s7553_s21 + $0x169] sm:$0xff]  ;;  %v5581_v21 = vld [vmem:[%s7553_s21 + $0x171] sm:$0xff] }
 0x1fe   : > { %v2671_v60 = vpop.f32.mrf.mxu0  ;;  %v6614_v17 = vpop.f32.mrf.mxu1  ;;  %7029 = vmatmul.mubr.f32.gmra.mxu1 %v5576_v10  ;;  %v9358_v10 = vld [vmem:[#allocation14_spill] sm:$0xff] }
 0x1ff   : > { %v8741_v11 = vadd.f32 %v2671_v60, %v2266_v29  ;;  %v2269_v55 = vadd.f32 %v6614_v17, %v9353_v16  ;;  %7031 = vmatprep.mubr.f32.mxu1 %v5577_v1  ;;  %v9359_v1 = vld [vmem:[#allocation15_spill] sm:$0xff]  ;;  %v9360_v29 = vld [vmem:[#allocation26_spill] sm:$0xff] }
 0x200   : > { %v6718_v40 = vpop.f32.mrf.mxu0  ;;  %7133 = vmatmul.mubr.f32.gmra.mxu0 %v9354_v34  ;;  %v2165_v56 = vpop.f32.mrf.mxu1  ;;  %v9361_v16 = vld [vmem:[#allocation27_spill] sm:$0xff]  ;;  %v9362_v34 = vld [vmem:[#allocation16_spill] sm:$0xff] }
 0x201   : > { %v8747_v53 = vadd.f32 %v6718_v40, %v2269_v55  ;;  %v2268_v33 = vadd.f32 %v2165_v56, %v9355_v42  ;;  %7135 = vmatprep.mubr.f32.mxu0 %v9356_v27 }
 0x202   : > { %v2681_v31 = vpop.f32.mrf.mxu0  ;;  %v6617_v38 = vpop.f32.mrf.mxu1  ;;  %7032 = vmatmul.mubr.f32.gmra.mxu1 %v5578_v52  ;;  %v5582_v52 = vld [vmem:[%s7553_s21 + $0x179] sm:$0xff] }
 0x203   : > { %v8751_v18 = vadd.f32 %v2681_v31, %v2268_v33  ;;  %v2271_v28 = vadd.f32 %v6617_v38, %v9357_v15  ;;  %7034 = vmatprep.mubr.f32.mxu1 %v5579_v54  ;;  %v5583_v54 = vld [vmem:[%s7553_s21 + $0x181] sm:$0xff] }
 0x204   : > { %v6721_v13 = vpop.f32.mrf.mxu0  ;;  %7136 = vmatmul.mubr.f32.gmra.mxu0 %v9358_v10  ;;  %v2175_v0 = vpop.f32.mrf.mxu1  ;;  %v9363_v33 = vld [vmem:[#allocation18_spill] sm:$0xff]  ;;  %v9364_v31 = vld [vmem:[#allocation28_spill] sm:$0xff] }
 0x205   : > { %v8757_v43 = vadd.f32 %v6721_v13, %v2271_v28  ;;  %v2270_v3 = vadd.f32 %v2175_v0, %v9359_v1  ;;  %7138 = vmatprep.mubr.f32.mxu0 %v9360_v29  ;;  %v5584_v10 = vld [vmem:[%s7553_s21 + $0x189] sm:$0xff] }
 0x206   : > { %v2691_v48 = vpop.f32.mrf.mxu0  ;;  %v6620_v60 = vpop.f32.mrf.mxu1  ;;  %7035 = vmatmul.mubr.f32.gmra.mxu1 %v5580_v19  ;;  %v9365_v19 = vld [vmem:[#allocation30_spill] sm:$0xff] }
 0x207   : > { %v8761_v17 = vadd.f32 %v2691_v48, %v2270_v3  ;;  %v2273_v55 = vadd.f32 %v6620_v60, %v9361_v16  ;;  %7037 = vmatprep.mubr.f32.mxu1 %v5581_v21  ;;  %v9366_v21 = vld [vmem:[#allocation19_spill] sm:$0xff]  ;;  %v5585_v3 = vld [vmem:[%s7553_s21 + $0x191] sm:$0xff] }
 0x208   : > { %v6724_v40 = vpop.f32.mrf.mxu0  ;;  %7139 = vmatmul.mubr.f32.gmra.mxu0 %v9362_v34  ;;  %v2185_v56 = vpop.f32.mrf.mxu1  ;;  %v9367_v48 = vld [vmem:[#allocation20_spill] sm:$0xff]  ;;  %v9369_v34 = vld [vmem:[#allocation33_spill] sm:$0xff] }
 0x209   : > { %v8767_v42 = vadd.f32 %v6724_v40, %v2273_v55  ;;  %v2272_v27 = vadd.f32 %v2185_v56, %v9363_v33  ;;  %7141 = vmatprep.mubr.f32.mxu0 %v9364_v31  ;;  %v9368_v16 = vld [vmem:[#allocation32_spill] sm:$0xff] }
 0x20a   : > { %v2701_v38 = vpop.f32.mrf.mxu0  ;;  %v6623_v15 = vpop.f32.mrf.mxu1  ;;  %7038 = vmatmul.mubr.f32.gmra.mxu1 %v5582_v52 }
 0x20b   : > { %v8771_v28 = vadd.f32 %v2701_v38, %v2272_v27  ;;  %v2275_v13 = vadd.f32 %v6623_v15, %v9365_v19  ;;  %7040 = vmatprep.mubr.f32.mxu1 %v5583_v54  ;;  %v5586_v54 = vld [vmem:[%s7553_s21 + $0x199] sm:$0xff]  ;;  %v5587_v38 = vld [vmem:[%s7553_s21 + $0x1a1] sm:$0xff] }
 0x20c   : > { %v6727_v0 = vpop.f32.mrf.mxu0  ;;  %7142 = vmatmul.mubr.f32.gmra.mxu0 %v9366_v21  ;;  %v2195_v1 = vpop.f32.mrf.mxu1  ;;  %v9370_v27 = vld [vmem:[#allocation29_spill] sm:$0xff]  ;;  %v9371_v19 = vld [vmem:[#allocation31_spill] sm:$0xff] }
 0x20d   : > { %v8777_v29 = vadd.f32 %v6727_v0, %v2275_v13  ;;  %v2274_v60 = vadd.f32 %v2195_v1, %v9367_v48  ;;  %7144 = vmatprep.mubr.f32.mxu0 %v9368_v16  ;;  %v9372_v0 = vld [vmem:[#allocation36_spill] sm:$0xff] }
 0x20e   : > { %v2711_v55 = vpop.f32.mrf.mxu0  ;;  %v6626_v52 = vpop.f32.mrf.mxu1  ;;  %7041 = vmatmul.mubr.f32.gmra.mxu1 %v5584_v10  ;;  %v5634_v10 = vld [vmem:[%s7553_s21 + $0x19a] sm:$0xff]  ;;  %v5635_v48 = vld [vmem:[%s7553_s21 + $0x1a2] sm:$0xff] }
 0x20f   : > { %v8781_v40 = vadd.f32 %v2711_v55, %v2274_v60  ;;  %v2277_v56 = vadd.f32 %v6626_v52, %v9369_v34  ;;  %7043 = vmatprep.mubr.f32.mxu1 %v5585_v3  ;;  %v9373_v60 = vld [vmem:[#allocation34_spill] sm:$0xff]  ;;  %v5588_v55 = vld [vmem:[%s7553_s21 + $0x1a9] sm:$0xff] }
 0x210   : > { %v6730_v33 = vpop.f32.mrf.mxu0  ;;  %7145 = vmatmul.mubr.f32.gmra.mxu0 %v9370_v27  ;;  %v2205_v31 = vpop.f32.mrf.mxu1  ;;  %v5636_v27 = vld [vmem:[%s7553_s21 + $0x1aa] sm:$0xff] }
 0x211   : > { %v8787_v15 = vadd.f32 %v6730_v33, %v2277_v56  ;;  %v2276_v13 = vadd.f32 %v2205_v31, %v9371_v19  ;;  %7147 = vmatprep.mubr.f32.mxu0 %v9372_v0 }
 0x212   : > { %v2721_v21 = vpop.f32.mrf.mxu0  ;;  %v6629_v1 = vpop.f32.mrf.mxu1  ;;  %7044 = vmatmul.mubr.f32.gmra.mxu1 %v5586_v54 }
 0x213   : > { %v8793_v3 = vadd.f32 %v2721_v21, %v2276_v13  ;;  %v2279_v16 = vadd.f32 %v6629_v1, %v9373_v60  ;;  %7046 = vmatprep.mubr.f32.mxu1 %v5587_v38  ;;  %v9374_v13 = vld [vmem:[#allocation35_spill] sm:$0xff] }
 0x214   : > { %v6733_v52 = vpop.f32.mrf.mxu0  ;;  %7148 = vmatmul.mubr.f32.gmra.mxu0 %v5634_v10  ;;  %v2215_v34 = vpop.f32.mrf.mxu1 }
 0x215   : > { %v8797_v56 = vadd.f32 %v6733_v52, %v2279_v16  ;;  %v2278_v33 = vadd.f32 %v2215_v34, %v8562_v26  ;;  %7150 = vmatprep.mubr.f32.mxu0 %v5635_v48 }
 0x216   : > { %v2731_v31 = vpop.f32.mrf.mxu0  ;;  %v6632_v19 = vpop.f32.mrf.mxu1  ;;  %7047 = vmatmul.mubr.f32.gmra.mxu1 %v5588_v55 }
 0x217   : > { %v8801_v54 = vadd.f32 %v2731_v31, %v2278_v33  ;;  %v2281_v0 = vadd.f32 %v6632_v19, %v9374_v13 }
 0x218   : > { %v6736_v21 = vpop.f32.mrf.mxu0  ;;  %7151 = vmatmul.mubr.f32.gmra.mxu0 %v5636_v27  ;;  %v2225_v38 = vpop.f32.mrf.mxu1 }
 0x219   : > { %v8804_v1 = vadd.f32 %v6736_v21, %v2281_v0  ;;  %v2280_v10 = vadd.f32 %v2225_v38, %v8571_v62 }
 0x21a   : > { %v2741_v60 = vpop.f32.mrf.mxu0  ;;  %v6771_v16 = vpop.f32.mrf.mxu1 }
 0x21b   : > { %v8807_v52 = vadd.f32 %v2741_v60, %v2280_v10  ;;  %v3267_v26 = vadd.f32 %v6771_v16, %v8577_v50 }
 0x21c   : > { %v6875_v48 = vpop.f32.mrf.mxu0  ;;  %v3027_v34 = vpop.f32.mrf.mxu1 }
 0x21d   : > { %v8810_v55 = vadd.f32 %v6875_v48, %v3267_v26  ;;  %v3266_v33 = vadd.f32 %v3027_v34, %v8581_v23 }
 0x21e   : > { %v3543_v31 = vpop.f32.mrf.mxu0  ;;  %v6774_v19 = vpop.f32.mrf.mxu1 }
 0x21f   : > { %v8813_v27 = vadd.f32 %v3543_v31, %v3266_v33  ;;  %v3269_v13 = vadd.f32 %v6774_v19, %v8587_v5 }
 0x220   : > { %v6878_v0 = vpop.f32.mrf.mxu0  ;;  %v3037_v62 = vpop.f32.mrf.mxu1 }
 0x221   : > { %v8816_v21 = vadd.f32 %v6878_v0, %v3269_v13  ;;  %v3268_v38 = vadd.f32 %v3037_v62, %v8591_v49 }
 0x222   : > { %v3553_v10 = vpop.f32.mrf.mxu0  ;;  %v6777_v50 = vpop.f32.mrf.mxu1 }
 0x223   : > { %v8819_v60 = vadd.f32 %v3553_v10, %v3268_v38  ;;  %v3271_v16 = vadd.f32 %v6777_v50, %v8597_v37 }
 0x224   : > { %v6881_v26 = vpop.f32.mrf.mxu0  ;;  %v3047_v23 = vpop.f32.mrf.mxu1 }
 0x225   : > { %v8822_v48 = vadd.f32 %v6881_v26, %v3271_v16  ;;  %v3270_v34 = vadd.f32 %v3047_v23, %v8601_v7 }
 0x226   : > { %v3563_v33 = vpop.f32.mrf.mxu0  ;;  %v6780_v5 = vpop.f32.mrf.mxu1 }
 0x227   : > { %v8825_v31 = vadd.f32 %v3563_v33, %v3270_v34  ;;  %v3273_v19 = vadd.f32 %v6780_v5, %v8607_v12 }
 0x228   : > { %v6884_v13 = vpop.f32.mrf.mxu0  ;;  %v3057_v49 = vpop.f32.mrf.mxu1 }
 0x229   : > { %v8828_v0 = vadd.f32 %v6884_v13, %v3273_v19  ;;  %v3272_v62 = vadd.f32 %v3057_v49, %v8611_v9 }
 0x22a   : > { %v3573_v38 = vpop.f32.mrf.mxu0  ;;  %v6783_v37 = vpop.f32.mrf.mxu1 }
 0x22b   : > { %v8831_v10 = vadd.f32 %v3573_v38, %v3272_v62  ;;  %v3275_v50 = vadd.f32 %v6783_v37, %v8617_v32 }
 0x22c   : > { %v6887_v16 = vpop.f32.mrf.mxu0  ;;  %v3067_v7 = vpop.f32.mrf.mxu1 }
 0x22d   : > { %v8834_v26 = vadd.f32 %v6887_v16, %v3275_v50  ;;  %v3274_v23 = vadd.f32 %v3067_v7, %v8621_v2 }
 0x22e   : > { %v3583_v34 = vpop.f32.mrf.mxu0  ;;  %v6786_v12 = vpop.f32.mrf.mxu1 }
 0x22f   : > { %v8837_v33 = vadd.f32 %v3583_v34, %v3274_v23  ;;  %v3277_v5 = vadd.f32 %v6786_v12, %v8627_v59 }
 0x230   : > { %v6890_v19 = vpop.f32.mrf.mxu0  ;;  %v3077_v9 = vpop.f32.mrf.mxu1 }
 0x231   : > { %v8840_v13 = vadd.f32 %v6890_v19, %v3277_v5  ;;  %v3276_v49 = vadd.f32 %v3077_v9, %v8631_v41 }
 0x232   : > { %v3593_v62 = vpop.f32.mrf.mxu0  ;;  %v6789_v32 = vpop.f32.mrf.mxu1 }
 0x233   : > { %v8843_v38 = vadd.f32 %v3593_v62, %v3276_v49  ;;  %v3279_v37 = vadd.f32 %v6789_v32, %v8637_v25 }
 0x234   : > { %v6893_v50 = vpop.f32.mrf.mxu0  ;;  %v3087_v2 = vpop.f32.mrf.mxu1 }
 0x235   : > { %v8846_v16 = vadd.f32 %v6893_v50, %v3279_v37  ;;  %v3278_v7 = vadd.f32 %v3087_v2, %v8641_v51 }
 0x236   : > { %v3603_v23 = vpop.f32.mrf.mxu0  ;;  %v6792_v59 = vpop.f32.mrf.mxu1 }
 0x237   : > { %v8849_v34 = vadd.f32 %v3603_v23, %v3278_v7  ;;  %v3281_v12 = vadd.f32 %v6792_v59, %v8647_v30 }
 0x238   : > { %v6896_v5 = vpop.f32.mrf.mxu0  ;;  %v3097_v41 = vpop.f32.mrf.mxu1 }
 0x239   : > { %v8852_v19 = vadd.f32 %v6896_v5, %v3281_v12  ;;  %v3280_v9 = vadd.f32 %v3097_v41, %v8651_v20 }
 0x23a   : > { %v3613_v49 = vpop.f32.mrf.mxu0  ;;  %v6795_v25 = vpop.f32.mrf.mxu1 }
 0x23b   : > { %v8855_v62 = vadd.f32 %v3613_v49, %v3280_v9  ;;  %v3283_v32 = vadd.f32 %v6795_v25, %v8657_v63 }
 0x23c   : > { %v6899_v37 = vpop.f32.mrf.mxu0  ;;  %v3107_v51 = vpop.f32.mrf.mxu1 }
 0x23d   : > { %v8858_v50 = vadd.f32 %v6899_v37, %v3283_v32  ;;  %v3282_v2 = vadd.f32 %v3107_v51, %v8661_v58 }
 0x23e   : > { %v3623_v7 = vpop.f32.mrf.mxu0  ;;  %v6798_v30 = vpop.f32.mrf.mxu1 }
 0x23f   : > { %v8861_v23 = vadd.f32 %v3623_v7, %v3282_v2  ;;  %v3285_v59 = vadd.f32 %v6798_v30, %v8667_v6 }
 0x240   : > { %v6902_v12 = vpop.f32.mrf.mxu0  ;;  %v3117_v20 = vpop.f32.mrf.mxu1 }
 0x241   : > { %v8864_v5 = vadd.f32 %v6902_v12, %v3285_v59  ;;  %v3284_v41 = vadd.f32 %v3117_v20, %v8671_v57 }
 0x242   : > { %v3633_v9 = vpop.f32.mrf.mxu0  ;;  %v6801_v63 = vpop.f32.mrf.mxu1 }
 0x243   : > { %v8867_v49 = vadd.f32 %v3633_v9, %v3284_v41  ;;  %v3287_v25 = vadd.f32 %v6801_v63, %v8677_v46 }
 0x244   : > { %v6905_v32 = vpop.f32.mrf.mxu0  ;;  %v3127_v58 = vpop.f32.mrf.mxu1 }
 0x245   : > { %v8870_v37 = vadd.f32 %v6905_v32, %v3287_v25  ;;  %v3286_v51 = vadd.f32 %v3127_v58, %v8681_v47 }
 0x246   : > { %v3643_v2 = vpop.f32.mrf.mxu0  ;;  %v6804_v6 = vpop.f32.mrf.mxu1 }
 0x247   : > { %v8873_v7 = vadd.f32 %v3643_v2, %v3286_v51  ;;  %v3289_v30 = vadd.f32 %v6804_v6, %v8687_v36 }
 0x248   : > { %v6908_v59 = vpop.f32.mrf.mxu0  ;;  %v3137_v57 = vpop.f32.mrf.mxu1 }
 0x249   : > { %v8876_v12 = vadd.f32 %v6908_v59, %v3289_v30  ;;  %v3288_v20 = vadd.f32 %v3137_v57, %v8691_v39 }
 0x24a   : > { %v3653_v41 = vpop.f32.mrf.mxu0  ;;  %v6807_v46 = vpop.f32.mrf.mxu1 }
 0x24b   : > { %v8879_v9 = vadd.f32 %v3653_v41, %v3288_v20  ;;  %v3291_v63 = vadd.f32 %v6807_v46, %v8697_v44 }
 0x24c   : > { %v6911_v25 = vpop.f32.mrf.mxu0  ;;  %v3147_v47 = vpop.f32.mrf.mxu1 }
 0x24d   : > { %v8882_v32 = vadd.f32 %v6911_v25, %v3291_v63  ;;  %v3290_v58 = vadd.f32 %v3147_v47, %v8701_v35 }
 0x24e   : > { %v3663_v51 = vpop.f32.mrf.mxu0  ;;  %v6810_v36 = vpop.f32.mrf.mxu1 }
 0x24f   : > { %v8885_v2 = vadd.f32 %v3663_v51, %v3290_v58  ;;  %v3293_v6 = vadd.f32 %v6810_v36, %v8707_v8 }
 0x250   : > { %v6914_v30 = vpop.f32.mrf.mxu0  ;;  %v3157_v39 = vpop.f32.mrf.mxu1 }
 0x251   : > { %v8888_v59 = vadd.f32 %v6914_v30, %v3293_v6  ;;  %v3292_v57 = vadd.f32 %v3157_v39, %v8711_v22 }
 0x252   : > { %v3673_v20 = vpop.f32.mrf.mxu0  ;;  %v6813_v44 = vpop.f32.mrf.mxu1 }
 0x253   : > { %v8891_v41 = vadd.f32 %v3673_v20, %v3292_v57  ;;  %v3295_v46 = vadd.f32 %v6813_v44, %v8717_v4 }
 0x254   : > { %v6917_v63 = vpop.f32.mrf.mxu0  ;;  %v3167_v35 = vpop.f32.mrf.mxu1 }
 0x255   : > { %v8894_v25 = vadd.f32 %v6917_v63, %v3295_v46  ;;  %v3294_v47 = vadd.f32 %v3167_v35, %v8721_v45 }
 0x256   : > { %v3683_v58 = vpop.f32.mrf.mxu0  ;;  %v6816_v8 = vpop.f32.mrf.mxu1 }
 0x257   : > { %v8897_v51 = vadd.f32 %v3683_v58, %v3294_v47  ;;  %v3297_v36 = vadd.f32 %v6816_v8, %v8727_v14 }
 0x258   : > { %v6920_v6 = vpop.f32.mrf.mxu0  ;;  %v3177_v22 = vpop.f32.mrf.mxu1 }
 0x259   : > { %v8900_v30 = vadd.f32 %v6920_v6, %v3297_v36  ;;  %v3296_v39 = vadd.f32 %v3177_v22, %v8731_v24 }
 0x25a   : > { %v3693_v57 = vpop.f32.mrf.mxu0  ;;  %v6819_v4 = vpop.f32.mrf.mxu1 }
 0x25b   : > { %v8903_v20 = vadd.f32 %v3693_v57, %v3296_v39  ;;  %v3299_v44 = vadd.f32 %v6819_v4, %v8737_v61 }
 0x25c   : > { %v6923_v46 = vpop.f32.mrf.mxu0  ;;  %v3187_v45 = vpop.f32.mrf.mxu1 }
 0x25d   : > { %v8906_v63 = vadd.f32 %v6923_v46, %v3299_v44  ;;  %v3298_v35 = vadd.f32 %v3187_v45, %v8741_v11 }
 0x25e   : > { %v3703_v47 = vpop.f32.mrf.mxu0  ;;  %v6822_v14 = vpop.f32.mrf.mxu1 }
 0x25f   : > { %v8909_v58 = vadd.f32 %v3703_v47, %v3298_v35  ;;  %v3301_v8 = vadd.f32 %v6822_v14, %v8747_v53 }
 0x260   : > { %v6926_v36 = vpop.f32.mrf.mxu0  ;;  %v3197_v24 = vpop.f32.mrf.mxu1 }
 0x261   : > { %v8912_v6 = vadd.f32 %v6926_v36, %v3301_v8  ;;  %v3300_v22 = vadd.f32 %v3197_v24, %v8751_v18 }
 0x262   : > { %v3713_v39 = vpop.f32.mrf.mxu0  ;;  %v6825_v61 = vpop.f32.mrf.mxu1 }
 0x263   : > { %v8915_v57 = vadd.f32 %v3713_v39, %v3300_v22  ;;  %v3303_v4 = vadd.f32 %v6825_v61, %v8757_v43 }
 0x264   : > { %v6929_v44 = vpop.f32.mrf.mxu0  ;;  %v3207_v11 = vpop.f32.mrf.mxu1 }
 0x265   : > { %v8918_v46 = vadd.f32 %v6929_v44, %v3303_v4  ;;  %v3302_v45 = vadd.f32 %v3207_v11, %v8761_v17 }
 0x266   : > { %v3723_v35 = vpop.f32.mrf.mxu0  ;;  %v6828_v53 = vpop.f32.mrf.mxu1 }
 0x267   : > { %v8921_v47 = vadd.f32 %v3723_v35, %v3302_v45  ;;  %v3305_v14 = vadd.f32 %v6828_v53, %v8767_v42 }
 0x268   : > { %v6932_v8 = vpop.f32.mrf.mxu0  ;;  %v3217_v18 = vpop.f32.mrf.mxu1 }
 0x269   : > { %v8924_v36 = vadd.f32 %v6932_v8, %v3305_v14  ;;  %v3304_v24 = vadd.f32 %v3217_v18, %v8771_v28 }
 0x26a   : > { %v3733_v22 = vpop.f32.mrf.mxu0  ;;  %v6831_v43 = vpop.f32.mrf.mxu1 }
 0x26b   : > { %v8927_v39 = vadd.f32 %v3733_v22, %v3304_v24  ;;  %v3307_v61 = vadd.f32 %v6831_v43, %v8777_v29 }
 0x26c   : > { %v6935_v4 = vpop.f32.mrf.mxu0  ;;  %v3227_v17 = vpop.f32.mrf.mxu1 }
 0x26d   : > { %v8930_v44 = vadd.f32 %v6935_v4, %v3307_v61  ;;  %v3306_v11 = vadd.f32 %v3227_v17, %v8781_v40 }
 0x26e   : > { %v3743_v45 = vpop.f32.mrf.mxu0  ;;  %v6834_v42 = vpop.f32.mrf.mxu1 }
 0x26f   : > { %v8933_v35 = vadd.f32 %v3743_v45, %v3306_v11  ;;  %v3309_v53 = vadd.f32 %v6834_v42, %v8787_v15 }
 0x270   : > { %v6938_v14 = vpop.f32.mrf.mxu0  ;;  %v3237_v28 = vpop.f32.mrf.mxu1 }
 0x271   : > { %v8936_v8 = vadd.f32 %v6938_v14, %v3309_v53  ;;  %v3308_v18 = vadd.f32 %v3237_v28, %v8793_v3 }
 0x272   : > { %v3753_v24 = vpop.f32.mrf.mxu0  ;;  %v6837_v29 = vpop.f32.mrf.mxu1 }
 0x273   : > { %v8939_v22 = vadd.f32 %v3753_v24, %v3308_v18  ;;  %v3311_v43 = vadd.f32 %v6837_v29, %v8797_v56 }
 0x274   : > { %v6941_v61 = vpop.f32.mrf.mxu0  ;;  %v3247_v40 = vpop.f32.mrf.mxu1 }
 0x275   : > { %v8942_v4 = vadd.f32 %v6941_v61, %v3311_v43  ;;  %v3310_v17 = vadd.f32 %v3247_v40, %v8801_v54  ;;  %v8958_v43 = vld [vmem:[%s9162_s2] ss:$0 sm:$0xff] }
 0x276   : > { %v3763_v15 = vpop.f32.mrf.mxu0  ;;  %v6840_v11 = vpop.f32.mrf.mxu1 }
 0x277   : > { %v8945_v45 = vadd.f32 %v3763_v15, %v3310_v17  ;;  %v3313_v42 = vadd.f32 %v6840_v11, %v8804_v1 }
 0x278   : > { %v6944_v3 = vpop.f32.mrf.mxu0  ;;  %v3257_v53 = vpop.f32.mrf.mxu1 }
 0x279   : > { %v8948_v14 = vadd.f32 %v6944_v3, %v3313_v42  ;;  %v3312_v28 = vadd.f32 %v3257_v53, %v8807_v52 }
 0x27a   : > { %v3773_v56 = vpop.f32.mrf.mxu0  ;;  %v6979_v18 = vpop.f32.mrf.mxu1 }
 0x27b   : > { %9375 = vst [vmem:[#allocation37_spill] sm:$0xff] %v8948_v14  ;;  %v8951_v24 = vadd.f32 %v3773_v56, %v3312_v28  ;;  %v4299_v29 = vadd.f32 %v6979_v18, %v8810_v55 }
 0x27c   : > { %v7083_v54 = vpop.f32.mrf.mxu0  ;;  %v4059_v1 = vpop.f32.mrf.mxu1 }
 0x27d   : > { %9376 = vst [vmem:[#allocation38_spill] sm:$0xff] %v8951_v24  ;;  %v4815_v61 = vadd.f32 %v7083_v54, %v4299_v29  ;;  %v4298_v40 = vadd.f32 %v4059_v1, %v8813_v27 }
 0x27e   : > { %v4575_v17 = vpop.f32.mrf.mxu0  ;;  %v6982_v15 = vpop.f32.mrf.mxu1 }
 0x27f   : > { %v4966_v52 = vadd.f32 %v8958_v43, %v4815_v61  ;;  %v4814_v11 = vadd.f32 %v4575_v17, %v4298_v40  ;;  %v4301_v42 = vadd.f32 %v6982_v15, %v8816_v21 }
 0x280   : > { %v7086_v3 = vpop.f32.mrf.mxu0  ;;  %v4069_v55 = vpop.f32.mrf.mxu1 }
 0x281   : > { %v5014_v53 = vmax.f32 %v4966_v52, 0.0  ;;  %v4965_v28 = vadd.f32 %v8958_v43, %v4814_v11  ;;  %v4817_v56 = vadd.f32 %v7086_v3, %v4301_v42  ;;  %v4300_v18 = vadd.f32 %v4069_v55, %v8819_v60 }
 0x282   : > { %v4585_v24 = vpop.f32.mrf.mxu0  ;;  %v6985_v14 = vpop.f32.mrf.mxu1 }
 0x283   : > { %5062 = vst [vmem:[%s8965_s30 + $0x8] sm:$0xff] %v5014_v53  ;;  %v5013_v27 = vmax.f32 %v4965_v28, 0.0  ;;  %v4968_v29 = vadd.f32 %v8958_v43, %v4817_v56  ;;  %v4816_v21 = vadd.f32 %v4585_v24, %v4300_v18  ;;  %v4303_v54 = vadd.f32 %v6985_v14, %v8822_v48 }
 0x284   : > { %v7089_v1 = vpop.f32.mrf.mxu0  ;;  %v4079_v61 = vpop.f32.mrf.mxu1 }
 0x285   : > { %5061 = vst [vmem:[%s8965_s30] sm:$0xff] %v5013_v27  ;;  %v5016_v40 = vmax.f32 %v4968_v29, 0.0  ;;  %v4967_v60 = vadd.f32 %v8958_v43, %v4816_v21  ;;  %v4819_v17 = vadd.f32 %v7089_v1, %v4303_v54  ;;  %v4302_v15 = vadd.f32 %v4079_v61, %v8825_v31 }
 0x286   : > { %v4595_v52 = vpop.f32.mrf.mxu0  ;;  %v6988_v11 = vpop.f32.mrf.mxu1 }
 0x287   : > { %5064 = vst [vmem:[%s8965_s30 + $0x18] sm:$0xff] %v5016_v40  ;;  %v5015_v42 = vmax.f32 %v4967_v60, 0.0  ;;  %v4970_v3 = vadd.f32 %v8958_v43, %v4819_v17  ;;  %v4818_v24 = vadd.f32 %v4595_v52, %v4302_v15  ;;  %v4305_v48 = vadd.f32 %v6988_v11, %v8828_v0 }
 0x288   : > { %v7092_v14 = vpop.f32.mrf.mxu0  ;;  %v4089_v55 = vpop.f32.mrf.mxu1 }
 0x289   : > { %5063 = vst [vmem:[%s8965_s30 + $0x10] sm:$0xff] %v5015_v42  ;;  %v5018_v53 = vmax.f32 %v4970_v3, 0.0  ;;  %v4969_v28 = vadd.f32 %v8958_v43, %v4818_v24  ;;  %v4821_v56 = vadd.f32 %v7092_v14, %v4305_v48  ;;  %v4304_v31 = vadd.f32 %v4089_v55, %v8831_v10 }
 0x28a   : > { %v4605_v18 = vpop.f32.mrf.mxu0  ;;  %v6991_v27 = vpop.f32.mrf.mxu1 }
 0x28b   : > { %5066 = vst [vmem:[%s8965_s30 + $0x28] sm:$0xff] %v5018_v53  ;;  %v5017_v29 = vmax.f32 %v4969_v28, 0.0  ;;  %v4972_v21 = vadd.f32 %v8958_v43, %v4821_v56  ;;  %v4820_v54 = vadd.f32 %v4605_v18, %v4304_v31  ;;  %v4307_v0 = vadd.f32 %v6991_v27, %v8834_v26 }
 0x28c   : > { %v7095_v1 = vpop.f32.mrf.mxu0  ;;  %v4099_v61 = vpop.f32.mrf.mxu1 }
 0x28d   : > { %5065 = vst [vmem:[%s8965_s30 + $0x20] sm:$0xff] %v5017_v29  ;;  %v5020_v40 = vmax.f32 %v4972_v21, 0.0  ;;  %v4971_v60 = vadd.f32 %v8958_v43, %v4820_v54  ;;  %v4823_v17 = vadd.f32 %v7095_v1, %v4307_v0  ;;  %v4306_v10 = vadd.f32 %v4099_v61, %v8837_v33 }
 0x28e   : > { %v4615_v15 = vpop.f32.mrf.mxu0  ;;  %v6994_v52 = vpop.f32.mrf.mxu1 }
 0x28f   : > { %5068 = vst [vmem:[%s8965_s30 + $0x38] sm:$0xff] %v5020_v40  ;;  %v5019_v11 = vmax.f32 %v4971_v60, 0.0  ;;  %v4974_v42 = vadd.f32 %v8958_v43, %v4823_v17  ;;  %v4822_v3 = vadd.f32 %v4615_v15, %v4306_v10  ;;  %v4309_v26 = vadd.f32 %v6994_v52, %v8840_v13 }
 0x290   : > { %v7098_v24 = vpop.f32.mrf.mxu0  ;;  %v4109_v48 = vpop.f32.mrf.mxu1 }
 0x291   : > { %5067 = vst [vmem:[%s8965_s30 + $0x30] sm:$0xff] %v5019_v11  ;;  %v5022_v14 = vmax.f32 %v4974_v42, 0.0  ;;  %v4973_v55 = vadd.f32 %v8958_v43, %v4822_v3  ;;  %v4825_v53 = vadd.f32 %v7098_v24, %v4309_v26  ;;  %v4308_v33 = vadd.f32 %v4109_v48, %v8843_v38 }
 0x292   : > { %v4625_v28 = vpop.f32.mrf.mxu0  ;;  %v6997_v56 = vpop.f32.mrf.mxu1 }
 0x293   : > { %5070 = vst [vmem:[%s8965_s30 + $0x48] sm:$0xff] %v5022_v14  ;;  %v5021_v31 = vmax.f32 %v4973_v55, 0.0  ;;  %v4976_v18 = vadd.f32 %v8958_v43, %v4825_v53  ;;  %v4824_v27 = vadd.f32 %v4625_v28, %v4308_v33  ;;  %v4311_v13 = vadd.f32 %v6997_v56, %v8846_v16 }
 0x294   : > { %v7101_v29 = vpop.f32.mrf.mxu0  ;;  %v4119_v21 = vpop.f32.mrf.mxu1 }
 0x295   : > { %5069 = vst [vmem:[%s8965_s30 + $0x40] sm:$0xff] %v5021_v31  ;;  %v5024_v54 = vmax.f32 %v4976_v18, 0.0  ;;  %v4975_v0 = vadd.f32 %v8958_v43, %v4824_v27  ;;  %v4827_v1 = vadd.f32 %v7101_v29, %v4311_v13  ;;  %v4310_v38 = vadd.f32 %v4119_v21, %v8849_v34 }
 0x296   : > { %v4635_v61 = vpop.f32.mrf.mxu0  ;;  %v7000_v40 = vpop.f32.mrf.mxu1 }
 0x297   : > { %5072 = vst [vmem:[%s8965_s30 + $0x58] sm:$0xff] %v5024_v54  ;;  %v5023_v60 = vmax.f32 %v4975_v0, 0.0  ;;  %v4978_v17 = vadd.f32 %v8958_v43, %v4827_v1  ;;  %v4826_v10 = vadd.f32 %v4635_v61, %v4310_v38  ;;  %v4313_v16 = vadd.f32 %v7000_v40, %v8852_v19 }
 0x298   : > { %v7104_v15 = vpop.f32.mrf.mxu0  ;;  %v4129_v52 = vpop.f32.mrf.mxu1 }
 0x299   : > { %5071 = vst [vmem:[%s8965_s30 + $0x50] sm:$0xff] %v5023_v60  ;;  %v5026_v11 = vmax.f32 %v4978_v17, 0.0  ;;  %v4977_v42 = vadd.f32 %v8958_v43, %v4826_v10  ;;  %v4829_v3 = vadd.f32 %v7104_v15, %v4313_v16  ;;  %v4312_v34 = vadd.f32 %v4129_v52, %v8855_v62 }
 0x29a   : > { %v4645_v26 = vpop.f32.mrf.mxu0  ;;  %v7003_v24 = vpop.f32.mrf.mxu1 }
 0x29b   : > { %5074 = vst [vmem:[%s8965_s30 + $0x68] sm:$0xff] %v5026_v11  ;;  %v5025_v48 = vmax.f32 %v4977_v42, 0.0  ;;  %v4980_v14 = vadd.f32 %v8958_v43, %v4829_v3  ;;  %v4828_v55 = vadd.f32 %v4645_v26, %v4312_v34  ;;  %v4315_v19 = vadd.f32 %v7003_v24, %v8858_v50 }
 0x29c   : > { %v7107_v53 = vpop.f32.mrf.mxu0  ;;  %v4139_v33 = vpop.f32.mrf.mxu1 }
 0x29d   : > { %5073 = vst [vmem:[%s8965_s30 + $0x60] sm:$0xff] %v5025_v48  ;;  %v5028_v28 = vmax.f32 %v4980_v14, 0.0  ;;  %v4979_v56 = vadd.f32 %v8958_v43, %v4828_v55  ;;  %v4831_v31 = vadd.f32 %v7107_v53, %v4315_v19  ;;  %v4314_v62 = vadd.f32 %v4139_v33, %v8861_v23 }
 0x29e   : > { %v4655_v18 = vpop.f32.mrf.mxu0  ;;  %v7006_v27 = vpop.f32.mrf.mxu1 }
 0x29f   : > { %5076 = vst [vmem:[%s8965_s30 + $0x78] sm:$0xff] %v5028_v28  ;;  %v5027_v13 = vmax.f32 %v4979_v56, 0.0  ;;  %v4982_v29 = vadd.f32 %v8958_v43, %v4831_v31  ;;  %v4830_v21 = vadd.f32 %v4655_v18, %v4314_v62  ;;  %v4317_v50 = vadd.f32 %v7006_v27, %v8864_v5 }
 0x2a0   : > { %v7110_v54 = vpop.f32.mrf.mxu0  ;;  %v4149_v0 = vpop.f32.mrf.mxu1 }
 0x2a1   : > { %5075 = vst [vmem:[%s8965_s30 + $0x70] sm:$0xff] %v5027_v13  ;;  %v5030_v1 = vmax.f32 %v4982_v29, 0.0  ;;  %v4981_v38 = vadd.f32 %v8958_v43, %v4830_v21  ;;  %v4833_v61 = vadd.f32 %v7110_v54, %v4317_v50  ;;  %v4316_v23 = vadd.f32 %v4149_v0, %v8867_v49 }
 0x2a2   : > { %v4665_v40 = vpop.f32.mrf.mxu0  ;;  %v7009_v60 = vpop.f32.mrf.mxu1 }
 0x2a3   : > { %5078 = vst [vmem:[%s8965_s30 + $0x88] sm:$0xff] %v5030_v1  ;;  %v5029_v17 = vmax.f32 %v4981_v38, 0.0  ;;  %v4984_v10 = vadd.f32 %v8958_v43, %v4833_v61  ;;  %v4832_v16 = vadd.f32 %v4665_v40, %v4316_v23  ;;  %v4319_v5 = vadd.f32 %v7009_v60, %v8870_v37 }
 0x2a4   : > { %v7113_v15 = vpop.f32.mrf.mxu0  ;;  %v4159_v52 = vpop.f32.mrf.mxu1 }
 0x2a5   : > { %5077 = vst [vmem:[%s8965_s30 + $0x80] sm:$0xff] %v5029_v17  ;;  %v5032_v11 = vmax.f32 %v4984_v10, 0.0  ;;  %v4983_v42 = vadd.f32 %v8958_v43, %v4832_v16  ;;  %v4835_v3 = vadd.f32 %v7113_v15, %v4319_v5  ;;  %v4318_v49 = vadd.f32 %v4159_v52, %v8873_v7 }
 0x2a6   : > { %v4675_v34 = vpop.f32.mrf.mxu0  ;;  %v7012_v26 = vpop.f32.mrf.mxu1 }
 0x2a7   : > { %5080 = vst [vmem:[%s8965_s30 + $0x98] sm:$0xff] %v5032_v11  ;;  %v5031_v24 = vmax.f32 %v4983_v42, 0.0  ;;  %v4986_v48 = vadd.f32 %v8958_v43, %v4835_v3  ;;  %v4834_v14 = vadd.f32 %v4675_v34, %v4318_v49  ;;  %v4321_v37 = vadd.f32 %v7012_v26, %v8876_v12 }
 0x2a8   : > { %v7116_v55 = vpop.f32.mrf.mxu0  ;;  %v4169_v19 = vpop.f32.mrf.mxu1 }
 0x2a9   : > { %5079 = vst [vmem:[%s8965_s30 + $0x90] sm:$0xff] %v5031_v24  ;;  %v5034_v53 = vmax.f32 %v4986_v48, 0.0  ;;  %v4985_v33 = vadd.f32 %v8958_v43, %v4834_v14  ;;  %v4837_v28 = vadd.f32 %v7116_v55, %v4321_v37  ;;  %v4320_v7 = vadd.f32 %v4169_v19, %v8879_v9 }
 0x2aa   : > { %v4685_v56 = vpop.f32.mrf.mxu0  ;;  %v7015_v31 = vpop.f32.mrf.mxu1 }
 0x2ab   : > { %5082 = vst [vmem:[%s8965_s30 + $0xa8] sm:$0xff] %v5034_v53  ;;  %v5033_v62 = vmax.f32 %v4985_v33, 0.0  ;;  %v4988_v18 = vadd.f32 %v8958_v43, %v4837_v28  ;;  %v4836_v27 = vadd.f32 %v4685_v56, %v4320_v7  ;;  %v4323_v12 = vadd.f32 %v7015_v31, %v8882_v32 }
 0x2ac   : > { %v7119_v13 = vpop.f32.mrf.mxu0  ;;  %v4179_v29 = vpop.f32.mrf.mxu1 }
 0x2ad   : > { %5081 = vst [vmem:[%s8965_s30 + $0xa0] sm:$0xff] %v5033_v62  ;;  %v5036_v21 = vmax.f32 %v4988_v18, 0.0  ;;  %v4987_v50 = vadd.f32 %v8958_v43, %v4836_v27  ;;  %v4839_v54 = vadd.f32 %v7119_v13, %v4323_v12  ;;  %v4322_v9 = vadd.f32 %v4179_v29, %v8885_v2 }
 0x2ae   : > { %v4695_v0 = vpop.f32.mrf.mxu0  ;;  %v7018_v1 = vpop.f32.mrf.mxu1 }
 0x2af   : > { %5084 = vst [vmem:[%s8965_s30 + $0xb8] sm:$0xff] %v5036_v21  ;;  %v5035_v38 = vmax.f32 %v4987_v50, 0.0  ;;  %v4990_v61 = vadd.f32 %v8958_v43, %v4839_v54  ;;  %v4838_v23 = vadd.f32 %v4695_v0, %v4322_v9  ;;  %v4325_v32 = vadd.f32 %v7018_v1, %v8888_v59 }
 0x2b0   : > { %v7122_v40 = vpop.f32.mrf.mxu0  ;;  %v4189_v60 = vpop.f32.mrf.mxu1 }
 0x2b1   : > { %5083 = vst [vmem:[%s8965_s30 + $0xb0] sm:$0xff] %v5035_v38  ;;  %v5038_v17 = vmax.f32 %v4990_v61, 0.0  ;;  %v4989_v10 = vadd.f32 %v8958_v43, %v4838_v23  ;;  %v4841_v16 = vadd.f32 %v7122_v40, %v4325_v32  ;;  %v4324_v2 = vadd.f32 %v4189_v60, %v8891_v41 }
 0x2b2   : > { %v4705_v5 = vpop.f32.mrf.mxu0  ;;  %v7021_v15 = vpop.f32.mrf.mxu1 }
 0x2b3   : > { %5086 = vst [vmem:[%s8965_s30 + $0xc8] sm:$0xff] %v5038_v17  ;;  %v5037_v52 = vmax.f32 %v4989_v10, 0.0  ;;  %v4992_v11 = vadd.f32 %v8958_v43, %v4841_v16  ;;  %v4840_v42 = vadd.f32 %v4705_v5, %v4324_v2  ;;  %v4327_v59 = vadd.f32 %v7021_v15, %v8894_v25 }
 0x2b4   : > { %v7125_v3 = vpop.f32.mrf.mxu0  ;;  %v4199_v49 = vpop.f32.mrf.mxu1 }
 0x2b5   : > { %5085 = vst [vmem:[%s8965_s30 + $0xc0] sm:$0xff] %v5037_v52  ;;  %v5040_v34 = vmax.f32 %v4992_v11, 0.0  ;;  %v4991_v26 = vadd.f32 %v8958_v43, %v4840_v42  ;;  %v4843_v24 = vadd.f32 %v7125_v3, %v4327_v59  ;;  %v4326_v41 = vadd.f32 %v4199_v49, %v8897_v51 }
 0x2b6   : > { %v4715_v48 = vpop.f32.mrf.mxu0  ;;  %v7024_v14 = vpop.f32.mrf.mxu1 }
 0x2b7   : > { %5088 = vst [vmem:[%s8965_s30 + $0xd8] sm:$0xff] %v5040_v34  ;;  %v5039_v37 = vmax.f32 %v4991_v26, 0.0  ;;  %v4994_v55 = vadd.f32 %v8958_v43, %v4843_v24  ;;  %v4842_v19 = vadd.f32 %v4715_v48, %v4326_v41  ;;  %v4329_v25 = vadd.f32 %v7024_v14, %v8900_v30 }
 0x2b8   : > { %v7128_v53 = vpop.f32.mrf.mxu0  ;;  %v4209_v33 = vpop.f32.mrf.mxu1 }
 0x2b9   : > { %5087 = vst [vmem:[%s8965_s30 + $0xd0] sm:$0xff] %v5039_v37  ;;  %v5042_v28 = vmax.f32 %v4994_v55, 0.0  ;;  %v4993_v7 = vadd.f32 %v8958_v43, %v4842_v19  ;;  %v4845_v56 = vadd.f32 %v7128_v53, %v4329_v25  ;;  %v4328_v51 = vadd.f32 %v4209_v33, %v8903_v20 }
 0x2ba   : > { %v4725_v31 = vpop.f32.mrf.mxu0  ;;  %v7027_v62 = vpop.f32.mrf.mxu1 }
 0x2bb   : > { %5090 = vst [vmem:[%s8965_s30 + $0xe8] sm:$0xff] %v5042_v28  ;;  %v5041_v18 = vmax.f32 %v4993_v7, 0.0  ;;  %v4996_v27 = vadd.f32 %v8958_v43, %v4845_v56  ;;  %v4844_v12 = vadd.f32 %v4725_v31, %v4328_v51  ;;  %v4331_v30 = vadd.f32 %v7027_v62, %v8906_v63 }
 0x2bc   : > { %v7131_v13 = vpop.f32.mrf.mxu0  ;;  %v4219_v29 = vpop.f32.mrf.mxu1 }
 0x2bd   : > { %5089 = vst [vmem:[%s8965_s30 + $0xe0] sm:$0xff] %v5041_v18  ;;  %v5044_v21 = vmax.f32 %v4996_v27, 0.0  ;;  %v4995_v50 = vadd.f32 %v8958_v43, %v4844_v12  ;;  %v4847_v54 = vadd.f32 %v7131_v13, %v4331_v30  ;;  %v4330_v20 = vadd.f32 %v4219_v29, %v8909_v58 }
 0x2be   : > { %v4735_v9 = vpop.f32.mrf.mxu0  ;;  %v7030_v0 = vpop.f32.mrf.mxu1 }
 0x2bf   : > { %5092 = vst [vmem:[%s8965_s30 + $0xf8] sm:$0xff] %v5044_v21  ;;  %v5043_v1 = vmax.f32 %v4995_v50, 0.0  ;;  %v4998_v38 = vadd.f32 %v8958_v43, %v4847_v54  ;;  %v4846_v61 = vadd.f32 %v4735_v9, %v4330_v20  ;;  %v4333_v63 = vadd.f32 %v7030_v0, %v8912_v6 }
 0x2c0   : > { %v7134_v23 = vpop.f32.mrf.mxu0  ;;  %v4229_v32 = vpop.f32.mrf.mxu1 }
 0x2c1   : > { %5091 = vst [vmem:[%s8965_s30 + $0xf0] sm:$0xff] %v5043_v1  ;;  %v5046_v40 = vmax.f32 %v4998_v38, 0.0  ;;  %v4997_v60 = vadd.f32 %v8958_v43, %v4846_v61  ;;  %v4849_v17 = vadd.f32 %v7134_v23, %v4333_v63  ;;  %v4332_v58 = vadd.f32 %v4229_v32, %v8915_v57 }
 0x2c2   : > { %v4745_v10 = vpop.f32.mrf.mxu0  ;;  %v7033_v16 = vpop.f32.mrf.mxu1 }
 0x2c3   : > { %5094 = vst [vmem:[%s8965_s30 + $0x108] sm:$0xff] %v5046_v40  ;;  %v5045_v2 = vmax.f32 %v4997_v60, 0.0  ;;  %v5000_v5 = vadd.f32 %v8958_v43, %v4849_v17  ;;  %v4848_v15 = vadd.f32 %v4745_v10, %v4332_v58  ;;  %v4335_v6 = vadd.f32 %v7033_v16, %v8918_v46 }
 0x2c4   : > { %v7137_v52 = vpop.f32.mrf.mxu0  ;;  %v4239_v11 = vpop.f32.mrf.mxu1 }
 0x2c5   : > { %5093 = vst [vmem:[%s8965_s30 + $0x100] sm:$0xff] %v5045_v2  ;;  %v5048_v42 = vmax.f32 %v5000_v5, 0.0  ;;  %v4999_v59 = vadd.f32 %v8958_v43, %v4848_v15  ;;  %v4851_v3 = vadd.f32 %v7137_v52, %v4335_v6  ;;  %v4334_v57 = vadd.f32 %v4239_v11, %v8921_v47  ;;  %v9377_v5 = vld [vmem:[#allocation37_spill] sm:$0xff] }
 0x2c6   : > { %v4755_v49 = vpop.f32.mrf.mxu0  ;;  %v7036_v34 = vpop.f32.mrf.mxu1 }
 0x2c7   : > { %5096 = vst [vmem:[%s8965_s30 + $0x118] sm:$0xff] %v5048_v42  ;;  %v5047_v26 = vmax.f32 %v4999_v59, 0.0  ;;  %v5002_v24 = vadd.f32 %v8958_v43, %v4851_v3  ;;  %v4850_v41 = vadd.f32 %v4755_v49, %v4334_v57  ;;  %v4337_v46 = vadd.f32 %v7036_v34, %v8924_v36  ;;  %v9378_v59 = vld [vmem:[#allocation38_spill] sm:$0xff] }
 0x2c8   : > { %v7140_v48 = vpop.f32.mrf.mxu0  ;;  %v4249_v14 = vpop.f32.mrf.mxu1 }
 0x2c9   : > { %5095 = vst [vmem:[%s8965_s30 + $0x110] sm:$0xff] %v5047_v26  ;;  %v5050_v37 = vmax.f32 %v5002_v24, 0.0  ;;  %v5001_v55 = vadd.f32 %v8958_v43, %v4850_v41  ;;  %v4853_v19 = vadd.f32 %v7140_v48, %v4337_v46  ;;  %v4336_v47 = vadd.f32 %v4249_v14, %v8927_v39 }
 0x2ca   : > { %v4765_v25 = vpop.f32.mrf.mxu0  ;;  %v7039_v53 = vpop.f32.mrf.mxu1 }
 0x2cb   : > { %5098 = vst [vmem:[%s8965_s30 + $0x128] sm:$0xff] %v5050_v37  ;;  %v5049_v33 = vmax.f32 %v5001_v55, 0.0  ;;  %v5004_v28 = vadd.f32 %v8958_v43, %v4853_v19  ;;  %v4852_v7 = vadd.f32 %v4765_v25, %v4336_v47  ;;  %v4339_v36 = vadd.f32 %v7039_v53, %v8930_v44 }
 0x2cc   : > { %v7143_v56 = vpop.f32.mrf.mxu0  ;;  %v4259_v51 = vpop.f32.mrf.mxu1 }
 0x2cd   : > { %5097 = vst [vmem:[%s8965_s30 + $0x120] sm:$0xff] %v5049_v33  ;;  %v5052_v31 = vmax.f32 %v5004_v28, 0.0  ;;  %v5003_v62 = vadd.f32 %v8958_v43, %v4852_v7  ;;  %v4855_v18 = vadd.f32 %v7143_v56, %v4339_v36  ;;  %v4338_v39 = vadd.f32 %v4259_v51, %v8933_v35 }
 0x2ce   : > { %v4775_v27 = vpop.f32.mrf.mxu0  ;;  %v7042_v12 = vpop.f32.mrf.mxu1 }
 0x2cf   : > { %5100 = vst [vmem:[%s8965_s30 + $0x138] sm:$0xff] %v5052_v31  ;;  %v5051_v30 = vmax.f32 %v5003_v62, 0.0  ;;  %v5006_v13 = vadd.f32 %v8958_v43, %v4855_v18  ;;  %v4854_v29 = vadd.f32 %v4775_v27, %v4338_v39  ;;  %v4341_v44 = vadd.f32 %v7042_v12, %v8936_v8 }
 0x2d0   : > { %v7146_v21 = vpop.f32.mrf.mxu0  ;;  %v4269_v50 = vpop.f32.mrf.mxu1 }
 0x2d1   : > { %5099 = vst [vmem:[%s8965_s30 + $0x130] sm:$0xff] %v5051_v30  ;;  %v5054_v54 = vmax.f32 %v5006_v13, 0.0  ;;  %v5005_v20 = vadd.f32 %v8958_v43, %v4854_v29  ;;  %v4857_v9 = vadd.f32 %v7146_v21, %v4341_v44  ;;  %v4340_v35 = vadd.f32 %v4269_v50, %v8939_v22 }
 0x2d2   : > { %v4785_v0 = vpop.f32.mrf.mxu0  ;;  %v7045_v1 = vpop.f32.mrf.mxu1 }
 0x2d3   : > { %5102 = vst [vmem:[%s8965_s30 + $0x148] sm:$0xff] %v5054_v54  ;;  %v5053_v38 = vmax.f32 %v5005_v20, 0.0  ;;  %v5008_v61 = vadd.f32 %v8958_v43, %v4857_v9  ;;  %v4856_v63 = vadd.f32 %v4785_v0, %v4340_v35  ;;  %v4343_v8 = vadd.f32 %v7045_v1, %v8942_v4 }
 0x2d4   : > { %v7149_v23 = vpop.f32.mrf.mxu0  ;;  %v4279_v32 = vpop.f32.mrf.mxu1 }
 0x2d5   : > { %5101 = vst [vmem:[%s8965_s30 + $0x140] sm:$0xff] %v5053_v38  ;;  %v5056_v40 = vmax.f32 %v5008_v61, 0.0  ;;  %v5007_v60 = vadd.f32 %v8958_v43, %v4856_v63  ;;  %v4859_v17 = vadd.f32 %v7149_v23, %v4343_v8  ;;  %v4342_v22 = vadd.f32 %v4279_v32, %v8945_v45 }
 0x2d6   : > { %v4795_v58 = vpop.f32.mrf.mxu0  ;;  %v7048_v10 = vpop.f32.mrf.mxu1 }
 0x2d7   : > { %5104 = vst [vmem:[%s8965_s30 + $0x158] sm:$0xff] %v5056_v40  ;;  %v5055_v16 = vmax.f32 %v5007_v60, 0.0  ;;  %v5010_v2 = vadd.f32 %v8958_v43, %v4859_v17  ;;  %v4858_v4 = vadd.f32 %v4795_v58, %v4342_v22  ;;  %v4345_v15 = vadd.f32 %v7048_v10, %v9377_v5 }
 0x2d8   : > { %v7152_v6 = vpop.f32.mrf.mxu0  ;;  %v4289_v52 = vpop.f32.mrf.mxu1 }
 0x2d9   : > { %5103 = vst [vmem:[%s8965_s30 + $0x150] sm:$0xff] %v5055_v16  ;;  %v5058_v11 = vmax.f32 %v5010_v2, 0.0  ;;  %v5009_v45 = vadd.f32 %v8958_v43, %v4858_v4  ;;  %v4861_v42 = vadd.f32 %v7152_v6, %v4345_v15  ;;  %v4344_v3 = vadd.f32 %v4289_v52, %v9378_v59 }
 0x2da   : > { %v4805_v57 = vpop.f32.mrf.mxu0 }
 0x2db   : > { %5106 = vst [vmem:[%s8965_s30 + $0x168] sm:$0xff] %v5058_v11  ;;  %v5057_v49 = vmax.f32 %v5009_v45, 0.0  ;;  %v5012_v34 = vadd.f32 %v8958_v43, %v4861_v42  ;;  %v4860_v26 = vadd.f32 %v4805_v57, %v4344_v3 }
 0x2dd   : > { %5105 = vst [vmem:[%s8965_s30 + $0x160] sm:$0xff] %v5057_v49  ;;  %v5060_v24 = vmax.f32 %v5012_v34, 0.0  ;;  %v5011_v41 = vadd.f32 %v8958_v43, %v4860_v26 }
 0x2df   : > { %5108 = vst [vmem:[%s8965_s30 + $0x178] sm:$0xff] %v5060_v24  ;;  %v5059_v46 = vmax.f32 %v5011_v41, 0.0 }
 0x2e1   : > { %5107 = vst [vmem:[%s8965_s30 + $0x170] sm:$0xff] %v5059_v46 }
 0x2e2   : > { %7334 = shalt.err (!%p7331_p4)
}
 0x2e3   : > { %s7335_s19 = scalar_lea.hbm %s9108_s6, 6144  ;;  %s7339_s20 = scalar_lea.hbm %s9163_s3, 12288 }
 0x2e4   : > { %p7336_p6 = scmp.ne.s32.totalorder %s9108_s6, %s7335_s19  ;;  %p7340_p0 = scmp.lt.s32.totalorder %s9108_s6, %s9163_s3 }
 0x2e5   : > { %p7341_p3 = scmp.lt.s32.totalorder %s7339_s20, %s7335_s19 }
 0x2e6   : > { %p7337_p9 = pnand %p7336_p6, %p7520_p13 }
 0x2e7   : > { %p7342_p1 = por %p7341_p3, %p7340_p0 }
 0x2e8   : > { %p7338_p12 = pneg %p7337_p9 }
 0x2ea   : > { %p7343_p8 = pnand %p7342_p1, %p7338_p12 }
 0x2ec   : > { %7346 = shalt.err (!%p7343_p8)
}
 0x2ed   : > { %s7412_s30 = smov 128   ;;  %s7413_s4 = smov 8  }
 0x2ee   : > { %7196 = dma.vmem_to_hbm [thread:$0]  (%p7520_p13), %s9111_s26, 6144, %s9108_s6, %s5110_s15, %s7412_s30, %s7412_s30, %s7413_s4  }
 0x2ef PF: > { %s5140_s27 = sand.u32 1, %s7385_s12   ;;  %p9379_p11 = scmp.ne.s32.totalorder %s9209_s23, 0 }
 0x2f0   : > { %s5141_s5 = scalar_lea.sflag [#allocation5], %s5140_s27 }
 0x2f1   : > { %p7207_p2 = pnand %p5249_p10, %p9379_p11 }
 0x2f3   : > { %p7208_p5 = pneg %p7207_p2 }
 0x2f5   : > { %7380 = dma.done.wait (%p7208_p5), %s5141_s5, 6144  }
 0x2f6   : > { %7382 = vsyncadd (%p7208_p5), %s5141_s5, 4294961152  ;;  %s20_s17 = sadd.s32 1, %s7405_s17   ;;  %s9380_s12 = smov %s7389_s13 }
 0x2f7   : > { %p17_p7 = scmp.ge.s32.totalorder %s20_s17, 4   ;;  %s9381_s13 = smov %s7393_s14 }
 0x2f8   : > { %s9382_s14 = smov %s7529_s18  ;;  %s9383_s15 = smov %s7401_s16 }
 0x2f9   : > { %s9384_s16 = smov %s9386_s28  ;;  %19 = sbr.rel (!%p17_p7) target bundleno = 7 (0x7), region = 98 }
 0x2fe   :  { %5146 = vsyncpa [#allocation4], 1 }
 0x2ff   :  { %5148 = vsyncpa [#allocation4 + $0x1], 1 }
 0x300   :  { %5149 = vsyncpa [#allocation7], 1 }
 0x301   :  { %5150 = vsyncpa [#allocation5], 1 }
 0x302   :  { %5152 = vsyncpa [#allocation5 + $0x1], 1 }

</bundles_post_ra>
